<compile_context>
chip_gen: v5e
topology: v5e:2x2
jax: 0.10.0
libtpu: 0.0.40
codegen_flags: <defaults>
</compile_context>

<pallas_src>
import jax
import jax.numpy as jnp
from jax import lax
from jax.experimental import pallas as pl
from jax.experimental.pallas import tpu as pltpu


# ---------------------------------------------------------------------------
# Pallas kernel: one batch tile (B samples) per grid step, channels-last.
# ---------------------------------------------------------------------------
def _inception_d_kernel(
    xe_ref, xo_ref,              # (B*Lh, Cin) bf16: even / odd positions of x
    w1a_ref, b1a_ref,            # branch3_1:   (Cin, 192) bf16, (1, 192) f32
    w1b_ref, b1b_ref,            # branch3_2:   (3, 192, 320) bf16, (1, 320) f32
    w2a_ref, b2a_ref,            # branch7x3_1: (Cin, 192) bf16, (1, 192) f32
    w2b_ref, b2b_ref,            # branch7x3_2: (7, 192, 192) bf16, (1, 192) f32
    w2c_ref, b2c_ref,            # branch7x3_3: (3, 192, 192) bf16, (1, 192) f32
    out_ref,                     # (B, Lo, 320 + 192 + Cin) f32
):
  f32, bf16 = jnp.float32, jnp.bfloat16
  B, Lo, _ = out_ref.shape
  Lh = Lo + 1                                   # = L // 2
  R = B * Lh                                    # rows per tile (batch folded in)

  xe = xe_ref[...]                              # (R, Cin) bf16
  xo = xo_ref[...]

  # Per-row within-sample position j = r % Lh.  Masks kill contributions that
  # a global row shift would otherwise pull across sample boundaries or out of
  # the (zero-)padded range.
  j = lax.broadcasted_iota(jnp.int32, (R, 1), 0) % Lh
  masks = {
      d: jnp.logical_and(j + d >= 0, j + d < Lh).astype(f32)
      for d in (-2, -1, 1, 2)
  }

  def shifted(a, d):
    """a'[r] = a[r + d] if row r+d lies in the same Lh-row sample, else 0."""
    if d == 0:
      return a
    z = jnp.zeros((abs(d), a.shape[1]), a.dtype)
    if d > 0:
      rolled = jnp.concatenate([a[d:], z], axis=0)
    else:
      rolled = jnp.concatenate([z, a[:R + d]], axis=0)
    return rolled * masks[d]

  def mm(a, w):
    return jnp.dot(a, w, preferred_element_type=f32)

  # ---- 1x1 convs (+folded BN + relu), tile-wide: M = B*Lh rows. ----
  def conv1x1(x, w_ref, b_ref):
    return jnp.maximum(mm(x, w_ref[...]) + b_ref[...], 0.0).astype(bf16)

  y1e = conv1x1(xe, w1a_ref, b1a_ref)           # branch3,   even positions
  y1o = conv1x1(xo, w1a_ref, b1a_ref)           # branch3,   odd positions
  y2e = conv1x1(xe, w2a_ref, b2a_ref)           # branch7x3, even positions
  y2o = conv1x1(xo, w2a_ref, b2a_ref)           # branch7x3, odd positions

  # ------------------- branch3: conv k=3, stride=2 -------------------
  # out3[p] = y1[2p]@W0 + y1[2p+1]@W1 + y1[2p+2]@W2
  acc3 = (mm(y1e, w1b_ref[0]) + mm(y1o, w1b_ref[1])
          + shifted(mm(y1e, w1b_ref[2]), 1))
  out3 = jnp.maximum(acc3 + b1b_ref[...], 0.0)            # (R, 320) f32

  # ------- branch7x3: conv k=7, pad=3 ("same"), even/odd outputs -------
  #   y[2p]   = sum_k y2[2p-3+k] @ Wk     (even output positions)
  #   y[2p+1] = sum_k y2[2p-2+k] @ Wk     (odd  output positions)
  ze = (shifted(mm(y2o, w2b_ref[0]), -2)
        + shifted(mm(y2e, w2b_ref[1]), -1)
        + shifted(mm(y2o, w2b_ref[2]), -1)
        + mm(y2e, w2b_ref[3])
        + mm(y2o, w2b_ref[4])
        + shifted(mm(y2e, w2b_ref[5]), 1)
        + shifted(mm(y2o, w2b_ref[6]), 1))
  zo = (shifted(mm(y2e, w2b_ref[0]), -1)
        + shifted(mm(y2o, w2b_ref[1]), -1)
        + mm(y2e, w2b_ref[2])
        + mm(y2o, w2b_ref[3])
        + shifted(mm(y2e, w2b_ref[4]), 1)
        + shifted(mm(y2o, w2b_ref[5]), 1)
        + shifted(mm(y2e, w2b_ref[6]), 2))
  s7e = jnp.maximum(ze + b2b_ref[...], 0.0).astype(bf16)  # (R, 192)
  s7o = jnp.maximum(zo + b2b_ref[...], 0.0).astype(bf16)

  # final conv of branch7x3: k=3, stride=2
  acc7 = (mm(s7e, w2c_ref[0]) + mm(s7o, w2c_ref[1])
          + shifted(mm(s7e, w2c_ref[2]), 1))
  out7 = jnp.maximum(acc7 + b2c_ref[...], 0.0)            # (R, 192) f32

  # --------------- branch_pool: max_pool1d(k=3, s=2) -----------------
  xef = xe.astype(f32)
  pool = jnp.maximum(jnp.maximum(xef, xo.astype(f32)), shifted(xef, 1))

  # Fused channel concat; one lane-dense store per sample.  Row j = Lh-1 of
  # each sample is the stride-2 remainder and is dropped here.
  full = jnp.concatenate([out3, out7, pool], axis=-1)     # (R, Ct) f32
  for b in range(B):
    out_ref[b] = full[b * Lh:b * Lh + Lo]


# ---------------------------------------------------------------------------
# Wrapper: BN folding, even/odd split, pallas_call, layout back to NCL.
# ---------------------------------------------------------------------------
def _fold_bn(p):
  """Fold eval-mode BatchNorm (eps=1e-3) into conv weight/bias."""
  s = p["gamma"] / jnp.sqrt(p["var"] + 1e-3)            # (O,)
  w = p["w"] * s[:, None, None]                         # (O, I, K)
  b = p["beta"] - p["mean"] * s                         # (O,)
  w_kio = jnp.transpose(w, (2, 1, 0))                   # (K, I, O)
  return w_kio, b[None, :].astype(jnp.float32)          # (K,I,O), (1,O) f32


def inception_d_pallas(x_ncl, params, *, block_b=8):
  """x_ncl: (N, Cin, L) float32 -> (N, 320 + 192 + Cin, Lo) float32."""
  N, Cin, L = x_ncl.shape
  assert L % 2 == 0 and L >= 8, "kernel assumes an even input length >= 8"
  Lh = L // 2
  Lo = (L - 3) // 2 + 1                      # = Lh - 1
  Ct = 320 + 192 + Cin

  B = min(block_b, N)
  n_blocks = -(-N // B)
  Np = n_blocks * B

  # NCL -> NLC, split even/odd positions, fold batch into rows, cast to bf16.
  x = jnp.transpose(x_ncl, (0, 2, 1)).astype(jnp.float32)    # (N, L, Cin)
  if Np != N:
    x = jnp.concatenate([x, jnp.zeros((Np - N, L, Cin), x.dtype)], axis=0)
  x = x.reshape(Np, Lh, 2, Cin)
  xe = x[:, :, 0, :].reshape(Np * Lh, Cin).astype(jnp.bfloat16)
  xo = x[:, :, 1, :].reshape(Np * Lh, Cin).astype(jnp.bfloat16)

  w1a, b1a = _fold_bn(params["branch3_1"])    # (1,Cin,192)
  w1b, b1b = _fold_bn(params["branch3_2"])    # (3,192,320)
  w2a, b2a = _fold_bn(params["branch7x3_1"])  # (1,Cin,192)
  w2b, b2b = _fold_bn(params["branch7x3_2"])  # (7,192,192)
  w2c, b2c = _fold_bn(params["branch7x3_3"])  # (3,192,192)
  w1a, w2a = w1a[0], w2a[0]                   # (Cin, 192)
  bf = lambda a: a.astype(jnp.bfloat16)

  def wspec(*shape):
    return pl.BlockSpec(shape, lambda i: (0,) * len(shape))

  grid_spec = pltpu.PrefetchScalarGridSpec(
      num_scalar_prefetch=0,
      grid=(n_blocks,),
      in_specs=[
          pl.BlockSpec((B * Lh, Cin), lambda i: (i, 0)),   # x, even rows
          pl.BlockSpec((B * Lh, Cin), lambda i: (i, 0)),   # x, odd rows
          wspec(Cin, 192), wspec(1, 192),                  # branch3_1
          wspec(3, 192, 320), wspec(1, 320),               # branch3_2
          wspec(Cin, 192), wspec(1, 192),                  # branch7x3_1
          wspec(7, 192, 192), wspec(1, 192),               # branch7x3_2
          wspec(3, 192, 192), wspec(1, 192),               # branch7x3_3
      ],
      out_specs=pl.BlockSpec((B, Lo, Ct), lambda i: (i, 0, 0)),
  )

  out = pl.pallas_call(
      _inception_d_kernel,
      out_shape=jax.ShapeDtypeStruct((Np, Lo, Ct), jnp.float32),
      grid_spec=grid_spec,
      compiler_params=pltpu.CompilerParams(
          dimension_semantics=("parallel",)),
  )(xe, xo,
    bf(w1a), b1a, bf(w1b), b1b,
    bf(w2a), b2a, bf(w2b), b2b, bf(w2c), b2c)

  # Back to the PyTorch NCL layout, dropping any batch padding.
  return jnp.transpose(out[:N], (0, 2, 1))


# ---------------------------------------------------------------------------
# Parameter init + pure-JAX f32 reference (sanity check)
# ---------------------------------------------------------------------------
def _init_basic_conv(key, in_c, out_c, k):
  kw, kg, kb, km, kv = jax.random.split(key, 5)
  return {
      "w": 0.1 * jax.random.normal(kw, (out_c, in_c, k), jnp.float32),
      "gamma": jax.random.uniform(kg, (out_c,), jnp.float32, 0.5, 1.5),
      "beta": 0.1 * jax.random.normal(kb, (out_c,), jnp.float32),
      "mean": 0.1 * jax.random.normal(km, (out_c,), jnp.float32),
      "var": jax.random.uniform(kv, (out_c,), jnp.float32, 0.5, 1.5),
  }


def _basic_conv_ref(x, p, stride=1, pad=0):
  y = lax.conv_general_dilated(
      x, p["w"], (stride,), [(pad, pad)],
      dimension_numbers=("NCH", "OIH", "NCH"),
      precision=lax.Precision.HIGHEST)
  s = p["gamma"] / jnp.sqrt(p["var"] + 1e-3)
  y = y * s[None, :, None] + (p["beta"] - p["mean"] * s)[None, :, None]
  return jnp.maximum(y, 0.0)


def inception_d_ref(x, params):
  b3 = _basic_conv_ref(x, params["branch3_1"])
  b3 = _basic_conv_ref(b3, params["branch3_2"], stride=2)
  b7 = _basic_conv_ref(x, params["branch7x3_1"])
  b7 = _basic_conv_ref(b7, params["branch7x3_2"], pad=3)
  b7 = _basic_conv_ref(b7, params["branch7x3_3"], stride=2)
  bp = lax.reduce_window(x, -jnp.inf, lax.max, (1, 1, 3), (1, 1, 2), "VALID")
  return jnp.concatenate([b3, b7, bp], axis=1)


if __name__ == "__main__":
  N, Cin, L = 2, 16, 16

  key = jax.random.PRNGKey(0)
  kx, k1, k2, k3, k4, k5 = jax.random.split(key, 6)
  x = jax.random.normal(kx, (N, Cin, L), jnp.float32)

  params = {
      "branch3_1": _init_basic_conv(k1, Cin, 192, 1),
      "branch3_2": _init_basic_conv(k2, 192, 320, 3),
      "branch7x3_1": _init_basic_conv(k3, Cin, 192, 1),
      "branch7x3_2": _init_basic_conv(k4, 192, 192, 7),
      "branch7x3_3": _init_basic_conv(k5, 192, 192, 3),
  }

  out = jax.block_until_ready(inception_d_pallas(x, params))
  ref = jax.block_until_ready(inception_d_ref(x, params))

  assert out.shape == (N, 320 + 192 + Cin, (L - 3) // 2 + 1), out.shape
  # Kernel uses bf16 MXU operands with f32 accumulation; compare against the
  # full-f32 HIGHEST-precision reference with a scale-aware tolerance.
  err = float(jnp.max(jnp.abs(out - ref)))
  tol = 2e-2 * float(jnp.max(jnp.abs(ref))) + 2e-2
  assert err <= tol, (err, tol)

  print("KERNEL_OK")
</pallas_src>

<mosaic_0001>
module attributes {stable_mosaic.version = 11 : i64} {
  func.func @_inception_d_kernel(%arg0: i32, %arg1: memref<16x16xbf16, #tpu.memory_space<vmem>>, %arg2: memref<16x16xbf16, #tpu.memory_space<vmem>>, %arg3: memref<16x192xbf16, #tpu.memory_space<vmem>>, %arg4: memref<1x192xf32, #tpu.memory_space<vmem>>, %arg5: memref<3x192x320xbf16, #tpu.memory_space<vmem>>, %arg6: memref<1x320xf32, #tpu.memory_space<vmem>>, %arg7: memref<16x192xbf16, #tpu.memory_space<vmem>>, %arg8: memref<1x192xf32, #tpu.memory_space<vmem>>, %arg9: memref<7x192x192xbf16, #tpu.memory_space<vmem>>, %arg10: memref<1x192xf32, #tpu.memory_space<vmem>>, %arg11: memref<3x192x192xbf16, #tpu.memory_space<vmem>>, %arg12: memref<1x192xf32, #tpu.memory_space<vmem>>, %arg13: memref<2x7x528xf32, #tpu.memory_space<vmem>>) attributes {dimension_semantics = [#tpu.dimension_semantics<parallel>], iteration_bounds = array<i64: 1>, scalar_prefetch = 0 : i64, scratch_operands = 0 : i64, tpu.core_type = #tpu.core_type<tc>, window_params = [{transform_indices = @transform_0, window_bounds = array<i64: 16, 16>}, {transform_indices = @transform_1, window_bounds = array<i64: 16, 16>}, {pipeline_mode = #tpu.pipeline_mode<synchronous>, transform_indices = @transform_2, window_bounds = array<i64: 16, 192>}, {pipeline_mode = #tpu.pipeline_mode<synchronous>, transform_indices = @transform_3, window_bounds = array<i64: 1, 192>}, {pipeline_mode = #tpu.pipeline_mode<synchronous>, transform_indices = @transform_4, window_bounds = array<i64: 3, 192, 320>}, {pipeline_mode = #tpu.pipeline_mode<synchronous>, transform_indices = @transform_5, window_bounds = array<i64: 1, 320>}, {pipeline_mode = #tpu.pipeline_mode<synchronous>, transform_indices = @transform_6, window_bounds = array<i64: 16, 192>}, {pipeline_mode = #tpu.pipeline_mode<synchronous>, transform_indices = @transform_7, window_bounds = array<i64: 1, 192>}, {pipeline_mode = #tpu.pipeline_mode<synchronous>, transform_indices = @transform_8, window_bounds = array<i64: 7, 192, 192>}, {pipeline_mode = #tpu.pipeline_mode<synchronous>, transform_indices = @transform_9, window_bounds = array<i64: 1, 192>}, {pipeline_mode = #tpu.pipeline_mode<synchronous>, transform_indices = @transform_10, window_bounds = array<i64: 3, 192, 192>}, {pipeline_mode = #tpu.pipeline_mode<synchronous>, transform_indices = @transform_11, window_bounds = array<i64: 1, 192>}, {transform_indices = @transform_12, window_bounds = array<i64: 2, 7, 528>}]} {
    %c0 = arith.constant 0 : index
    %c0_0 = arith.constant 0 : index
    %0 = vector.load %arg1[%c0, %c0_0] : memref<16x16xbf16, #tpu.memory_space<vmem>>, vector<16x16xbf16>
    %c0_1 = arith.constant 0 : index
    %c0_2 = arith.constant 0 : index
    %1 = vector.load %arg2[%c0_1, %c0_2] : memref<16x16xbf16, #tpu.memory_space<vmem>>, vector<16x16xbf16>
    %2 = tpu.iota {dimensions = array<i32: 0>} : vector<16x1xi32>
    %c8_i32 = arith.constant 8 : i32
    %c0_i32 = arith.constant 0 : i32
    %3 = arith.cmpi eq, %c8_i32, %c0_i32 : i32
    %c1_i32 = arith.constant 1 : i32
    %4 = arith.select %3, %c1_i32, %c8_i32 : i32
    %5 = vector.broadcast %4 : i32 to vector<16x1xi32>
    %6 = arith.remsi %2, %5 : vector<16x1xi32>
    %c0_i32_3 = arith.constant 0 : i32
    %7 = vector.broadcast %c0_i32_3 : i32 to vector<16x1xi32>
    %8 = arith.cmpi ne, %6, %7 : vector<16x1xi32>
    %c0_i32_4 = arith.constant 0 : i32
    %9 = vector.broadcast %c0_i32_4 : i32 to vector<16x1xi32>
    %10 = arith.cmpi slt, %6, %9 : vector<16x1xi32>
    %c0_i32_5 = arith.constant 0 : i32
    %11 = arith.cmpi slt, %4, %c0_i32_5 : i32
    %12 = vector.broadcast %11 : i1 to vector<16x1xi1>
    %13 = vector.broadcast %12 : vector<16x1xi1> to vector<16x1xi1>
    %14 = arith.xori %10, %13 : vector<16x1xi1>
    %15 = arith.andi %14, %8 : vector<16x1xi1>
    %16 = vector.broadcast %4 : i32 to vector<16x1xi32>
    %17 = arith.addi %6, %16 : vector<16x1xi32>
    %18 = arith.select %15, %17, %6 : vector<16x1xi1>, vector<16x1xi32>
    %c-2_i32 = arith.constant -2 : i32
    %19 = vector.broadcast %c-2_i32 : i32 to vector<16x1xi32>
    %20 = arith.addi %18, %19 : vector<16x1xi32>
    %c0_i32_6 = arith.constant 0 : i32
    %21 = vector.broadcast %c0_i32_6 : i32 to vector<16x1xi32>
    %22 = arith.cmpi sge, %20, %21 : vector<16x1xi32>
    %c-2_i32_7 = arith.constant -2 : i32
    %23 = vector.broadcast %c-2_i32_7 : i32 to vector<16x1xi32>
    %24 = arith.addi %18, %23 : vector<16x1xi32>
    %c8_i32_8 = arith.constant 8 : i32
    %25 = vector.broadcast %c8_i32_8 : i32 to vector<16x1xi32>
    %26 = arith.cmpi slt, %24, %25 : vector<16x1xi32>
    %27 = arith.andi %22, %26 : vector<16x1xi1>
    %28 = arith.extui %27 : vector<16x1xi1> to vector<16x1xi32>
    %29 = arith.sitofp %28 : vector<16x1xi32> to vector<16x1xf32>
    %c-1_i32 = arith.constant -1 : i32
    %30 = vector.broadcast %c-1_i32 : i32 to vector<16x1xi32>
    %31 = arith.addi %18, %30 : vector<16x1xi32>
    %c0_i32_9 = arith.constant 0 : i32
    %32 = vector.broadcast %c0_i32_9 : i32 to vector<16x1xi32>
    %33 = arith.cmpi sge, %31, %32 : vector<16x1xi32>
    %c-1_i32_10 = arith.constant -1 : i32
    %34 = vector.broadcast %c-1_i32_10 : i32 to vector<16x1xi32>
    %35 = arith.addi %18, %34 : vector<16x1xi32>
    %c8_i32_11 = arith.constant 8 : i32
    %36 = vector.broadcast %c8_i32_11 : i32 to vector<16x1xi32>
    %37 = arith.cmpi slt, %35, %36 : vector<16x1xi32>
    %38 = arith.andi %33, %37 : vector<16x1xi1>
    %39 = arith.extui %38 : vector<16x1xi1> to vector<16x1xi32>
    %40 = arith.sitofp %39 : vector<16x1xi32> to vector<16x1xf32>
    %c1_i32_12 = arith.constant 1 : i32
    %41 = vector.broadcast %c1_i32_12 : i32 to vector<16x1xi32>
    %42 = arith.addi %18, %41 : vector<16x1xi32>
    %c0_i32_13 = arith.constant 0 : i32
    %43 = vector.broadcast %c0_i32_13 : i32 to vector<16x1xi32>
    %44 = arith.cmpi sge, %42, %43 : vector<16x1xi32>
    %c1_i32_14 = arith.constant 1 : i32
    %45 = vector.broadcast %c1_i32_14 : i32 to vector<16x1xi32>
    %46 = arith.addi %18, %45 : vector<16x1xi32>
    %c8_i32_15 = arith.constant 8 : i32
    %47 = vector.broadcast %c8_i32_15 : i32 to vector<16x1xi32>
    %48 = arith.cmpi slt, %46, %47 : vector<16x1xi32>
    %49 = arith.andi %44, %48 : vector<16x1xi1>
    %50 = arith.extui %49 : vector<16x1xi1> to vector<16x1xi32>
    %51 = arith.sitofp %50 : vector<16x1xi32> to vector<16x1xf32>
    %c2_i32 = arith.constant 2 : i32
    %52 = vector.broadcast %c2_i32 : i32 to vector<16x1xi32>
    %53 = arith.addi %18, %52 : vector<16x1xi32>
    %c0_i32_16 = arith.constant 0 : i32
    %54 = vector.broadcast %c0_i32_16 : i32 to vector<16x1xi32>
    %55 = arith.cmpi sge, %53, %54 : vector<16x1xi32>
    %c2_i32_17 = arith.constant 2 : i32
    %56 = vector.broadcast %c2_i32_17 : i32 to vector<16x1xi32>
    %57 = arith.addi %18, %56 : vector<16x1xi32>
    %c8_i32_18 = arith.constant 8 : i32
    %58 = vector.broadcast %c8_i32_18 : i32 to vector<16x1xi32>
    %59 = arith.cmpi slt, %57, %58 : vector<16x1xi32>
    %60 = arith.andi %55, %59 : vector<16x1xi1>
    %61 = arith.extui %60 : vector<16x1xi1> to vector<16x1xi32>
    %62 = arith.sitofp %61 : vector<16x1xi32> to vector<16x1xf32>
    %c0_19 = arith.constant 0 : index
    %c0_20 = arith.constant 0 : index
    %63 = vector.load %arg3[%c0_19, %c0_20] : memref<16x192xbf16, #tpu.memory_space<vmem>>, vector<16x192xbf16>
    %cst = arith.constant dense<0.000000e+00> : vector<16x192xf32>
    %64 = tpu.matmul %0, %63, %cst {dimension_numbers = #tpu.dot_dimension_numbers<[1], [0], [0], [1], [0, 0, 1, 1], [], []>} : vector<16x16xbf16>, vector<16x192xbf16>, vector<16x192xf32> -> vector<16x192xf32>
    %c0_21 = arith.constant 0 : index
    %c0_22 = arith.constant 0 : index
    %65 = vector.load %arg4[%c0_21, %c0_22] : memref<1x192xf32, #tpu.memory_space<vmem>>, vector<1x192xf32>
    %66 = vector.broadcast %65 : vector<1x192xf32> to vector<16x192xf32>
    %67 = arith.addf %64, %66 : vector<16x192xf32>
    %cst_23 = arith.constant 0.000000e+00 : f32
    %68 = vector.broadcast %cst_23 : f32 to vector<16x192xf32>
    %69 = arith.maximumf %67, %68 : vector<16x192xf32>
    %70 = arith.truncf %69 : vector<16x192xf32> to vector<16x192xbf16>
    %c0_24 = arith.constant 0 : index
    %c0_25 = arith.constant 0 : index
    %71 = vector.load %arg3[%c0_24, %c0_25] : memref<16x192xbf16, #tpu.memory_space<vmem>>, vector<16x192xbf16>
    %cst_26 = arith.constant dense<0.000000e+00> : vector<16x192xf32>
    %72 = tpu.matmul %1, %71, %cst_26 {dimension_numbers = #tpu.dot_dimension_numbers<[1], [0], [0], [1], [0, 0, 1, 1], [], []>} : vector<16x16xbf16>, vector<16x192xbf16>, vector<16x192xf32> -> vector<16x192xf32>
    %c0_27 = arith.constant 0 : index
    %c0_28 = arith.constant 0 : index
    %73 = vector.load %arg4[%c0_27, %c0_28] : memref<1x192xf32, #tpu.memory_space<vmem>>, vector<1x192xf32>
    %74 = vector.broadcast %73 : vector<1x192xf32> to vector<16x192xf32>
    %75 = arith.addf %72, %74 : vector<16x192xf32>
    %cst_29 = arith.constant 0.000000e+00 : f32
    %76 = vector.broadcast %cst_29 : f32 to vector<16x192xf32>
    %77 = arith.maximumf %75, %76 : vector<16x192xf32>
    %78 = arith.truncf %77 : vector<16x192xf32> to vector<16x192xbf16>
    %c0_30 = arith.constant 0 : index
    %c0_31 = arith.constant 0 : index
    %79 = vector.load %arg7[%c0_30, %c0_31] : memref<16x192xbf16, #tpu.memory_space<vmem>>, vector<16x192xbf16>
    %cst_32 = arith.constant dense<0.000000e+00> : vector<16x192xf32>
    %80 = tpu.matmul %0, %79, %cst_32 {dimension_numbers = #tpu.dot_dimension_numbers<[1], [0], [0], [1], [0, 0, 1, 1], [], []>} : vector<16x16xbf16>, vector<16x192xbf16>, vector<16x192xf32> -> vector<16x192xf32>
    %c0_33 = arith.constant 0 : index
    %c0_34 = arith.constant 0 : index
    %81 = vector.load %arg8[%c0_33, %c0_34] : memref<1x192xf32, #tpu.memory_space<vmem>>, vector<1x192xf32>
    %82 = vector.broadcast %81 : vector<1x192xf32> to vector<16x192xf32>
    %83 = arith.addf %80, %82 : vector<16x192xf32>
    %cst_35 = arith.constant 0.000000e+00 : f32
    %84 = vector.broadcast %cst_35 : f32 to vector<16x192xf32>
    %85 = arith.maximumf %83, %84 : vector<16x192xf32>
    %86 = arith.truncf %85 : vector<16x192xf32> to vector<16x192xbf16>
    %c0_36 = arith.constant 0 : index
    %c0_37 = arith.constant 0 : index
    %87 = vector.load %arg7[%c0_36, %c0_37] : memref<16x192xbf16, #tpu.memory_space<vmem>>, vector<16x192xbf16>
    %cst_38 = arith.constant dense<0.000000e+00> : vector<16x192xf32>
    %88 = tpu.matmul %1, %87, %cst_38 {dimension_numbers = #tpu.dot_dimension_numbers<[1], [0], [0], [1], [0, 0, 1, 1], [], []>} : vector<16x16xbf16>, vector<16x192xbf16>, vector<16x192xf32> -> vector<16x192xf32>
    %c0_39 = arith.constant 0 : index
    %c0_40 = arith.constant 0 : index
    %89 = vector.load %arg8[%c0_39, %c0_40] : memref<1x192xf32, #tpu.memory_space<vmem>>, vector<1x192xf32>
    %90 = vector.broadcast %89 : vector<1x192xf32> to vector<16x192xf32>
    %91 = arith.addf %88, %90 : vector<16x192xf32>
    %cst_41 = arith.constant 0.000000e+00 : f32
    %92 = vector.broadcast %cst_41 : f32 to vector<16x192xf32>
    %93 = arith.maximumf %91, %92 : vector<16x192xf32>
    %94 = arith.truncf %93 : vector<16x192xf32> to vector<16x192xbf16>
    %c0_42 = arith.constant 0 : index
    %c0_43 = arith.constant 0 : index
    %c0_44 = arith.constant 0 : index
    %95 = vector.load %arg5[%c0_42, %c0_43, %c0_44] : memref<3x192x320xbf16, #tpu.memory_space<vmem>>, vector<1x192x320xbf16>
    %96 = vector.shape_cast %95 : vector<1x192x320xbf16> to vector<192x320xbf16>
    %cst_45 = arith.constant dense<0.000000e+00> : vector<16x320xf32>
    %97 = tpu.matmul %70, %96, %cst_45 {dimension_numbers = #tpu.dot_dimension_numbers<[1], [0], [0], [1], [0, 0, 1, 1], [], []>} : vector<16x192xbf16>, vector<192x320xbf16>, vector<16x320xf32> -> vector<16x320xf32>
    %c1 = arith.constant 1 : index
    %c0_46 = arith.constant 0 : index
    %c0_47 = arith.constant 0 : index
    %98 = vector.load %arg5[%c1, %c0_46, %c0_47] : memref<3x192x320xbf16, #tpu.memory_space<vmem>>, vector<1x192x320xbf16>
    %99 = vector.shape_cast %98 : vector<1x192x320xbf16> to vector<192x320xbf16>
    %cst_48 = arith.constant dense<0.000000e+00> : vector<16x320xf32>
    %100 = tpu.matmul %78, %99, %cst_48 {dimension_numbers = #tpu.dot_dimension_numbers<[1], [0], [0], [1], [0, 0, 1, 1], [], []>} : vector<16x192xbf16>, vector<192x320xbf16>, vector<16x320xf32> -> vector<16x320xf32>
    %101 = arith.addf %97, %100 : vector<16x320xf32>
    %c2 = arith.constant 2 : index
    %c0_49 = arith.constant 0 : index
    %c0_50 = arith.constant 0 : index
    %102 = vector.load %arg5[%c2, %c0_49, %c0_50] : memref<3x192x320xbf16, #tpu.memory_space<vmem>>, vector<1x192x320xbf16>
    %103 = vector.shape_cast %102 : vector<1x192x320xbf16> to vector<192x320xbf16>
    %cst_51 = arith.constant dense<0.000000e+00> : vector<16x320xf32>
    %104 = tpu.matmul %70, %103, %cst_51 {dimension_numbers = #tpu.dot_dimension_numbers<[1], [0], [0], [1], [0, 0, 1, 1], [], []>} : vector<16x192xbf16>, vector<192x320xbf16>, vector<16x320xf32> -> vector<16x320xf32>
    %cst_52 = arith.constant 0.000000e+00 : f32
    %105 = vector.broadcast %cst_52 : f32 to vector<1x320xf32>
    %106 = vector.extract_strided_slice %104 {offsets = [1, 0], sizes = [15, 320], strides = [1, 1]} : vector<16x320xf32> to vector<15x320xf32>
    %107 = tpu.concatenate %106, %105 in 0 : vector<15x320xf32>, vector<1x320xf32> -> vector<16x320xf32>
    %108 = vector.broadcast %51 : vector<16x1xf32> to vector<16x320xf32>
    %109 = arith.mulf %107, %108 : vector<16x320xf32>
    %110 = arith.addf %101, %109 : vector<16x320xf32>
    %c0_53 = arith.constant 0 : index
    %c0_54 = arith.constant 0 : index
    %111 = vector.load %arg6[%c0_53, %c0_54] : memref<1x320xf32, #tpu.memory_space<vmem>>, vector<1x320xf32>
    %112 = vector.broadcast %111 : vector<1x320xf32> to vector<16x320xf32>
    %113 = arith.addf %110, %112 : vector<16x320xf32>
    %cst_55 = arith.constant 0.000000e+00 : f32
    %114 = vector.broadcast %cst_55 : f32 to vector<16x320xf32>
    %115 = arith.maximumf %113, %114 : vector<16x320xf32>
    %c0_56 = arith.constant 0 : index
    %c0_57 = arith.constant 0 : index
    %c0_58 = arith.constant 0 : index
    %116 = vector.load %arg9[%c0_56, %c0_57, %c0_58] : memref<7x192x192xbf16, #tpu.memory_space<vmem>>, vector<1x192x192xbf16>
    %117 = vector.shape_cast %116 : vector<1x192x192xbf16> to vector<192x192xbf16>
    %cst_59 = arith.constant dense<0.000000e+00> : vector<16x192xf32>
    %118 = tpu.matmul %94, %117, %cst_59 {dimension_numbers = #tpu.dot_dimension_numbers<[1], [0], [0], [1], [0, 0, 1, 1], [], []>} : vector<16x192xbf16>, vector<192x192xbf16>, vector<16x192xf32> -> vector<16x192xf32>
    %cst_60 = arith.constant 0.000000e+00 : f32
    %119 = vector.broadcast %cst_60 : f32 to vector<2x192xf32>
    %120 = vector.extract_strided_slice %118 {offsets = [0, 0], sizes = [14, 192], strides = [1, 1]} : vector<16x192xf32> to vector<14x192xf32>
    %121 = tpu.concatenate %119, %120 in 0 : vector<2x192xf32>, vector<14x192xf32> -> vector<16x192xf32>
    %122 = vector.broadcast %29 : vector<16x1xf32> to vector<16x192xf32>
    %123 = arith.mulf %121, %122 : vector<16x192xf32>
    %c1_61 = arith.constant 1 : index
    %c0_62 = arith.constant 0 : index
    %c0_63 = arith.constant 0 : index
    %124 = vector.load %arg9[%c1_61, %c0_62, %c0_63] : memref<7x192x192xbf16, #tpu.memory_space<vmem>>, vector<1x192x192xbf16>
    %125 = vector.shape_cast %124 : vector<1x192x192xbf16> to vector<192x192xbf16>
    %cst_64 = arith.constant dense<0.000000e+00> : vector<16x192xf32>
    %126 = tpu.matmul %86, %125, %cst_64 {dimension_numbers = #tpu.dot_dimension_numbers<[1], [0], [0], [1], [0, 0, 1, 1], [], []>} : vector<16x192xbf16>, vector<192x192xbf16>, vector<16x192xf32> -> vector<16x192xf32>
    %cst_65 = arith.constant 0.000000e+00 : f32
    %127 = vector.broadcast %cst_65 : f32 to vector<1x192xf32>
    %128 = vector.extract_strided_slice %126 {offsets = [0, 0], sizes = [15, 192], strides = [1, 1]} : vector<16x192xf32> to vector<15x192xf32>
    %129 = tpu.concatenate %127, %128 in 0 : vector<1x192xf32>, vector<15x192xf32> -> vector<16x192xf32>
    %130 = vector.broadcast %40 : vector<16x1xf32> to vector<16x192xf32>
    %131 = arith.mulf %129, %130 : vector<16x192xf32>
    %132 = arith.addf %123, %131 : vector<16x192xf32>
    %c2_66 = arith.constant 2 : index
    %c0_67 = arith.constant 0 : index
    %c0_68 = arith.constant 0 : index
    %133 = vector.load %arg9[%c2_66, %c0_67, %c0_68] : memref<7x192x192xbf16, #tpu.memory_space<vmem>>, vector<1x192x192xbf16>
    %134 = vector.shape_cast %133 : vector<1x192x192xbf16> to vector<192x192xbf16>
    %cst_69 = arith.constant dense<0.000000e+00> : vector<16x192xf32>
    %135 = tpu.matmul %94, %134, %cst_69 {dimension_numbers = #tpu.dot_dimension_numbers<[1], [0], [0], [1], [0, 0, 1, 1], [], []>} : vector<16x192xbf16>, vector<192x192xbf16>, vector<16x192xf32> -> vector<16x192xf32>
    %cst_70 = arith.constant 0.000000e+00 : f32
    %136 = vector.broadcast %cst_70 : f32 to vector<1x192xf32>
    %137 = vector.extract_strided_slice %135 {offsets = [0, 0], sizes = [15, 192], strides = [1, 1]} : vector<16x192xf32> to vector<15x192xf32>
    %138 = tpu.concatenate %136, %137 in 0 : vector<1x192xf32>, vector<15x192xf32> -> vector<16x192xf32>
    %139 = vector.broadcast %40 : vector<16x1xf32> to vector<16x192xf32>
    %140 = arith.mulf %138, %139 : vector<16x192xf32>
    %141 = arith.addf %132, %140 : vector<16x192xf32>
    %c3 = arith.constant 3 : index
    %c0_71 = arith.constant 0 : index
    %c0_72 = arith.constant 0 : index
    %142 = vector.load %arg9[%c3, %c0_71, %c0_72] : memref<7x192x192xbf16, #tpu.memory_space<vmem>>, vector<1x192x192xbf16>
    %143 = vector.shape_cast %142 : vector<1x192x192xbf16> to vector<192x192xbf16>
    %cst_73 = arith.constant dense<0.000000e+00> : vector<16x192xf32>
    %144 = tpu.matmul %86, %143, %cst_73 {dimension_numbers = #tpu.dot_dimension_numbers<[1], [0], [0], [1], [0, 0, 1, 1], [], []>} : vector<16x192xbf16>, vector<192x192xbf16>, vector<16x192xf32> -> vector<16x192xf32>
    %145 = arith.addf %141, %144 : vector<16x192xf32>
    %c4 = arith.constant 4 : index
    %c0_74 = arith.constant 0 : index
    %c0_75 = arith.constant 0 : index
    %146 = vector.load %arg9[%c4, %c0_74, %c0_75] : memref<7x192x192xbf16, #tpu.memory_space<vmem>>, vector<1x192x192xbf16>
    %147 = vector.shape_cast %146 : vector<1x192x192xbf16> to vector<192x192xbf16>
    %cst_76 = arith.constant dense<0.000000e+00> : vector<16x192xf32>
    %148 = tpu.matmul %94, %147, %cst_76 {dimension_numbers = #tpu.dot_dimension_numbers<[1], [0], [0], [1], [0, 0, 1, 1], [], []>} : vector<16x192xbf16>, vector<192x192xbf16>, vector<16x192xf32> -> vector<16x192xf32>
    %149 = arith.addf %145, %148 : vector<16x192xf32>
    %c5 = arith.constant 5 : index
    %c0_77 = arith.constant 0 : index
    %c0_78 = arith.constant 0 : index
    %150 = vector.load %arg9[%c5, %c0_77, %c0_78] : memref<7x192x192xbf16, #tpu.memory_space<vmem>>, vector<1x192x192xbf16>
    %151 = vector.shape_cast %150 : vector<1x192x192xbf16> to vector<192x192xbf16>
    %cst_79 = arith.constant dense<0.000000e+00> : vector<16x192xf32>
    %152 = tpu.matmul %86, %151, %cst_79 {dimension_numbers = #tpu.dot_dimension_numbers<[1], [0], [0], [1], [0, 0, 1, 1], [], []>} : vector<16x192xbf16>, vector<192x192xbf16>, vector<16x192xf32> -> vector<16x192xf32>
    %cst_80 = arith.constant 0.000000e+00 : f32
    %153 = vector.broadcast %cst_80 : f32 to vector<1x192xf32>
    %154 = vector.extract_strided_slice %152 {offsets = [1, 0], sizes = [15, 192], strides = [1, 1]} : vector<16x192xf32> to vector<15x192xf32>
    %155 = tpu.concatenate %154, %153 in 0 : vector<15x192xf32>, vector<1x192xf32> -> vector<16x192xf32>
    %156 = vector.broadcast %51 : vector<16x1xf32> to vector<16x192xf32>
    %157 = arith.mulf %155, %156 : vector<16x192xf32>
    %158 = arith.addf %149, %157 : vector<16x192xf32>
    %c6 = arith.constant 6 : index
    %c0_81 = arith.constant 0 : index
    %c0_82 = arith.constant 0 : index
    %159 = vector.load %arg9[%c6, %c0_81, %c0_82] : memref<7x192x192xbf16, #tpu.memory_space<vmem>>, vector<1x192x192xbf16>
    %160 = vector.shape_cast %159 : vector<1x192x192xbf16> to vector<192x192xbf16>
    %cst_83 = arith.constant dense<0.000000e+00> : vector<16x192xf32>
    %161 = tpu.matmul %94, %160, %cst_83 {dimension_numbers = #tpu.dot_dimension_numbers<[1], [0], [0], [1], [0, 0, 1, 1], [], []>} : vector<16x192xbf16>, vector<192x192xbf16>, vector<16x192xf32> -> vector<16x192xf32>
    %cst_84 = arith.constant 0.000000e+00 : f32
    %162 = vector.broadcast %cst_84 : f32 to vector<1x192xf32>
    %163 = vector.extract_strided_slice %161 {offsets = [1, 0], sizes = [15, 192], strides = [1, 1]} : vector<16x192xf32> to vector<15x192xf32>
    %164 = tpu.concatenate %163, %162 in 0 : vector<15x192xf32>, vector<1x192xf32> -> vector<16x192xf32>
    %165 = vector.broadcast %51 : vector<16x1xf32> to vector<16x192xf32>
    %166 = arith.mulf %164, %165 : vector<16x192xf32>
    %167 = arith.addf %158, %166 : vector<16x192xf32>
    %c0_85 = arith.constant 0 : index
    %c0_86 = arith.constant 0 : index
    %c0_87 = arith.constant 0 : index
    %168 = vector.load %arg9[%c0_85, %c0_86, %c0_87] : memref<7x192x192xbf16, #tpu.memory_space<vmem>>, vector<1x192x192xbf16>
    %169 = vector.shape_cast %168 : vector<1x192x192xbf16> to vector<192x192xbf16>
    %cst_88 = arith.constant dense<0.000000e+00> : vector<16x192xf32>
    %170 = tpu.matmul %86, %169, %cst_88 {dimension_numbers = #tpu.dot_dimension_numbers<[1], [0], [0], [1], [0, 0, 1, 1], [], []>} : vector<16x192xbf16>, vector<192x192xbf16>, vector<16x192xf32> -> vector<16x192xf32>
    %cst_89 = arith.constant 0.000000e+00 : f32
    %171 = vector.broadcast %cst_89 : f32 to vector<1x192xf32>
    %172 = vector.extract_strided_slice %170 {offsets = [0, 0], sizes = [15, 192], strides = [1, 1]} : vector<16x192xf32> to vector<15x192xf32>
    %173 = tpu.concatenate %171, %172 in 0 : vector<1x192xf32>, vector<15x192xf32> -> vector<16x192xf32>
    %174 = vector.broadcast %40 : vector<16x1xf32> to vector<16x192xf32>
    %175 = arith.mulf %173, %174 : vector<16x192xf32>
    %c1_90 = arith.constant 1 : index
    %c0_91 = arith.constant 0 : index
    %c0_92 = arith.constant 0 : index
    %176 = vector.load %arg9[%c1_90, %c0_91, %c0_92] : memref<7x192x192xbf16, #tpu.memory_space<vmem>>, vector<1x192x192xbf16>
    %177 = vector.shape_cast %176 : vector<1x192x192xbf16> to vector<192x192xbf16>
    %cst_93 = arith.constant dense<0.000000e+00> : vector<16x192xf32>
    %178 = tpu.matmul %94, %177, %cst_93 {dimension_numbers = #tpu.dot_dimension_numbers<[1], [0], [0], [1], [0, 0, 1, 1], [], []>} : vector<16x192xbf16>, vector<192x192xbf16>, vector<16x192xf32> -> vector<16x192xf32>
    %cst_94 = arith.constant 0.000000e+00 : f32
    %179 = vector.broadcast %cst_94 : f32 to vector<1x192xf32>
    %180 = vector.extract_strided_slice %178 {offsets = [0, 0], sizes = [15, 192], strides = [1, 1]} : vector<16x192xf32> to vector<15x192xf32>
    %181 = tpu.concatenate %179, %180 in 0 : vector<1x192xf32>, vector<15x192xf32> -> vector<16x192xf32>
    %182 = vector.broadcast %40 : vector<16x1xf32> to vector<16x192xf32>
    %183 = arith.mulf %181, %182 : vector<16x192xf32>
    %184 = arith.addf %175, %183 : vector<16x192xf32>
    %c2_95 = arith.constant 2 : index
    %c0_96 = arith.constant 0 : index
    %c0_97 = arith.constant 0 : index
    %185 = vector.load %arg9[%c2_95, %c0_96, %c0_97] : memref<7x192x192xbf16, #tpu.memory_space<vmem>>, vector<1x192x192xbf16>
    %186 = vector.shape_cast %185 : vector<1x192x192xbf16> to vector<192x192xbf16>
    %cst_98 = arith.constant dense<0.000000e+00> : vector<16x192xf32>
    %187 = tpu.matmul %86, %186, %cst_98 {dimension_numbers = #tpu.dot_dimension_numbers<[1], [0], [0], [1], [0, 0, 1, 1], [], []>} : vector<16x192xbf16>, vector<192x192xbf16>, vector<16x192xf32> -> vector<16x192xf32>
    %188 = arith.addf %184, %187 : vector<16x192xf32>
    %c3_99 = arith.constant 3 : index
    %c0_100 = arith.constant 0 : index
    %c0_101 = arith.constant 0 : index
    %189 = vector.load %arg9[%c3_99, %c0_100, %c0_101] : memref<7x192x192xbf16, #tpu.memory_space<vmem>>, vector<1x192x192xbf16>
    %190 = vector.shape_cast %189 : vector<1x192x192xbf16> to vector<192x192xbf16>
    %cst_102 = arith.constant dense<0.000000e+00> : vector<16x192xf32>
    %191 = tpu.matmul %94, %190, %cst_102 {dimension_numbers = #tpu.dot_dimension_numbers<[1], [0], [0], [1], [0, 0, 1, 1], [], []>} : vector<16x192xbf16>, vector<192x192xbf16>, vector<16x192xf32> -> vector<16x192xf32>
    %192 = arith.addf %188, %191 : vector<16x192xf32>
    %c4_103 = arith.constant 4 : index
    %c0_104 = arith.constant 0 : index
    %c0_105 = arith.constant 0 : index
    %193 = vector.load %arg9[%c4_103, %c0_104, %c0_105] : memref<7x192x192xbf16, #tpu.memory_space<vmem>>, vector<1x192x192xbf16>
    %194 = vector.shape_cast %193 : vector<1x192x192xbf16> to vector<192x192xbf16>
    %cst_106 = arith.constant dense<0.000000e+00> : vector<16x192xf32>
    %195 = tpu.matmul %86, %194, %cst_106 {dimension_numbers = #tpu.dot_dimension_numbers<[1], [0], [0], [1], [0, 0, 1, 1], [], []>} : vector<16x192xbf16>, vector<192x192xbf16>, vector<16x192xf32> -> vector<16x192xf32>
    %cst_107 = arith.constant 0.000000e+00 : f32
    %196 = vector.broadcast %cst_107 : f32 to vector<1x192xf32>
    %197 = vector.extract_strided_slice %195 {offsets = [1, 0], sizes = [15, 192], strides = [1, 1]} : vector<16x192xf32> to vector<15x192xf32>
    %198 = tpu.concatenate %197, %196 in 0 : vector<15x192xf32>, vector<1x192xf32> -> vector<16x192xf32>
    %199 = vector.broadcast %51 : vector<16x1xf32> to vector<16x192xf32>
    %200 = arith.mulf %198, %199 : vector<16x192xf32>
    %201 = arith.addf %192, %200 : vector<16x192xf32>
    %c5_108 = arith.constant 5 : index
    %c0_109 = arith.constant 0 : index
    %c0_110 = arith.constant 0 : index
    %202 = vector.load %arg9[%c5_108, %c0_109, %c0_110] : memref<7x192x192xbf16, #tpu.memory_space<vmem>>, vector<1x192x192xbf16>
    %203 = vector.shape_cast %202 : vector<1x192x192xbf16> to vector<192x192xbf16>
    %cst_111 = arith.constant dense<0.000000e+00> : vector<16x192xf32>
    %204 = tpu.matmul %94, %203, %cst_111 {dimension_numbers = #tpu.dot_dimension_numbers<[1], [0], [0], [1], [0, 0, 1, 1], [], []>} : vector<16x192xbf16>, vector<192x192xbf16>, vector<16x192xf32> -> vector<16x192xf32>
    %cst_112 = arith.constant 0.000000e+00 : f32
    %205 = vector.broadcast %cst_112 : f32 to vector<1x192xf32>
    %206 = vector.extract_strided_slice %204 {offsets = [1, 0], sizes = [15, 192], strides = [1, 1]} : vector<16x192xf32> to vector<15x192xf32>
    %207 = tpu.concatenate %206, %205 in 0 : vector<15x192xf32>, vector<1x192xf32> -> vector<16x192xf32>
    %208 = vector.broadcast %51 : vector<16x1xf32> to vector<16x192xf32>
    %209 = arith.mulf %207, %208 : vector<16x192xf32>
    %210 = arith.addf %201, %209 : vector<16x192xf32>
    %c6_113 = arith.constant 6 : index
    %c0_114 = arith.constant 0 : index
    %c0_115 = arith.constant 0 : index
    %211 = vector.load %arg9[%c6_113, %c0_114, %c0_115] : memref<7x192x192xbf16, #tpu.memory_space<vmem>>, vector<1x192x192xbf16>
    %212 = vector.shape_cast %211 : vector<1x192x192xbf16> to vector<192x192xbf16>
    %cst_116 = arith.constant dense<0.000000e+00> : vector<16x192xf32>
    %213 = tpu.matmul %86, %212, %cst_116 {dimension_numbers = #tpu.dot_dimension_numbers<[1], [0], [0], [1], [0, 0, 1, 1], [], []>} : vector<16x192xbf16>, vector<192x192xbf16>, vector<16x192xf32> -> vector<16x192xf32>
    %cst_117 = arith.constant 0.000000e+00 : f32
    %214 = vector.broadcast %cst_117 : f32 to vector<2x192xf32>
    %215 = vector.extract_strided_slice %213 {offsets = [2, 0], sizes = [14, 192], strides = [1, 1]} : vector<16x192xf32> to vector<14x192xf32>
    %216 = tpu.concatenate %215, %214 in 0 : vector<14x192xf32>, vector<2x192xf32> -> vector<16x192xf32>
    %217 = vector.broadcast %62 : vector<16x1xf32> to vector<16x192xf32>
    %218 = arith.mulf %216, %217 : vector<16x192xf32>
    %219 = arith.addf %210, %218 : vector<16x192xf32>
    %c0_118 = arith.constant 0 : index
    %c0_119 = arith.constant 0 : index
    %220 = vector.load %arg10[%c0_118, %c0_119] : memref<1x192xf32, #tpu.memory_space<vmem>>, vector<1x192xf32>
    %221 = vector.broadcast %220 : vector<1x192xf32> to vector<16x192xf32>
    %222 = arith.addf %167, %221 : vector<16x192xf32>
    %cst_120 = arith.constant 0.000000e+00 : f32
    %223 = vector.broadcast %cst_120 : f32 to vector<16x192xf32>
    %224 = arith.maximumf %222, %223 : vector<16x192xf32>
    %225 = arith.truncf %224 : vector<16x192xf32> to vector<16x192xbf16>
    %c0_121 = arith.constant 0 : index
    %c0_122 = arith.constant 0 : index
    %226 = vector.load %arg10[%c0_121, %c0_122] : memref<1x192xf32, #tpu.memory_space<vmem>>, vector<1x192xf32>
    %227 = vector.broadcast %226 : vector<1x192xf32> to vector<16x192xf32>
    %228 = arith.addf %219, %227 : vector<16x192xf32>
    %cst_123 = arith.constant 0.000000e+00 : f32
    %229 = vector.broadcast %cst_123 : f32 to vector<16x192xf32>
    %230 = arith.maximumf %228, %229 : vector<16x192xf32>
    %231 = arith.truncf %230 : vector<16x192xf32> to vector<16x192xbf16>
    %c0_124 = arith.constant 0 : index
    %c0_125 = arith.constant 0 : index
    %c0_126 = arith.constant 0 : index
    %232 = vector.load %arg11[%c0_124, %c0_125, %c0_126] : memref<3x192x192xbf16, #tpu.memory_space<vmem>>, vector<1x192x192xbf16>
    %233 = vector.shape_cast %232 : vector<1x192x192xbf16> to vector<192x192xbf16>
    %cst_127 = arith.constant dense<0.000000e+00> : vector<16x192xf32>
    %234 = tpu.matmul %225, %233, %cst_127 {dimension_numbers = #tpu.dot_dimension_numbers<[1], [0], [0], [1], [0, 0, 1, 1], [], []>} : vector<16x192xbf16>, vector<192x192xbf16>, vector<16x192xf32> -> vector<16x192xf32>
    %c1_128 = arith.constant 1 : index
    %c0_129 = arith.constant 0 : index
    %c0_130 = arith.constant 0 : index
    %235 = vector.load %arg11[%c1_128, %c0_129, %c0_130] : memref<3x192x192xbf16, #tpu.memory_space<vmem>>, vector<1x192x192xbf16>
    %236 = vector.shape_cast %235 : vector<1x192x192xbf16> to vector<192x192xbf16>
    %cst_131 = arith.constant dense<0.000000e+00> : vector<16x192xf32>
    %237 = tpu.matmul %231, %236, %cst_131 {dimension_numbers = #tpu.dot_dimension_numbers<[1], [0], [0], [1], [0, 0, 1, 1], [], []>} : vector<16x192xbf16>, vector<192x192xbf16>, vector<16x192xf32> -> vector<16x192xf32>
    %238 = arith.addf %234, %237 : vector<16x192xf32>
    %c2_132 = arith.constant 2 : index
    %c0_133 = arith.constant 0 : index
    %c0_134 = arith.constant 0 : index
    %239 = vector.load %arg11[%c2_132, %c0_133, %c0_134] : memref<3x192x192xbf16, #tpu.memory_space<vmem>>, vector<1x192x192xbf16>
    %240 = vector.shape_cast %239 : vector<1x192x192xbf16> to vector<192x192xbf16>
    %cst_135 = arith.constant dense<0.000000e+00> : vector<16x192xf32>
    %241 = tpu.matmul %225, %240, %cst_135 {dimension_numbers = #tpu.dot_dimension_numbers<[1], [0], [0], [1], [0, 0, 1, 1], [], []>} : vector<16x192xbf16>, vector<192x192xbf16>, vector<16x192xf32> -> vector<16x192xf32>
    %cst_136 = arith.constant 0.000000e+00 : f32
    %242 = vector.broadcast %cst_136 : f32 to vector<1x192xf32>
    %243 = vector.extract_strided_slice %241 {offsets = [1, 0], sizes = [15, 192], strides = [1, 1]} : vector<16x192xf32> to vector<15x192xf32>
    %244 = tpu.concatenate %243, %242 in 0 : vector<15x192xf32>, vector<1x192xf32> -> vector<16x192xf32>
    %245 = vector.broadcast %51 : vector<16x1xf32> to vector<16x192xf32>
    %246 = arith.mulf %244, %245 : vector<16x192xf32>
    %247 = arith.addf %238, %246 : vector<16x192xf32>
    %c0_137 = arith.constant 0 : index
    %c0_138 = arith.constant 0 : index
    %248 = vector.load %arg12[%c0_137, %c0_138] : memref<1x192xf32, #tpu.memory_space<vmem>>, vector<1x192xf32>
    %249 = vector.broadcast %248 : vector<1x192xf32> to vector<16x192xf32>
    %250 = arith.addf %247, %249 : vector<16x192xf32>
    %cst_139 = arith.constant 0.000000e+00 : f32
    %251 = vector.broadcast %cst_139 : f32 to vector<16x192xf32>
    %252 = arith.maximumf %250, %251 : vector<16x192xf32>
    %253 = arith.extf %0 : vector<16x16xbf16> to vector<16x16xf32>
    %254 = arith.extf %1 : vector<16x16xbf16> to vector<16x16xf32>
    %255 = arith.maximumf %253, %254 : vector<16x16xf32>
    %cst_140 = arith.constant 0.000000e+00 : f32
    %256 = vector.broadcast %cst_140 : f32 to vector<1x16xf32>
    %257 = vector.extract_strided_slice %253 {offsets = [1, 0], sizes = [15, 16], strides = [1, 1]} : vector<16x16xf32> to vector<15x16xf32>
    %258 = tpu.concatenate %257, %256 in 0 : vector<15x16xf32>, vector<1x16xf32> -> vector<16x16xf32>
    %259 = vector.broadcast %51 : vector<16x1xf32> to vector<16x16xf32>
    %260 = arith.mulf %258, %259 : vector<16x16xf32>
    %261 = arith.maximumf %255, %260 : vector<16x16xf32>
    %262 = tpu.concatenate %115, %252, %261 in 1 : vector<16x320xf32>, vector<16x192xf32>, vector<16x16xf32> -> vector<16x528xf32>
    %263 = vector.extract_strided_slice %262 {offsets = [0, 0], sizes = [7, 528], strides = [1, 1]} : vector<16x528xf32> to vector<7x528xf32>
    %c0_141 = arith.constant 0 : index
    %c0_142 = arith.constant 0 : index
    %c0_143 = arith.constant 0 : index
    %264 = vector.load %arg13[%c0_141, %c0_142, %c0_143] : memref<2x7x528xf32, #tpu.memory_space<vmem>>, vector<1x7x528xf32>
    %265 = vector.shape_cast %264 : vector<1x7x528xf32> to vector<7x528xf32>
    %266 = vector.shape_cast %263 : vector<7x528xf32> to vector<1x7x528xf32>
    tpu.vector_store %arg13[%c0_141, %c0_142, %c0_143], %266 {strides = array<i32>} : memref<2x7x528xf32, #tpu.memory_space<vmem>>, vector<1x7x528xf32>,
    %267 = vector.extract_strided_slice %262 {offsets = [8, 0], sizes = [7, 528], strides = [1, 1]} : vector<16x528xf32> to vector<7x528xf32>
    %c1_144 = arith.constant 1 : index
    %c0_145 = arith.constant 0 : index
    %c0_146 = arith.constant 0 : index
    %268 = vector.load %arg13[%c1_144, %c0_145, %c0_146] : memref<2x7x528xf32, #tpu.memory_space<vmem>>, vector<1x7x528xf32>
    %269 = vector.shape_cast %268 : vector<1x7x528xf32> to vector<7x528xf32>
    %270 = vector.shape_cast %267 : vector<7x528xf32> to vector<1x7x528xf32>
    tpu.vector_store %arg13[%c1_144, %c0_145, %c0_146], %270 {strides = array<i32>} : memref<2x7x528xf32, #tpu.memory_space<vmem>>, vector<1x7x528xf32>,
    return
  }
  func.func @transform_0(%arg0: i32) -> (i32, i32) {
    %c0_i32 = arith.constant 0 : i32
    %c0_i32_0 = arith.constant 0 : i32
    return %arg0, %c0_i32 : i32, i32
  }
  func.func @transform_1(%arg0: i32) -> (i32, i32) {
    %c0_i32 = arith.constant 0 : i32
    %c0_i32_0 = arith.constant 0 : i32
    return %arg0, %c0_i32 : i32, i32
  }
  func.func @transform_2(%arg0: i32) -> (i32, i32) {
    %c0_i32 = arith.constant 0 : i32
    %c0_i32_0 = arith.constant 0 : i32
    %c0_i32_1 = arith.constant 0 : i32
    return %c0_i32, %c0_i32_0 : i32, i32
  }
  func.func @transform_3(%arg0: i32) -> (i32, i32) {
    %c0_i32 = arith.constant 0 : i32
    %c0_i32_0 = arith.constant 0 : i32
    %c0_i32_1 = arith.constant 0 : i32
    return %c0_i32, %c0_i32_0 : i32, i32
  }
  func.func @transform_4(%arg0: i32) -> (i32, i32, i32) {
    %c0_i32 = arith.constant 0 : i32
    %c0_i32_0 = arith.constant 0 : i32
    %c0_i32_1 = arith.constant 0 : i32
    %c0_i32_2 = arith.constant 0 : i32
    return %c0_i32, %c0_i32_0, %c0_i32_1 : i32, i32, i32
  }
  func.func @transform_5(%arg0: i32) -> (i32, i32) {
    %c0_i32 = arith.constant 0 : i32
    %c0_i32_0 = arith.constant 0 : i32
    %c0_i32_1 = arith.constant 0 : i32
    return %c0_i32, %c0_i32_0 : i32, i32
  }
  func.func @transform_6(%arg0: i32) -> (i32, i32) {
    %c0_i32 = arith.constant 0 : i32
    %c0_i32_0 = arith.constant 0 : i32
    %c0_i32_1 = arith.constant 0 : i32
    return %c0_i32, %c0_i32_0 : i32, i32
  }
  func.func @transform_7(%arg0: i32) -> (i32, i32) {
    %c0_i32 = arith.constant 0 : i32
    %c0_i32_0 = arith.constant 0 : i32
    %c0_i32_1 = arith.constant 0 : i32
    return %c0_i32, %c0_i32_0 : i32, i32
  }
  func.func @transform_8(%arg0: i32) -> (i32, i32, i32) {
    %c0_i32 = arith.constant 0 : i32
    %c0_i32_0 = arith.constant 0 : i32
    %c0_i32_1 = arith.constant 0 : i32
    %c0_i32_2 = arith.constant 0 : i32
    return %c0_i32, %c0_i32_0, %c0_i32_1 : i32, i32, i32
  }
  func.func @transform_9(%arg0: i32) -> (i32, i32) {
    %c0_i32 = arith.constant 0 : i32
    %c0_i32_0 = arith.constant 0 : i32
    %c0_i32_1 = arith.constant 0 : i32
    return %c0_i32, %c0_i32_0 : i32, i32
  }
  func.func @transform_10(%arg0: i32) -> (i32, i32, i32) {
    %c0_i32 = arith.constant 0 : i32
    %c0_i32_0 = arith.constant 0 : i32
    %c0_i32_1 = arith.constant 0 : i32
    %c0_i32_2 = arith.constant 0 : i32
    return %c0_i32, %c0_i32_0, %c0_i32_1 : i32, i32, i32
  }
  func.func @transform_11(%arg0: i32) -> (i32, i32) {
    %c0_i32 = arith.constant 0 : i32
    %c0_i32_0 = arith.constant 0 : i32
    %c0_i32_1 = arith.constant 0 : i32
    return %c0_i32, %c0_i32_0 : i32, i32
  }
  func.func @transform_12(%arg0: i32) -> (i32, i32, i32) {
    %c0_i32 = arith.constant 0 : i32
    %c0_i32_0 = arith.constant 0 : i32
    %c0_i32_1 = arith.constant 0 : i32
    return %arg0, %c0_i32, %c0_i32_0 : i32, i32, i32
  }
}

</mosaic_0001>

<bundles_post_ra>
// kernel: tpu_custom_call.1
= control target key start
LH: loop header
LB: loop body
LE: loop exit
PB: predicated region body
PF: predicated region fallthrough
CT: control target
= control target key end

     0   :  { %17 = vsyncpa [#allocation3], 0  ;;  %s7712_s0 = inlined_call_operand.hbm [shape: bf16[16,16], index: 0, kind: input, shape index: {}]   ;;  %s7713_s1 = inlined_call_operand.hbm [shape: bf16[16,16], index: 1, kind: input, shape index: {}]   ;;  %s7714_s2 = inlined_call_operand.hbm [shape: bf16[16,192], index: 2, kind: input, shape index: {}]   ;;  %s7715_s3 = inlined_call_operand.hbm [shape: f32[1,192], index: 3, kind: input, shape index: {}]   ;;  %s7716_s4 = inlined_call_operand.hbm [shape: bf16[3,192,320], index: 4, kind: input, shape index: {}]   ;;  %s7717_s5 = inlined_call_operand.vmem [shape: f32[1,320], index: 5, kind: input, shape index: {}]   ;;  %s7718_s6 = inlined_call_operand.hbm [shape: bf16[16,192], index: 6, kind: input, shape index: {}]   ;;  %s7719_s7 = inlined_call_operand.vmem [shape: f32[1,192], index: 7, kind: input, shape index: {}]   ;;  %s7720_s8 = inlined_call_operand.hbm [shape: bf16[7,192,192], index: 8, kind: input, shape index: {}]   ;;  %s7721_s9 = inlined_call_operand.vmem [shape: f32[1,192], index: 9, kind: input, shape index: {}]   ;;  %s7722_s10 = inlined_call_operand.hbm [shape: bf16[3,192,192], index: 10, kind: input, shape index: {}]   ;;  %s7723_s11 = inlined_call_operand.vmem [shape: f32[1,192], index: 11, kind: input, shape index: {}]   ;;  %s7724_s12 = inlined_call_operand.vmem [shape: f32[2,7,528], index: 12, kind: output, shape index: {}]  }
   0x1   :  { %18 = vsyncpa [#allocation5], 0 }
   0x2   :  { %19 = vsyncpa [#allocation8], 0 }
   0x3   :  { %20 = vsyncpa [#allocation11], 0 }
   0x4   :  { %21 = vsyncpa [#allocation14], 0  ;;  %s39_s23 = sshll.u32 %s7713_s1, 4  ;;  %s6308_s24 = smov [#allocation4]   ;;  %s40_s23 = int_to_ptr.hbm [resolvable:$true] %s39_s23 }
   0x5   :  { %s41_s25 = sshll.u32 %s6308_s24, 4  ;;  %s66_s28 = sshll.u32 %s7715_s3, 4  ;;  %s42_s25 = int_to_ptr.vmem [resolvable:$true] %s41_s25  ;;  %s67_s28 = int_to_ptr.hbm [resolvable:$true] %s66_s28 }
   0x6   :  { %s6309_s29 = smov 64   ;;  %s6310_s30 = smov 4  }
   0x7   :  { %47 = dma.hbm_to_vmem [thread:$0]  %s40_s23, 128, %s42_s25, [#allocation5], %s6309_s29, %s6309_s29, %s6310_s30  }
   0x8   :  { %s6311_s13 = smov [#allocation7]   ;;  %s91_s16 = sshll.u32 %s7718_s6, 4  ;;  %s92_s16 = int_to_ptr.hbm [resolvable:$true] %s91_s16 }
   0x9   :  { %s68_s14 = sshll.u32 %s6311_s13, 4  ;;  %s6312_s17 = smov [#allocation10]   ;;  %s69_s14 = int_to_ptr.vmem [resolvable:$true] %s68_s14 }
   0xa   :  { %71 = dma.hbm_to_vmem [thread:$0]  %s67_s28, 32, %s69_s14, [#allocation8]  }
   0xb   :  { %s93_s18 = sshll.u32 %s6312_s17, 4  ;;  %s26_s20 = sshll.u32 %s7712_s0, 4  ;;  %s94_s18 = int_to_ptr.vmem [resolvable:$true] %s93_s18  ;;  %s27_s20 = int_to_ptr.hbm [resolvable:$true] %s26_s20 }
   0xc   :  { %s6313_s21 = smov 128   ;;  %s6314_s22 = smov 8  }
   0xd   :  { %99 = dma.hbm_to_vmem [thread:$0]  %s92_s16, 256, %s94_s18, [#allocation11], %s6313_s21, %s6313_s21, %s6314_s22  }
   0xe   :  { %s6315_s23 = smov [#allocation2]   ;;  %s52_s6 = sshll.u32 %s7714_s2, 4  ;;  %s53_s6 = int_to_ptr.hbm [resolvable:$true] %s52_s6 }
   0xf   :  { %s28_s24 = sshll.u32 %s6315_s23, 4  ;;  %s76_s28 = sshll.u32 %s7716_s4, 4  ;;  %s29_s24 = int_to_ptr.vmem [resolvable:$true] %s28_s24  ;;  %s77_s28 = int_to_ptr.hbm [resolvable:$true] %s76_s28 }
  0x10   :  { %34 = dma.hbm_to_vmem [thread:$0]  %s27_s20, 128, %s29_s24, [#allocation3], %s6309_s29, %s6309_s29, %s6310_s30  }
  0x11   :  { %s6316_s13 = smov [#allocation6]   ;;  %s6317_s15 = smov [#allocation9]  }
  0x12   :  { %s54_s14 = sshll.u32 %s6316_s13, 4  ;;  %s78_s1 = sshll.u32 %s6317_s15, 4  ;;  %s55_s14 = int_to_ptr.vmem [resolvable:$true] %s54_s14  ;;  %s79_s1 = int_to_ptr.vmem [resolvable:$true] %s78_s1 }
  0x13   :  { %60 = dma.hbm_to_vmem [thread:$0]  %s53_s6, 256, %s55_s14, [#allocation5], %s6313_s21, %s6313_s21, %s6314_s22  }
  0x14   :  { %s6318_s2 = smov 192   ;;  %s6319_s16 = smov 12  }
  0x15   :  { %84 = dma.hbm_to_vmem [thread:$0]  %s77_s28, 13824, %s79_s1, [#allocation8], %s6318_s2, %s6318_s2, %s6319_s16  }
  0x16   :  { %s106_s18 = sshll.u32 %s7720_s8, 4  ;;  %s6320_s4 = smov [#allocation12]   ;;  %s107_s18 = int_to_ptr.hbm [resolvable:$true] %s106_s18 }
  0x17   :  { %s108_s19 = sshll.u32 %s6320_s4, 4  ;;  %s121_s23 = sshll.u32 %s7722_s10, 4  ;;  %s109_s19 = int_to_ptr.vmem [resolvable:$true] %s108_s19  ;;  %s122_s23 = int_to_ptr.hbm [resolvable:$true] %s121_s23 }
  0x18   :  { %114 = dma.hbm_to_vmem [thread:$0]  %s107_s18, 21504, %s109_s19, [#allocation11], %s6313_s21, %s6313_s21, %s6314_s22  }
  0x19   :  { %s6321_s24 = smov [#allocation13]  }
  0x1a   :  { %s123_s25 = sshll.u32 %s6321_s24, 4  ;;  %s124_s25 = int_to_ptr.vmem [resolvable:$true] %s123_s25 }
  0x1b   :  { %129 = dma.hbm_to_vmem [thread:$0]  %s122_s23, 9216, %s124_s25, [#allocation14], %s6313_s21, %s6313_s21, %s6314_s22  }
  0x1c   :  { %6298 = dma.done.wait [#allocation3], 128  }
  0x1d   :  { %6299 = vsyncadd [#allocation3], 4294967168 }
  0x1e   :  { %6300 = dma.done.wait [#allocation5], 384  }
  0x1f   :  { %6301 = vsyncadd [#allocation5], 4294966912 }
  0x20   :  { %6302 = dma.done.wait [#allocation8], 13856  }
  0x21   :  { %6303 = vsyncadd [#allocation8], 4294953440 }
  0x22   :  { %6304 = dma.done.wait [#allocation11], 21760  }
  0x23   :  { %6305 = vsyncadd [#allocation11], 4294945536 }
  0x24   :  { %6306 = dma.done.wait [#allocation14], 9216  }
  0x25   :  { %6307 = vsyncadd [#allocation14], 4294958080  ;;  %v4271_v0 = vld [vmem:[#allocation6] sm:$0xf]  ;;  %v5740_v1 = vld [vmem:[#allocation6 + $0x4] sm:$0xf0] }
  0x26   :  { %v5739_v2 = vld [vmem:[#allocation6 + $0x4] sm:$0xf]  ;;  %v4272_v3 = vor.u32 %v5740_v1, %v4271_v0  ;;  %v4273_v4 = vld [vmem:[#allocation6 + $0x8] sm:$0xf0]  ;;  %v6428_v5 = vld [vmem:[#allocation4] sm:$0xff]  ;;  %vm267_vm0 = vcmask 130048  }
  0x27   :  { %v6430_v6 = vld [vmem:[#allocation2] sm:$0xff]  ;;  %v4276_v7 = vor.u32 %v5739_v2, %v4273_v4  ;;  %v5742_v9 = vld [vmem:[#allocation10 + $0x4] sm:$0xf0]  ;;  %v4289_v12 = vld [vmem:[#allocation10 + $0x8] sm:$0xf0]  ;;  %vm722_vm1 = vcmask 523264  }
  0x28   :  { %v4287_v8 = vld [vmem:[#allocation10] sm:$0xf]  ;;  %v5741_v10 = vld [vmem:[#allocation10 + $0x4] sm:$0xf]  ;;  %320 = vmatpush.bf16.msra.mxu2 %v4272_v3  ;;  %278 = vmatpush.bf16.msra.mxu0 %v4272_v3  ;;  %v4383_v13 = vld [vmem:[#allocation9 + $0x1c8] sm:$0xf] }
  0x29   :  { %v4288_v11 = vor.u32 %v5742_v9, %v4287_v8  ;;  %v5801_v14 = vld [vmem:[#allocation9 + $0x1d0] sm:$0xf0]  ;;  %334 = vmatpush.bf16.msra.mxu3 %v4276_v7  ;;  %292 = vmatpush.bf16.msra.mxu1 %v4276_v7  ;;  %v4292_v15 = vor.u32 %v5741_v10, %v4289_v12  ;;  %v4371_v17 = vld [vmem:[#allocation9 + $0x1b0] sm:$0xf]  ;;  %v5798_v18 = vld [vmem:[#allocation9 + $0x1b8] sm:$0xf0] }
  0x2a   :  { %v4384_v16 = vor.u32 %v5801_v14, %v4383_v13  ;;  %v5800_v19 = vld [vmem:[#allocation9 + $0x1cc] sm:$0xf]  ;;  %v4385_v20 = vld [vmem:[#allocation9 + $0x1d4] sm:$0xf0]  ;;  %v4431_v22 = vld [vmem:[#allocation9 + $0x228] sm:$0xf]  ;;  %v4372_v24 = vor.u32 %v5798_v18, %v4371_v17 }
  0x2b   :  { %4283 = vmatmul.msk.bf16.vlgmr.msra.gmra.mxu2 %vm267_vm0, %v6428_v5  ;;  %4277 = vmatmul.msk.bf16.vlgmr.msra.gmra.mxu0 %vm267_vm0, %v6430_v6  ;;  %v4388_v21 = vor.u32 %v5800_v19, %v4385_v20  ;;  %v5813_v23 = vld [vmem:[#allocation9 + $0x230] sm:$0xf0]  ;;  %v4359_v25 = vld [vmem:[#allocation9 + $0x198] sm:$0xf]  ;;  %v4373_v28 = vld [vmem:[#allocation9 + $0x1bc] sm:$0xf0] }
  0x2c   :  { %406 = vmatpush.bf16.msrb.mxu2 %v4288_v11  ;;  %372 = vmatpush.bf16.msrb.mxu0 %v4288_v11  ;;  %v4432_v26 = vor.u32 %v5813_v23, %v4431_v22  ;;  %v5797_v27 = vld [vmem:[#allocation9 + $0x1b4] sm:$0xf]  ;;  %v5795_v29 = vld [vmem:[#allocation9 + $0x1a0] sm:$0xf0]  ;;  %v4419_v31 = vld [vmem:[#allocation9 + $0x210] sm:$0xf] }
  0x2d   :  { %4284 = vmatmul.msk.bf16.vlgmr.msra.gmra.mxu3 %vm267_vm0, %v6428_v5  ;;  %4278 = vmatmul.msk.bf16.vlgmr.msra.gmra.mxu1 %vm267_vm0, %v6430_v6  ;;  %v4376_v30 = vor.u32 %v5797_v27, %v4373_v28  ;;  %v5810_v32 = vld [vmem:[#allocation9 + $0x218] sm:$0xf0]  ;;  %v4361_v35 = vld [vmem:[#allocation9 + $0x1a4] sm:$0xf0]  ;;  %v4407_v36 = vld [vmem:[#allocation9 + $0x1f8] sm:$0xf]  ;;  %v4360_v38 = vor.u32 %v5795_v29, %v4359_v25 }
  0x2e   :  { %420 = vmatpush.bf16.msrb.mxu3 %v4292_v15  ;;  %386 = vmatpush.bf16.msrb.mxu1 %v4292_v15  ;;  %v4420_v33 = vor.u32 %v5810_v32, %v4419_v31  ;;  %v5794_v34 = vld [vmem:[#allocation9 + $0x19c] sm:$0xf]  ;;  %v5807_v37 = vld [vmem:[#allocation9 + $0x200] sm:$0xf0]  ;;  %v4347_v39 = vld [vmem:[#allocation9 + $0x180] sm:$0xf] }
  0x2f   :  { %v5792_v40 = vld [vmem:[#allocation9 + $0x188] sm:$0xf0]  ;;  %v4364_v41 = vor.u32 %v5794_v34, %v4361_v35  ;;  %v4408_v42 = vor.u32 %v5807_v37, %v4407_v36  ;;  %v5791_v43 = vld [vmem:[#allocation9 + $0x184] sm:$0xf]  ;;  %v4349_v44 = vld [vmem:[#allocation9 + $0x18c] sm:$0xf0] }
  0x30   :  { %726 = vmatpush.bf16.msra.mxu0 %v4384_v16  ;;  %754 = vmatpush.bf16.msra.mxu2 %v4388_v21  ;;  %v5812_v45 = vld [vmem:[#allocation9 + $0x22c] sm:$0xf]  ;;  %v4433_v46 = vld [vmem:[#allocation9 + $0x234] sm:$0xf0]  ;;  %v4348_v47 = vor.u32 %v5792_v40, %v4347_v39  ;;  %v4335_v48 = vld [vmem:[#allocation9 + $0x168] sm:$0xf]  ;;  %v4352_v51 = vor.u32 %v5791_v43, %v4349_v44 }
  0x31   :  { %v5789_v49 = vld [vmem:[#allocation9 + $0x170] sm:$0xf0]  ;;  %v4436_v50 = vor.u32 %v5812_v45, %v4433_v46  ;;  %v4395_v52 = vld [vmem:[#allocation9 + $0x1e0] sm:$0xf]  ;;  %v5804_v53 = vld [vmem:[#allocation9 + $0x1e8] sm:$0xf0] }
  0x32   :  { %744 = vmatpush.bf16.msra.mxu1 %v4432_v26  ;;  %v5788_v54 = vld [vmem:[#allocation9 + $0x16c] sm:$0xf]  ;;  %v4337_v55 = vld [vmem:[#allocation9 + $0x174] sm:$0xf0]  ;;  %v4391_v56 = vld [vmem:[#allocation9 + $0x1d0] sm:$0xf]  ;;  %v4336_v60 = vor.u32 %v5789_v49, %v4335_v48  ;;  %v4396_v61 = vor.u32 %v5804_v53, %v4395_v52 }
  0x33   :  { %772 = vmatpush.bf16.msra.mxu3 %v4436_v50  ;;  %v5802_v57 = vld [vmem:[#allocation9 + $0x1d8] sm:$0xf0]  ;;  %v5809_v58 = vld [vmem:[#allocation9 + $0x214] sm:$0xf]  ;;  %v4421_v59 = vld [vmem:[#allocation9 + $0x21c] sm:$0xf0]  ;;  %v4340_v0 = vor.u32 %v5788_v54, %v4337_v55 }
  0x34   :  { %727 = vmatpush.bf16.msra.mxu0 %v4372_v24  ;;  %755 = vmatpush.bf16.msra.mxu2 %v4376_v30  ;;  %v4323_v62 = vld [vmem:[#allocation9 + $0x150] sm:$0xf]  ;;  %v5786_v63 = vld [vmem:[#allocation9 + $0x158] sm:$0xf0]  ;;  %v4392_v1 = vor.u32 %v5802_v57, %v4391_v56  ;;  %v5785_v2 = vld [vmem:[#allocation9 + $0x154] sm:$0xf]  ;;  %v4424_v4 = vor.u32 %v5809_v58, %v4421_v59 }
  0x35   :  { %v4325_v3 = vld [vmem:[#allocation9 + $0x15c] sm:$0xf0]  ;;  %v4379_v7 = vld [vmem:[#allocation9 + $0x1b8] sm:$0xf]  ;;  %v5799_v8 = vld [vmem:[#allocation9 + $0x1c0] sm:$0xf0]  ;;  %v4324_v11 = vor.u32 %v5786_v63, %v4323_v62 }
  0x36   :  { %745 = vmatpush.bf16.msra.mxu1 %v4420_v33  ;;  %v5806_v9 = vld [vmem:[#allocation9 + $0x1fc] sm:$0xf]  ;;  %v4409_v10 = vld [vmem:[#allocation9 + $0x204] sm:$0xf0]  ;;  %v4311_v12 = vld [vmem:[#allocation9 + $0x138] sm:$0xf]  ;;  %v4328_v14 = vor.u32 %v5785_v2, %v4325_v3  ;;  %v4380_v15 = vor.u32 %v5799_v8, %v4379_v7 }
  0x37   :  { %v5783_v13 = vld [vmem:[#allocation9 + $0x140] sm:$0xf0]  ;;  %v5782_v16 = vld [vmem:[#allocation9 + $0x13c] sm:$0xf]  ;;  %773 = vmatpush.bf16.msra.mxu3 %v4424_v4  ;;  %v4313_v17 = vld [vmem:[#allocation9 + $0x144] sm:$0xf0]  ;;  %v4412_v18 = vor.u32 %v5806_v9, %v4409_v10 }
  0x38   :  { %728 = vmatpush.bf16.msra.mxu0 %v4360_v38  ;;  %756 = vmatpush.bf16.msra.mxu2 %v4364_v41  ;;  %v4367_v19 = vld [vmem:[#allocation9 + $0x1a0] sm:$0xf]  ;;  %v4312_v20 = vor.u32 %v5783_v13, %v4311_v12  ;;  %v5780_v21 = vld [vmem:[#allocation9 + $0x128] sm:$0xf0]  ;;  %v4316_v22 = vor.u32 %v5782_v16, %v4313_v17  ;;  %v4530_v24 = vld [vmem:[#allocation9 + $0xa8] sm:$0xf] }
  0x39   :  { %v5765_v25 = vld [vmem:[#allocation9 + $0xb0] sm:$0xf0]  ;;  %v4518_v28 = vld [vmem:[#allocation9 + $0x90] sm:$0xf]  ;;  %v5762_v29 = vld [vmem:[#allocation9 + $0x98] sm:$0xf0] }
  0x3a   :  { %746 = vmatpush.bf16.msra.mxu1 %v4408_v42  ;;  %v4531_v27 = vor.u32 %v5765_v25, %v4530_v24  ;;  %v4519_v30 = vor.u32 %v5762_v29, %v4518_v28  ;;  %v4506_v31 = vld [vmem:[#allocation9 + $0x78] sm:$0xf]  ;;  %v5759_v32 = vld [vmem:[#allocation9 + $0x80] sm:$0xf0]  ;;  %v4301_v35 = vld [vmem:[#allocation9 + $0x12c] sm:$0xf0] }
  0x3b   :  { %4295 = vmatmul.msk.bf16.vlgmr.msrb.gmra.mxu2 %vm267_vm0, %v6428_v5  ;;  %4293 = vmatmul.msk.bf16.vlgmr.msrb.gmra.mxu0 %vm267_vm0, %v6430_v6  ;;  %v4507_v33 = vor.u32 %v5759_v32, %v4506_v31  ;;  %v5779_v34 = vld [vmem:[#allocation9 + $0x124] sm:$0xf]  ;;  %v4397_v38 = vld [vmem:[#allocation9 + $0x1ec] sm:$0xf0]  ;;  %v4355_v39 = vld [vmem:[#allocation9 + $0x188] sm:$0xf] }
  0x3c   :  { %729 = vmatpush.bf16.msra.mxu0 %v4348_v47  ;;  %757 = vmatpush.bf16.msra.mxu2 %v4352_v51  ;;  %v5803_v36 = vld [vmem:[#allocation9 + $0x1e4] sm:$0xf]  ;;  %v4304_v37 = vor.u32 %v5779_v34, %v4301_v35  ;;  %v5793_v41 = vld [vmem:[#allocation9 + $0x190] sm:$0xf0]  ;;  %v4494_v42 = vld [vmem:[#allocation9 + $0x60] sm:$0xf] }
  0x3d   :  { %4296 = vmatmul.msk.bf16.vlgmr.msrb.gmra.mxu3 %vm267_vm0, %v6428_v5  ;;  %4294 = vmatmul.msk.bf16.vlgmr.msrb.gmra.mxu1 %vm267_vm0, %v6430_v6  ;;  %v5796_v5 = vld [vmem:[#allocation9 + $0x1a8] sm:$0xf0]  ;;  %v4299_v6 = vld [vmem:[#allocation9 + $0x120] sm:$0xf]  ;;  %v4400_v40 = vor.u32 %v5803_v36, %v4397_v38  ;;  %v4356_v44 = vor.u32 %v5793_v41, %v4355_v39  ;;  %v4439_v46 = vld [vmem:[#allocation9 + $0x230] sm:$0xf] }
  0x3e   :  { %747 = vmatpush.bf16.msra.mxu1 %v4396_v61  ;;  %v4368_v23 = vor.u32 %v5796_v5, %v4367_v19  ;;  %774 = vmatpush.bf16.msra.mxu3 %v4412_v18  ;;  %v4300_v26 = vor.u32 %v5780_v21, %v4299_v6  ;;  %v5756_v43 = vld [vmem:[#allocation9 + $0x68] sm:$0xf0]  ;;  %v5814_v47 = vld [vmem:[#allocation9 + $0x238] sm:$0xf0]  ;;  %v4578_v48 = vld [vmem:[#allocation9 + $0x108] sm:$0xf] }
  0x3f   :  { %v4495_v45 = vor.u32 %v5756_v43, %v4494_v42  ;;  %v4440_v49 = vor.u32 %v5814_v47, %v4439_v46  ;;  %v5777_v50 = vld [vmem:[#allocation9 + $0x110] sm:$0xf0]  ;;  %v4343_v51 = vld [vmem:[#allocation9 + $0x170] sm:$0xf]  ;;  %v5790_v52 = vld [vmem:[#allocation9 + $0x178] sm:$0xf0] }
  0x40   :  { %730 = vmatpush.bf16.msra.mxu0 %v4336_v60  ;;  %758 = vmatpush.bf16.msra.mxu2 %v4340_v0  ;;  %v4579_v53 = vor.u32 %v5777_v50, %v4578_v48  ;;  %v4344_v54 = vor.u32 %v5790_v52, %v4343_v51  ;;  %v4482_v55 = vld [vmem:[#allocation9 + $0x48] sm:$0xf]  ;;  %v5753_v56 = vld [vmem:[#allocation9 + $0x50] sm:$0xf0]  ;;  %v4427_v57 = vld [vmem:[#allocation9 + $0x218] sm:$0xf] }
  0x41   :  { %v4483_v58 = vor.u32 %v5753_v56, %v4482_v55  ;;  %v5811_v59 = vld [vmem:[#allocation9 + $0x220] sm:$0xf0]  ;;  %v4566_v60 = vld [vmem:[#allocation9 + $0xf0] sm:$0xf]  ;;  %v5774_v61 = vld [vmem:[#allocation9 + $0xf8] sm:$0xf0] }
  0x42   :  { %782 = vmatpush.bf16.msrb.mxu1 %v4392_v1  ;;  %775 = vmatpush.bf16.msra.mxu3 %v4400_v40  ;;  %v4428_v62 = vor.u32 %v5811_v59, %v4427_v57  ;;  %v4567_v63 = vor.u32 %v5774_v61, %v4566_v60  ;;  %v4331_v0 = vld [vmem:[#allocation9 + $0x158] sm:$0xf]  ;;  %v5787_v1 = vld [vmem:[#allocation9 + $0x160] sm:$0xf0]  ;;  %v4470_v2 = vld [vmem:[#allocation9 + $0x30] sm:$0xf] }
  0x43   :  { %v4332_v3 = vor.u32 %v5787_v1, %v4331_v0  ;;  %v5750_v4 = vld [vmem:[#allocation9 + $0x38] sm:$0xf0]  ;;  %v4415_v7 = vld [vmem:[#allocation9 + $0x200] sm:$0xf]  ;;  %v5808_v8 = vld [vmem:[#allocation9 + $0x208] sm:$0xf0] }
  0x44   :  { %731 = vmatpush.bf16.msra.mxu0 %v4324_v11  ;;  %759 = vmatpush.bf16.msra.mxu2 %v4328_v14  ;;  %v4471_v9 = vor.u32 %v5750_v4, %v4470_v2  ;;  %v4416_v10 = vor.u32 %v5808_v8, %v4415_v7  ;;  %v4554_v11 = vld [vmem:[#allocation9 + $0xd8] sm:$0xf]  ;;  %v5771_v12 = vld [vmem:[#allocation9 + $0xe0] sm:$0xf0]  ;;  %v4319_v14 = vld [vmem:[#allocation9 + $0x140] sm:$0xf] }
  0x45   :  { %v4555_v13 = vor.u32 %v5771_v12, %v4554_v11  ;;  %v4458_v16 = vld [vmem:[#allocation9 + $0x18] sm:$0xf]  ;;  %v5747_v18 = vld [vmem:[#allocation9 + $0x20] sm:$0xf0]  ;;  %v4403_v19 = vld [vmem:[#allocation9 + $0x1e8] sm:$0xf] }
  0x46   :  { %783 = vmatpush.bf16.msrb.mxu1 %v4380_v15  ;;  %800 = vmatpush.bf16.msrb.mxu3 %v4440_v49  ;;  %v5784_v15 = vld [vmem:[#allocation9 + $0x148] sm:$0xf0]  ;;  %v5805_v5 = vld [vmem:[#allocation9 + $0x1f0] sm:$0xf0]  ;;  %v4542_v21 = vld [vmem:[#allocation9 + $0xc0] sm:$0xf] }
  0x47   :  { %v4320_v17 = vor.u32 %v5784_v15, %v4319_v14  ;;  %v4404_v6 = vor.u32 %v5805_v5, %v4403_v19  ;;  %v4307_v24 = vld [vmem:[#allocation9 + $0x128] sm:$0xf]  ;;  %v5781_v25 = vld [vmem:[#allocation9 + $0x130] sm:$0xf0]  ;;  %v5744_v28 = vld [vmem:[#allocation9 + $0x8] sm:$0xf0] }
  0x48   :  { %732 = vmatpush.bf16.msra.mxu0 %v4312_v20  ;;  %760 = vmatpush.bf16.msra.mxu2 %v4316_v22  ;;  %v4459_v20 = vor.u32 %v5747_v18, %v4458_v16  ;;  %v5768_v22 = vld [vmem:[#allocation9 + $0xc8] sm:$0xf0]  ;;  %v5766_v47 = vld [vmem:[#allocation9 + $0xb8] sm:$0xf0]  ;;  %v4580_v49 = vld [vmem:[#allocation9 + $0x114] sm:$0xf0] }
  0x49   :  { %v5764_v40 = vld [vmem:[#allocation9 + $0xac] sm:$0xf]  ;;  %v4586_v51 = vld [vmem:[#allocation9 + $0x110] sm:$0xf]  ;;  %v5778_v52 = vld [vmem:[#allocation9 + $0x118] sm:$0xf0] }
  0x4a   :  { %784 = vmatpush.bf16.msrb.mxu1 %v4368_v23  ;;  %801 = vmatpush.bf16.msrb.mxu3 %v4428_v62  ;;  %v4543_v23 = vor.u32 %v5768_v22, %v4542_v21  ;;  %v5776_v48 = vld [vmem:[#allocation9 + $0x10c] sm:$0xf]  ;;  %v4520_v59 = vld [vmem:[#allocation9 + $0x9c] sm:$0xf0]  ;;  %v4526_v60 = vld [vmem:[#allocation9 + $0x98] sm:$0xf] }
  0x4b   :  { %v4583_v62 = vor.u32 %v5776_v48, %v4580_v49  ;;  %v5763_v0 = vld [vmem:[#allocation9 + $0xa0] sm:$0xf0]  ;;  %v5773_v1 = vld [vmem:[#allocation9 + $0xf4] sm:$0xf]  ;;  %v4568_v2 = vld [vmem:[#allocation9 + $0xfc] sm:$0xf0] }
  0x4c   :  { %733 = vmatpush.bf16.msra.mxu0 %v4300_v26  ;;  %761 = vmatpush.bf16.msra.mxu2 %v4304_v37  ;;  %v4446_v26 = vld [vmem:[#allocation9] sm:$0xf]  ;;  %v5775_v4 = vld [vmem:[#allocation9 + $0x100] sm:$0xf0]  ;;  %v4571_v11 = vor.u32 %v5773_v1, %v4568_v2  ;;  %v5758_v12 = vld [vmem:[#allocation9 + $0x7c] sm:$0xf] }
  0x4d   :  { %v4447_v29 = vor.u32 %v5744_v28, %v4446_v26  ;;  %v5760_v18 = vld [vmem:[#allocation9 + $0x88] sm:$0xf0]  ;;  %v5770_v19 = vld [vmem:[#allocation9 + $0xdc] sm:$0xf]  ;;  %v4562_v21 = vld [vmem:[#allocation9 + $0xe0] sm:$0xf] }
  0x4e   :  { %785 = vmatpush.bf16.msrb.mxu1 %v4356_v44  ;;  %802 = vmatpush.bf16.msrb.mxu3 %v4416_v10  ;;  %v4532_v44 = vld [vmem:[#allocation9 + $0xb4] sm:$0xf0]  ;;  %v4527_v10 = vor.u32 %v5763_v0, %v4526_v60  ;;  %v5772_v22 = vld [vmem:[#allocation9 + $0xe8] sm:$0xf0]  ;;  %v4496_v26 = vld [vmem:[#allocation9 + $0x6c] sm:$0xf0] }
  0x4f   :  { %v4535_v56 = vor.u32 %v5764_v40, %v4532_v44  ;;  %v5757_v28 = vld [vmem:[#allocation9 + $0x70] sm:$0xf0]  ;;  %v4478_v60 = vld [vmem:[#allocation9 + $0x38] sm:$0xf]  ;;  %v5834_v0 = vld [vmem:[#allocation9 + $0x2d8] sm:$0xf0] }
  0x50   :  { %1005 = vmatpush.bf16.msrb.mxu0 %v4531_v27  ;;  %1023 = vmatpush.bf16.msrb.mxu2 %v4579_v53  ;;  %v4308_v27 = vor.u32 %v5781_v25, %v4307_v24  ;;  %v5833_v1 = vld [vmem:[#allocation9 + $0x2d4] sm:$0xf]  ;;  %v4667_v2 = vld [vmem:[#allocation9 + $0x2dc] sm:$0xf0]  ;;  %vm1420_vm4 = vcmask 1046528   ;;  %vm4240_vm5 = vcmask 129024  }
  0x51   :  { %vm1678_vm6 = vcmask 1041408   ;;  %vm1903_vm9 = vcmask 1040384   ;;  %vm3505_vm14 = vcmask 1045504  }
  0x52   :  { %786 = vmatpush.bf16.msrb.mxu1 %v4344_v54  ;;  %803 = vmatpush.bf16.msrb.mxu3 %v4404_v6  ;;  %v4556_v6 = vld [vmem:[#allocation9 + $0xe4] sm:$0xf0] }
  0x54   :  { %1006 = vmatpush.bf16.msrb.mxu0 %v4519_v30  ;;  %1024 = vmatpush.bf16.msrb.mxu2 %v4567_v63  ;;  %v246_v30 = vld [vmem:[#allocation7] sm:$0x3]  ;;  %v4587_v63 = vor.u32 %v5778_v52, %v4586_v51  ;;  %v5836_v51 = vld [vmem:[#allocation9 + $0x2ec] sm:$0xf]  ;;  %v4679_v52 = vld [vmem:[#allocation9 + $0x2f4] sm:$0xf0] }
  0x55   :  { %v248_v32 = vperm.slane %v246_v30, 0  ;;  %v249_v34 = vperm.slane %v246_v30, 1 }
  0x56   :  { %787 = vmatpush.bf16.msrb.mxu1 %v4332_v3  ;;  %v4574_v3 = vld [vmem:[#allocation9 + $0xf8] sm:$0xf] }
  0x57   :  { %v4575_v16 = vor.u32 %v5775_v4, %v4574_v3 }
  0x58   :  { %1007 = vmatpush.bf16.msrb.mxu0 %v4507_v33  ;;  %1025 = vmatpush.bf16.msrb.mxu2 %v4555_v13  ;;  %v4508_v13 = vld [vmem:[#allocation9 + $0x84] sm:$0xf0] }
  0x59   :  { %v4511_v24 = vor.u32 %v5758_v12, %v4508_v13  ;;  %v5748_v12 = vld [vmem:[#allocation9 + $0x28] sm:$0xf0]  ;;  %v4653_v13 = vld [vmem:[#allocation9 + $0x2b8] sm:$0xf] }
  0x5a   :  { %788 = vmatpush.bf16.msrb.mxu1 %v4320_v17  ;;  %v4514_v17 = vld [vmem:[#allocation9 + $0x80] sm:$0xf] }
  0x5b   :  { %v4515_v25 = vor.u32 %v5760_v18, %v4514_v17  ;;  %v5743_v17 = vld [vmem:[#allocation9 + $0x4] sm:$0xf]  ;;  %v4448_v18 = vld [vmem:[#allocation9 + $0xc] sm:$0xf0] }
  0x5c   :  { %1008 = vmatpush.bf16.msrb.mxu0 %v4495_v45  ;;  %1026 = vmatpush.bf16.msrb.mxu2 %v4543_v23  ;;  %v4538_v45 = vld [vmem:[#allocation9 + $0xb0] sm:$0xf]  ;;  %v5755_v23 = vld [vmem:[#allocation9 + $0x64] sm:$0xf] }
  0x5d   :  { %v4539_v57 = vor.u32 %v5766_v47, %v4538_v45  ;;  %v4490_v45 = vld [vmem:[#allocation9 + $0x50] sm:$0xf]  ;;  %v4677_v47 = vld [vmem:[#allocation9 + $0x2e8] sm:$0xf] }
  0x5e   :  { %789 = vmatpush.bf16.msrb.mxu1 %v4308_v27  ;;  %v4502_v27 = vld [vmem:[#allocation9 + $0x68] sm:$0xf] }
  0x5f   :  { %v4503_v40 = vor.u32 %v5757_v28, %v4502_v27  ;;  %v5848_v27 = vld [vmem:[#allocation9 + $0x34c] sm:$0xf]  ;;  %v4727_v28 = vld [vmem:[#allocation9 + $0x354] sm:$0xf0] }
  0x60   :  { %1009 = vmatpush.bf16.msrb.mxu0 %v4483_v58  ;;  %v5761_v58 = vld [vmem:[#allocation9 + $0x94] sm:$0xf] }
  0x64   :  { %1010 = vmatpush.bf16.msrb.mxu0 %v4471_v9  ;;  %v4523_v9 = vor.u32 %v5761_v58, %v4520_v59  ;;  %v4682_v59 = vor.u32 %v5836_v51, %v4679_v52  ;;  %v5821_v51 = vld [vmem:[#allocation9 + $0x274] sm:$0xf]  ;;  %v4619_v52 = vld [vmem:[#allocation9 + $0x27c] sm:$0xf0] }
  0x68   :  { %1011 = vmatpush.bf16.msrb.mxu0 %v4459_v20 }
  0x6c   :  { %1012 = vmatpush.bf16.msrb.mxu0 %v4447_v29 }
  0xa8   :  { %v280_v36 = vpop.f32.mrf.mxu0 }
  0xa9   :  { %v281_v14 = vadd.f32 %v280_v36, %v248_v32 }
  0xaa   :  { %v294_v37 = vpop.f32.mrf.mxu1 }
  0xab   :  { %v295_v15 = vadd.f32 %v294_v37, %v249_v34  ;;  %v299_v29 = vmax.f32 %v281_v14, 0.0  ;;  %v4550_v37 = vld [vmem:[#allocation9 + $0xc8] sm:$0xf]  ;;  %v5831_v14 = vld [vmem:[#allocation9 + $0x2c0] sm:$0xf0] }
  0xad   :  { %v300_v30 = vmax.f32 %v295_v15, 0.0  ;;  %v5830_v15 = vld [vmem:[#allocation9 + $0x2bc] sm:$0xf] }
  0xae   :  { %v322_v31 = vpop.f32.mrf.mxu2 }
  0xaf   :  { %v323_v35 = vadd.f32 %v322_v31, %v248_v32  ;;  %v4559_v31 = vor.u32 %v5770_v19, %v4556_v6  ;;  %v4454_v19 = vld [vmem:[#allocation9 + $0x8] sm:$0xf]  ;;  %v5745_v6 = vld [vmem:[#allocation9 + $0x10] sm:$0xf0] }
  0xb0   :  { %v336_v33 = vpop.f32.mrf.mxu3  ;;  %v282_v7 = vpop.f32.mrf.mxu0 }
  0xb1   :  { %v337_v38 = vadd.f32 %v336_v33, %v249_v34  ;;  %v341_v41 = vmax.f32 %v323_v35, 0.0  ;;  %v283_v5 = vadd.f32 %v282_v7, %v248_v32  ;;  %v4563_v33 = vor.u32 %v5772_v22, %v4562_v21  ;;  %v5767_v35 = vld [vmem:[#allocation9 + $0xc4] sm:$0xf]  ;;  %v5746_v7 = vld [vmem:[#allocation9 + $0x1c] sm:$0xf] }
  0xb2   :  { %v296_v8 = vpop.f32.mrf.mxu1  ;;  %v4641_v21 = vld [vmem:[#allocation9 + $0x2a0] sm:$0xf]  ;;  %v5828_v22 = vld [vmem:[#allocation9 + $0x2a8] sm:$0xf0] }
  0xb3   :  { %v342_v53 = vmax.f32 %v337_v38, 0.0  ;;  %v297_v20 = vadd.f32 %v296_v8, %v249_v34  ;;  %v5769_v38 = vld [vmem:[#allocation9 + $0xd0] sm:$0xf0]  ;;  %v4460_v8 = vld [vmem:[#allocation9 + $0x24] sm:$0xf0] }
  0xb4   :  { %v4551_v44 = vor.u32 %v5769_v38, %v4550_v37  ;;  %v5824_v37 = vld [vmem:[#allocation9 + $0x28c] sm:$0xf]  ;;  %v4631_v38 = vld [vmem:[#allocation9 + $0x294] sm:$0xf0] }
  0xb5   :  { %v302_v36 = vmax.f32 %v297_v20, 0.0 }
  0xb6   :  { %v324_v39 = vpop.f32.mrf.mxu2 }
  0xb7   :  { %v325_v42 = vadd.f32 %v324_v39, %v248_v32  ;;  %v4544_v32 = vld [vmem:[#allocation9 + $0xcc] sm:$0xf0]  ;;  %v4499_v39 = vor.u32 %v5755_v23, %v4496_v26  ;;  %v6460_v49 = vpack.c.bf16 %v302_v36, %v300_v30  ;;  %v5827_v23 = vld [vmem:[#allocation9 + $0x2a4] sm:$0xf]  ;;  %v5849_v26 = vld [vmem:[#allocation9 + $0x350] sm:$0xf0]  ;;  %v4455_v30 = vor.u32 %v5745_v6, %v4454_v19 }
  0xb8   :  { %v338_v43 = vpop.f32.mrf.mxu3  ;;  %v4730_v36 = vor.u32 %v5848_v27, %v4727_v28  ;;  %v4733_v19 = vld [vmem:[#allocation9 + $0x350] sm:$0xf] }
  0xb9   :  { %v339_v46 = vadd.f32 %v338_v43, %v249_v34  ;;  %v343_v50 = vmax.f32 %v325_v42, 0.0  ;;  %v301_v34 = vmax.f32 %v283_v5, 0.0  ;;  %v4484_v42 = vld [vmem:[#allocation9 + $0x54] sm:$0xf0]  ;;  %v4547_v43 = vor.u32 %v5767_v35, %v4544_v32  ;;  %v4629_v35 = vld [vmem:[#allocation9 + $0x288] sm:$0xf] }
  0xba   :  { %v4654_v5 = vor.u32 %v5831_v14, %v4653_v13  ;;  %v5825_v32 = vld [vmem:[#allocation9 + $0x290] sm:$0xf0] }
  0xbb   :  { %v344_v54 = vmax.f32 %v339_v46, 0.0  ;;  %v6448_v55 = vpack.c.bf16 %v343_v50, %v341_v41  ;;  %v5752_v41 = vld [vmem:[#allocation9 + $0x4c] sm:$0xf]  ;;  %v5754_v46 = vld [vmem:[#allocation9 + $0x58] sm:$0xf0]  ;;  %v6458_v48 = vpack.c.bf16 %v301_v34, %v299_v29  ;;  %v4451_v29 = vor.u32 %v5743_v17, %v4448_v18 }
  0xbc   :  { %v5837_v50 = vld [vmem:[#allocation9 + $0x2f0] sm:$0xf0]  ;;  %v4595_v18 = vld [vmem:[#allocation9 + $0x24c] sm:$0xf0] }
  0xbd   :  { %v6450_v61 = vpack.c.bf16 %v344_v54, %v342_v53  ;;  %734 = vmatmul.bf16.vlgmr.msra.gmra.mxu0 %v6448_v55  ;;  %762 = vmatmul.bf16.vlgmr.msra.gmra.mxu2 %v6448_v55  ;;  %v4487_v53 = vor.u32 %v5752_v41, %v4484_v42  ;;  %v4491_v54 = vor.u32 %v5754_v46, %v4490_v45  ;;  %v5845_v41 = vld [vmem:[#allocation9 + $0x334] sm:$0xf]  ;;  %v4715_v42 = vld [vmem:[#allocation9 + $0x33c] sm:$0xf0]  ;;  %v4617_v45 = vld [vmem:[#allocation9 + $0x270] sm:$0xf] }
  0xbe   :  { %1061 = vmatpush.bf16.msra.mxu2 %v4539_v57  ;;  %1079 = vmatpush.bf16.msra.mxu0 %v4587_v63  ;;  %v4472_v57 = vld [vmem:[#allocation9 + $0x3c] sm:$0xf0]  ;;  %v4678_v58 = vor.u32 %v5837_v50, %v4677_v47  ;;  %v4665_v63 = vld [vmem:[#allocation9 + $0x2d0] sm:$0xf]  ;;  %v5822_v46 = vld [vmem:[#allocation9 + $0x278] sm:$0xf0]  ;;  %v4718_v50 = vor.u32 %v5845_v41, %v4715_v42 }
  0xbf   :  { %4441 = vmatmul.msk.bf16.vlgmr.msra.gmra.mxu1 %vm722_vm1, %v6450_v61  ;;  %4442 = vmatmul.msk.bf16.vlgmr.msra.gmra.mxu3 %vm722_vm1, %v6450_v61  ;;  %v5862_v41 = vld [vmem:[#allocation12 + $0x54] sm:$0xf0] }
  0xc0   :  { %1033 = vmatpush.bf16.msra.mxu3 %v4535_v56  ;;  %1051 = vmatpush.bf16.msra.mxu1 %v4583_v62  ;;  %v5749_v56 = vld [vmem:[#allocation9 + $0x34] sm:$0xf]  ;;  %v5751_v62 = vld [vmem:[#allocation9 + $0x40] sm:$0xf0]  ;;  %v6476_v27 = vpop.f32.mrf.mxu3 }
  0xc1   :  { %v4475_v3 = vor.u32 %v5749_v56, %v4472_v57  ;;  %v4479_v4 = vor.u32 %v5751_v62, %v4478_v60  ;;  %v5842_v56 = vld [vmem:[#allocation9 + $0x31c] sm:$0xf]  ;;  %v4703_v57 = vld [vmem:[#allocation9 + $0x324] sm:$0xf0]  ;;  %v4605_v60 = vld [vmem:[#allocation9 + $0x258] sm:$0xf] }
  0xc2   :  { %1062 = vmatpush.bf16.msra.mxu2 %v4527_v10  ;;  %1080 = vmatpush.bf16.msra.mxu0 %v4575_v16  ;;  %v4670_v10 = vor.u32 %v5833_v1, %v4667_v2  ;;  %v4655_v16 = vld [vmem:[#allocation9 + $0x2c4] sm:$0xf0]  ;;  %v5819_v62 = vld [vmem:[#allocation9 + $0x260] sm:$0xf0]  ;;  %v4706_v1 = vor.u32 %v5842_v56, %v4703_v57  ;;  %v5829_v56 = vld [vmem:[#allocation9 + $0x2b0] sm:$0xf0] }
  0xc3   :  { %v4658_v20 = vor.u32 %v5830_v15, %v4655_v16  ;;  %v4607_v2 = vld [vmem:[#allocation9 + $0x264] sm:$0xf0]  ;;  %v4606_v13 = vor.u32 %v5819_v62, %v4605_v60  ;;  %v4593_v15 = vld [vmem:[#allocation9 + $0x240] sm:$0xf]  ;;  %v5816_v16 = vld [vmem:[#allocation9 + $0x248] sm:$0xf0] }
  0xc4   :  { %1034 = vmatpush.bf16.msra.mxu3 %v4523_v9  ;;  %1052 = vmatpush.bf16.msra.mxu1 %v4571_v11  ;;  %v4666_v9 = vor.u32 %v5834_v0, %v4665_v63  ;;  %v4466_v11 = vld [vmem:[#allocation9 + $0x20] sm:$0xf]  ;;  %v5818_v63 = vld [vmem:[#allocation9 + $0x25c] sm:$0xf]  ;;  %v4594_v28 = vor.u32 %v5816_v16, %v4593_v15  ;;  %v4772_v57 = vld [vmem:[#allocation12 + $0x40] sm:$0xf] }
  0xc5   :  { %v4610_v14 = vor.u32 %v5818_v63, %v4607_v2  ;;  %v4697_v63 = vld [vmem:[#allocation9 + $0x308] sm:$0xf]  ;;  %v4894_v15 = vld [vmem:[#allocation12 + $0x130] sm:$0xf] }
  0xc6   :  { %1063 = vmatpush.bf16.msra.mxu2 %v4515_v25  ;;  %1081 = vmatpush.bf16.msra.mxu0 %v4563_v33  ;;  %v4725_v25 = vld [vmem:[#allocation9 + $0x348] sm:$0xf] }
  0xc7   :  { %v4726_v34 = vor.u32 %v5849_v26, %v4725_v25  ;;  %v4788_v25 = vld [vmem:[#allocation12 + $0x60] sm:$0xf]  ;;  %v5864_v26 = vld [vmem:[#allocation12 + $0x64] sm:$0xf0]  ;;  %v5890_v16 = vld [vmem:[#allocation12 + $0x134] sm:$0xf0] }
  0xc8   :  { %1035 = vmatpush.bf16.msra.mxu3 %v4511_v24  ;;  %1053 = vmatpush.bf16.msra.mxu1 %v4559_v31  ;;  %v4643_v24 = vld [vmem:[#allocation9 + $0x2ac] sm:$0xf0]  ;;  %v4642_v31 = vor.u32 %v5828_v22, %v4641_v21  ;;  %v4828_v21 = vld [vmem:[#allocation12 + $0xb0] sm:$0xf]  ;;  %v5874_v22 = vld [vmem:[#allocation12 + $0xb4] sm:$0xf0]  ;;  %v424_v2 = vpop.f32.mrf.mxu3 }
  0xc9   :  { %v4646_v33 = vor.u32 %v5827_v23, %v4643_v24  ;;  %v4673_v23 = vld [vmem:[#allocation9 + $0x2d8] sm:$0xf]  ;;  %v5835_v24 = vld [vmem:[#allocation9 + $0x2e0] sm:$0xf0] }
  0xca   :  { %1064 = vmatpush.bf16.msra.mxu2 %v4503_v40  ;;  %1082 = vmatpush.bf16.msra.mxu0 %v4551_v44  ;;  %v5846_v40 = vld [vmem:[#allocation9 + $0x338] sm:$0xf0]  ;;  %v4634_v44 = vor.u32 %v5824_v37, %v4631_v38  ;;  %v5872_v37 = vld [vmem:[#allocation12 + $0xa4] sm:$0xf0]  ;;  %v4661_v38 = vld [vmem:[#allocation9 + $0x2c0] sm:$0xf] }
  0xcc   :  { %1036 = vmatpush.bf16.msra.mxu3 %v4499_v39  ;;  %1054 = vmatpush.bf16.msra.mxu1 %v4547_v43  ;;  %v4713_v39 = vld [vmem:[#allocation9 + $0x330] sm:$0xf]  ;;  %v4630_v43 = vor.u32 %v5825_v32, %v4629_v35  ;;  %v5847_v35 = vld [vmem:[#allocation9 + $0x340] sm:$0xf0]  ;;  %v4674_v32 = vor.u32 %v5835_v24, %v4673_v23  ;;  %v6521_v24 = vor.u32 %v5890_v16, %v4894_v15 }
  0xcd   :  { %1013 = vmatmul.bf16.vlgmr.msrb.gmra.mxu0 %v6458_v48  ;;  %4588 = vmatmul.msk.bf16.vlgmr.msrb.gmra.mxu2 %vm722_vm1, %v6460_v49  ;;  %v4714_v47 = vor.u32 %v5846_v40, %v4713_v39  ;;  %v5832_v39 = vld [vmem:[#allocation9 + $0x2c8] sm:$0xf0]  ;;  %v4780_v40 = vld [vmem:[#allocation12 + $0x50] sm:$0xf] }
  0xce   :  { %1065 = vmatpush.bf16.msra.mxu2 %v4491_v54  ;;  %1358 = vmatpush.bf16.msrb.mxu0 %v4682_v59  ;;  %v5843_v54 = vld [vmem:[#allocation9 + $0x320] sm:$0xf0]  ;;  %v4622_v59 = vor.u32 %v5821_v51, %v4619_v52  ;;  %v6492_v51 = vor.u32 %v5862_v41, %v4780_v40  ;;  %v4812_v52 = vld [vmem:[#allocation12 + $0x90] sm:$0xf]  ;;  %7863 = vst [vmem:[#allocation22_spill] sm:$0xff] %v6521_v24 }
  0xcf   :  { %790 = vmatmul.bf16.vlgmr.msrb.gmra.mxu1 %v6448_v55  ;;  %4443 = vmatmul.msk.bf16.vlgmr.msrb.gmra.mxu3 %vm722_vm1, %v6450_v61  ;;  %v4463_v55 = vor.u32 %v5746_v7, %v4460_v8  ;;  %v4467_v61 = vor.u32 %v5748_v12, %v4466_v11  ;;  %v5839_v7 = vld [vmem:[#allocation9 + $0x304] sm:$0xf]  ;;  %v4691_v8 = vld [vmem:[#allocation9 + $0x30c] sm:$0xf0]  ;;  %v4796_v11 = vld [vmem:[#allocation12 + $0x70] sm:$0xf] }
  0xd0   :  { %1037 = vmatpush.bf16.msra.mxu3 %v4487_v53  ;;  %1330 = vmatpush.bf16.msrb.mxu1 %v4678_v58  ;;  %v4701_v53 = vld [vmem:[#allocation9 + $0x318] sm:$0xf]  ;;  %v4618_v58 = vor.u32 %v5822_v46, %v4617_v45  ;;  %v5866_v12 = vld [vmem:[#allocation12 + $0x74] sm:$0xf0]  ;;  %v4694_v17 = vor.u32 %v5839_v7, %v4691_v8  ;;  %v5844_v45 = vld [vmem:[#allocation9 + $0x328] sm:$0xf0] }
  0xd1   :  { %v4702_v0 = vor.u32 %v5843_v54, %v4701_v53  ;;  %v6474_v6 = vor.u32 %v5866_v12, %v4796_v11  ;;  %v349_v46 = vld [vmem:[%s7719_s7] sm:$0x3]  ;;  %v5870_v53 = vld [vmem:[#allocation12 + $0x94] sm:$0xf0]  ;;  %v5868_v7 = vld [vmem:[#allocation12 + $0x84] sm:$0xf0] }
  0xd2   :  { %1066 = vmatpush.bf16.msra.mxu2 %v4479_v4  ;;  %1359 = vmatpush.bf16.msrb.mxu0 %v4670_v10  ;;  %v5840_v4 = vld [vmem:[#allocation9 + $0x308] sm:$0xf0]  ;;  %v5838_v10 = vld [vmem:[#allocation9 + $0x2f8] sm:$0xf0]  ;;  %v4649_v54 = vld [vmem:[#allocation9 + $0x2a8] sm:$0xf]  ;;  %v6503_v62 = vor.u32 %v5870_v53, %v4812_v52 }
  0xd3   :  { %v4637_v8 = vld [vmem:[#allocation9 + $0x290] sm:$0xf]  ;;  %v5858_v11 = vld [vmem:[#allocation12 + $0x34] sm:$0xf0]  ;;  %v5865_v12 = vld [vmem:[#allocation12 + $0x74] sm:$0xf] }
  0xd4   :  { %1038 = vmatpush.bf16.msra.mxu3 %v4475_v3  ;;  %1331 = vmatpush.bf16.msrb.mxu1 %v4666_v9  ;;  %v4689_v3 = vld [vmem:[#allocation9 + $0x300] sm:$0xf]  ;;  %v4685_v9 = vld [vmem:[#allocation9 + $0x2f0] sm:$0xf]  ;;  %v5820_v40 = vld [vmem:[#allocation9 + $0x268] sm:$0xf0] }
  0xd5   :  { %v4878_v52 = vld [vmem:[#allocation12 + $0x110] sm:$0xf]  ;;  %v5886_v53 = vld [vmem:[#allocation12 + $0x114] sm:$0xf0] }
  0xd6   :  { %1067 = vmatpush.bf16.msra.mxu2 %v4467_v61  ;;  %1360 = vmatpush.bf16.msrb.mxu0 %v4658_v20  ;;  %v4690_v61 = vor.u32 %v5840_v4, %v4689_v3  ;;  %v4686_v20 = vor.u32 %v5838_v10, %v4685_v9  ;;  %v4650_v3 = vor.u32 %v5829_v56, %v4649_v54  ;;  %v5826_v9 = vld [vmem:[#allocation9 + $0x298] sm:$0xf0]  ;;  %v4764_v10 = vld [vmem:[#allocation12 + $0x30] sm:$0xf]  ;;  %v4601_v54 = vld [vmem:[#allocation9 + $0x248] sm:$0xf] }
  0xd8   :  { %1039 = vmatpush.bf16.msra.mxu3 %v4463_v55  ;;  %1332 = vmatpush.bf16.msrb.mxu1 %v4654_v5  ;;  %v5815_v55 = vld [vmem:[#allocation9 + $0x244] sm:$0xf]  ;;  %v5850_v5 = vld [vmem:[#allocation9 + $0x358] sm:$0xf0] }
  0xda   :  { %1068 = vmatpush.bf16.msra.mxu2 %v4455_v30  ;;  %1361 = vmatpush.bf16.msrb.mxu0 %v4646_v33  ;;  %v4734_v30 = vor.u32 %v5850_v5, %v4733_v19  ;;  %v4721_v33 = vld [vmem:[#allocation9 + $0x338] sm:$0xf]  ;;  %v4638_v19 = vor.u32 %v5826_v9, %v4637_v8  ;;  %v6517_v5 = vor.u32 %v5858_v11, %v4764_v10  ;;  %v4774_v8 = vld [vmem:[#allocation12 + $0x48] sm:$0xf0]  ;;  %v4870_v9 = vld [vmem:[#allocation12 + $0x100] sm:$0xf] }
  0xdb   :  { %v4722_v42 = vor.u32 %v5847_v35, %v4721_v33  ;;  %v5888_v33 = vld [vmem:[#allocation12 + $0x124] sm:$0xf0]  ;;  %v5873_v11 = vld [vmem:[#allocation12 + $0xb4] sm:$0xf] }
  0xdc   :  { %1040 = vmatpush.bf16.msra.mxu3 %v4451_v29  ;;  %1333 = vmatpush.bf16.msrb.mxu1 %v4642_v31  ;;  %v4598_v29 = vor.u32 %v5815_v55, %v4595_v18  ;;  %v6478_v31 = vor.u32 %v5874_v22, %v4828_v21  ;;  %v6514_v18 = vperm.slane %v349_v46, 0  ;;  %v5823_v21 = vld [vmem:[#allocation9 + $0x280] sm:$0xf0]  ;;  %v4756_v22 = vld [vmem:[#allocation12 + $0x20] sm:$0xf] }
  0xdd   :  { %1069 = vmatmul.bf16.vlgmr.msra.gmra.mxu2 %v6458_v48  ;;  %4590 = vmatmul.msk.bf16.vlgmr.msra.gmra.mxu0 %vm722_vm1, %v6460_v49  ;;  %v5884_v10 = vld [vmem:[#allocation12 + $0x104] sm:$0xf0] }
  0xde   :  { %1376 = vmatpush.bf16.msrb.mxu2 %v4730_v36  ;;  %1362 = vmatpush.bf16.msrb.mxu0 %v4634_v44  ;;  %v4820_v36 = vld [vmem:[#allocation12 + $0xa0] sm:$0xf]  ;;  %v4709_v44 = vld [vmem:[#allocation9 + $0x320] sm:$0xf] }
  0xdf   :  { %1041 = vmatmul.bf16.vlgmr.msra.gmra.mxu3 %v6458_v48  ;;  %4589 = vmatmul.msk.bf16.vlgmr.msra.gmra.mxu1 %vm722_vm1, %v6460_v49  ;;  %v4710_v60 = vor.u32 %v5844_v45, %v4709_v44  ;;  %v4748_v44 = vld [vmem:[#allocation12 + $0x10] sm:$0xf]  ;;  %v5854_v45 = vld [vmem:[#allocation12 + $0x14] sm:$0xf0] }
  0xe0   :  { %1348 = vmatpush.bf16.msrb.mxu3 %v4726_v34  ;;  %1334 = vmatpush.bf16.msrb.mxu1 %v4630_v43  ;;  %v6481_v34 = vor.u32 %v5864_v26, %v4788_v25  ;;  %v6484_v43 = vor.u32 %v5872_v37, %v4820_v36  ;;  %v5856_v25 = vld [vmem:[#allocation12 + $0x24] sm:$0xf0]  ;;  %v5863_v26 = vld [vmem:[#allocation12 + $0x64] sm:$0xf] }
  0xe1   :  { %v6527_v37 = vor.u32 %v5856_v25, %v4756_v22 }
  0xe2   :  { %1377 = vmatpush.bf16.msrb.mxu2 %v4718_v50  ;;  %1363 = vmatpush.bf16.msrb.mxu0 %v4622_v59  ;;  %v4662_v50 = vor.u32 %v5832_v39, %v4661_v38  ;;  %v6500_v59 = vperm.slane %v349_v46, 1  ;;  %v4613_v39 = vld [vmem:[#allocation9 + $0x260] sm:$0xf]  ;;  %v5861_v46 = vld [vmem:[#allocation12 + $0x54] sm:$0xf] }
  0xe4   :  { %1349 = vmatpush.bf16.msrb.mxu3 %v4714_v47  ;;  %1335 = vmatpush.bf16.msrb.mxu1 %v4618_v58  ;;  %v6489_v47 = vpop.f32.mrf.mxu2  ;;  %v5860_v58 = vld [vmem:[#allocation12 + $0x44] sm:$0xf0]  ;;  %v425_v55 = vadd.f32 %v424_v2, %v6500_v59  ;;  %v6545_v2 = vor.u32 %v5886_v53, %v4878_v52  ;;  %v5869_v53 = vld [vmem:[#allocation12 + $0x94] sm:$0xf] }
  0xe5   :  { %v6506_v4 = vor.u32 %v5860_v58, %v4772_v57  ;;  %v4614_v58 = vor.u32 %v5820_v40, %v4613_v39  ;;  %v5855_v40 = vld [vmem:[#allocation12 + $0x24] sm:$0xf]  ;;  %v5880_v52 = vld [vmem:[#allocation12 + $0xe4] sm:$0xf0] }
  0xe6   :  { %1378 = vmatpush.bf16.msrb.mxu2 %v4706_v1  ;;  %1364 = vmatpush.bf16.msrb.mxu0 %v4610_v14  ;;  %v4804_v1 = vld [vmem:[#allocation12 + $0x80] sm:$0xf]  ;;  %v4798_v14 = vld [vmem:[#allocation12 + $0x78] sm:$0xf0]  ;;  %v430_v35 = vmax.f32 %v425_v55, 0.0  ;;  %7867 = vst [vmem:[#allocation26_spill] sm:$0xff] %v6545_v2  ;;  %v374_v55 = vpop.f32.mrf.mxu0 }
  0xe7   :  { %v6519_v23 = vor.u32 %v5865_v12, %v4798_v14  ;;  %v4830_v12 = vld [vmem:[#allocation12 + $0xb8] sm:$0xf0]  ;;  %v5898_v14 = vld [vmem:[#allocation12 + $0x174] sm:$0xf0] }
  0xe8   :  { %1350 = vmatpush.bf16.msrb.mxu3 %v4702_v0  ;;  %1336 = vmatpush.bf16.msrb.mxu1 %v4606_v13  ;;  %v5841_v0 = vld [vmem:[#allocation9 + $0x310] sm:$0xf0]  ;;  %v423_v13 = vadd.f32 %v6476_v27, %v6500_v59  ;;  %v4790_v27 = vld [vmem:[#allocation12 + $0x68] sm:$0xf0]  ;;  %v6560_v22 = vor.u32 %v5873_v11, %v4830_v12 }
  0xe9   :  { %7862 = vst [vmem:[#allocation21_spill] sm:$0xff] %v6519_v23  ;;  %v6532_v41 = vor.u32 %v5863_v26, %v4790_v27  ;;  %v4862_v26 = vld [vmem:[#allocation12 + $0xf0] sm:$0xf]  ;;  %v5882_v27 = vld [vmem:[#allocation12 + $0xf4] sm:$0xf0] }
  0xea   :  { %1379 = vmatpush.bf16.msrb.mxu2 %v4694_v17  ;;  %1365 = vmatpush.bf16.msrb.mxu0 %v4598_v29  ;;  %v6512_v17 = vor.u32 %v5868_v7, %v4804_v1  ;;  %v428_v29 = vmax.f32 %v423_v13, 0.0  ;;  %v5859_v7 = vld [vmem:[#allocation12 + $0x44] sm:$0xf]  ;;  %v4926_v13 = vld [vmem:[#allocation12 + $0x170] sm:$0xf]  ;;  %7871 = vst [vmem:[#allocation30_spill] sm:$0xff] %v6560_v22  ;;  %v6577_v39 = vor.u32 %v5882_v27, %v4862_v26 }
  0xeb   :  { %7864 = vst [vmem:[#allocation23_spill] sm:$0xff] %v6532_v41  ;;  %v6562_v25 = vor.u32 %v5898_v14, %v4926_v13  ;;  %v5878_v13 = vld [vmem:[#allocation12 + $0xd4] sm:$0xf0]  ;;  %v5867_v14 = vld [vmem:[#allocation12 + $0x84] sm:$0xf] }
  0xec   :  { %1351 = vmatpush.bf16.msrb.mxu3 %v4690_v61  ;;  %1337 = vmatpush.bf16.msrb.mxu1 %v4594_v28  ;;  %v4698_v61 = vor.u32 %v5841_v0, %v4697_v63  ;;  %7861 = vst [vmem:[#allocation20_spill] sm:$0xff] %v6512_v17  ;;  %v410_v28 = vpop.f32.mrf.mxu2  ;;  %v5817_v63 = vld [vmem:[#allocation9 + $0x250] sm:$0xf0]  ;;  %v4740_v0 = vld [vmem:[#allocation12] sm:$0xf] }
  0xed   :  { %1366 = vmatmul.bf16.vlgmr.msrb.gmra.mxu0 %v6458_v48  ;;  %4736 = vmatmul.msk.bf16.vlgmr.msrb.gmra.mxu2 %vm722_vm1, %v6460_v49  ;;  %v411_v38 = vadd.f32 %v410_v28, %v6514_v18  ;;  %v4602_v15 = vor.u32 %v5817_v63, %v4601_v54  ;;  %7872 = vst [vmem:[#allocation31_spill] sm:$0xff] %v6562_v25  ;;  %v5871_v28 = vld [vmem:[#allocation12 + $0xa4] sm:$0xf]  ;;  %v4814_v54 = vld [vmem:[#allocation12 + $0x98] sm:$0xf0] }
  0xee   :  { %1618 = vmatpush.bf16.msra.mxu2 %v6474_v6  ;;  %1636 = vmatpush.bf16.msra.mxu0 %v6478_v31  ;;  %7874 = vst [vmem:[#allocation33_spill] sm:$0xff] %v6577_v39  ;;  %v376_v11 = vpop.f32.mrf.mxu0  ;;  %v4896_v26 = vld [vmem:[#allocation12 + $0x138] sm:$0xf0]  ;;  %v4992_v27 = vld [vmem:[#allocation12 + $0x1f0] sm:$0xf] }
  0xef   :  { %1338 = vmatmul.bf16.vlgmr.msrb.gmra.mxu1 %v6458_v48  ;;  %4735 = vmatmul.msk.bf16.vlgmr.msrb.gmra.mxu3 %vm722_vm1, %v6460_v49  ;;  %v429_v57 = vmax.f32 %v411_v38, 0.0 }
  0xf0   :  { %1386 = vmatpush.bf16.msra.mxu3 %v4686_v20  ;;  %1404 = vmatpush.bf16.msra.mxu1 %v4734_v30  ;;  %v4625_v20 = vld [vmem:[#allocation9 + $0x278] sm:$0xf]  ;;  %v4886_v30 = vld [vmem:[#allocation12 + $0x120] sm:$0xf] }
  0xf1   :  { %v4626_v36 = vor.u32 %v5823_v21, %v4625_v20  ;;  %v5857_v20 = vld [vmem:[#allocation12 + $0x34] sm:$0xf]  ;;  %v4766_v21 = vld [vmem:[#allocation12 + $0x38] sm:$0xf0] }
  0xf2   :  { %1619 = vmatpush.bf16.msra.mxu2 %v6481_v34  ;;  %1637 = vmatpush.bf16.msra.mxu0 %v6484_v43  ;;  %v6575_v38 = vor.u32 %v5857_v20, %v4766_v21  ;;  %v5889_v20 = vld [vmem:[#allocation12 + $0x134] sm:$0xf] }
  0xf4   :  { %1387 = vmatpush.bf16.msra.mxu3 %v4674_v32  ;;  %1405 = vmatpush.bf16.msra.mxu1 %v4722_v42  ;;  %v409_v32 = vadd.f32 %v6489_v47, %v6514_v18  ;;  %v6534_v42 = vor.u32 %v5888_v33, %v4886_v30  ;;  %v6536_v47 = vpack.c.bf16 %v430_v35, %v428_v29  ;;  %v4822_v30 = vld [vmem:[#allocation12 + $0xa8] sm:$0xf0]  ;;  %v4918_v33 = vld [vmem:[#allocation12 + $0x160] sm:$0xf]  ;;  %v5896_v35 = vld [vmem:[#allocation12 + $0x164] sm:$0xf0] }
  0xf5   :  { %7873 = vst [vmem:[#allocation32_spill] sm:$0xff] %v6575_v38 }
  0xf6   :  { %1620 = vmatpush.bf16.msra.mxu2 %v6492_v51  ;;  %1638 = vmatpush.bf16.msra.mxu0 %v6503_v62  ;;  %7865 = vst [vmem:[#allocation24_spill] sm:$0xff] %v6534_v42  ;;  %v427_v56 = vmax.f32 %v409_v32, 0.0  ;;  %v6568_v32 = vadd.f32 %v374_v55, %v6514_v18  ;;  %v4902_v55 = vld [vmem:[#allocation12 + $0x140] sm:$0xf] }
  0xf8   :  { %1388 = vmatpush.bf16.msra.mxu3 %v4662_v50  ;;  %1406 = vmatpush.bf16.msra.mxu1 %v4710_v60  ;;  %v4782_v50 = vld [vmem:[#allocation12 + $0x58] sm:$0xf0]  ;;  %v6539_v60 = vor.u32 %v5854_v45, %v4748_v44  ;;  %v6564_v29 = vpack.c.bf16 %v429_v57, %v427_v56  ;;  %v4758_v44 = vld [vmem:[#allocation12 + $0x28] sm:$0xf0]  ;;  %v6581_v45 = vor.u32 %v5871_v28, %v4822_v30  ;;  %v4910_v56 = vld [vmem:[#allocation12 + $0x150] sm:$0xf] }
  0xf9   :  { %v6543_v1 = vor.u32 %v5861_v46, %v4782_v50  ;;  %v6583_v46 = vor.u32 %v5896_v35, %v4918_v33  ;;  %v4854_v50 = vld [vmem:[#allocation12 + $0xe0] sm:$0xf]  ;;  %v5894_v57 = vld [vmem:[#allocation12 + $0x154] sm:$0xf0]  ;;  %v377_v30 = vadd.f32 %v376_v11, %v6514_v18  ;;  %v4888_v11 = vld [vmem:[#allocation12 + $0x128] sm:$0xf0] }
  0xfa   :  { %1621 = vmatpush.bf16.msra.mxu2 %v6506_v4  ;;  %1639 = vmatpush.bf16.msra.mxu0 %v6512_v17  ;;  %7875 = vst [vmem:[#allocation34_spill] sm:$0xff] %v6581_v45  ;;  %v5914_v28 = vld [vmem:[#allocation12 + $0x1f4] sm:$0xf0]  ;;  %v5993_v17 = vld [vmem:[#allocation12 + $0x474] sm:$0xf] }
  0xfb   :  { %7866 = vst [vmem:[#allocation25_spill] sm:$0xff] %v6543_v1  ;;  %v6617_v18 = vor.u32 %v5914_v28, %v4992_v27  ;;  %v395_v63 = vmax.f32 %v377_v30, 0.0  ;;  %v5016_v30 = vld [vmem:[#allocation12 + $0x220] sm:$0xf] }
  0xfc   :  { %1389 = vmatpush.bf16.msra.mxu3 %v4650_v3  ;;  %1407 = vmatpush.bf16.msra.mxu1 %v4698_v61  ;;  %v5852_v3 = vld [vmem:[#allocation12 + $0x4] sm:$0xf0]  ;;  %v388_v61 = vpop.f32.mrf.mxu1  ;;  %7876 = vst [vmem:[#allocation35_spill] sm:$0xff] %v6583_v46 }
  0xfd   :  { %4834 = vmatmul.msk.bf16.vlgmr.msra.gmra.mxu0 %vm722_vm1, %v6536_v47  ;;  %v6552_v16 = vor.u32 %v5852_v3, %v4740_v0  ;;  %v6591_v0 = vor.u32 %v5855_v40, %v4758_v44  ;;  %v6593_v3 = vor.u32 %v5880_v52, %v4854_v50  ;;  %v5851_v40 = vld [vmem:[#allocation12 + $0x4] sm:$0xf]  ;;  %v4742_v44 = vld [vmem:[#allocation12 + $0x8] sm:$0xf0]  ;;  %v4838_v50 = vld [vmem:[#allocation12 + $0xc0] sm:$0xf] }
  0xfe   :  { %1622 = vmatpush.bf16.msra.mxu2 %v6517_v5  ;;  %1843 = vmatpush.bf16.msrb.mxu0 %v6521_v24  ;;  %7886 = vst [vmem:[#allocation45_spill] sm:$0xff] %v6617_v18 }
  0xff   :  { %4737 = vmatmul.msk.bf16.vlgmr.msra.gmra.mxu1 %vm722_vm1, %v6460_v49  ;;  %7868 = vst [vmem:[#allocation27_spill] sm:$0xff] %v6552_v16  ;;  %v6556_v49 = vor.u32 %v5859_v7, %v4774_v8  ;;  %v5853_v7 = vld [vmem:[#allocation12 + $0x14] sm:$0xf]  ;;  %v4750_v8 = vld [vmem:[#allocation12 + $0x18] sm:$0xf0] }
 0x100   :  { %1390 = vmatpush.bf16.msra.mxu3 %v4638_v19  ;;  %1646 = vmatpush.bf16.msrb.mxu1 %v6519_v23  ;;  %v6558_v19 = vor.u32 %v5884_v10, %v4870_v9  ;;  %7877 = vst [vmem:[#allocation36_spill] sm:$0xff] %v6591_v0  ;;  %v6597_v9 = vor.u32 %v5869_v53, %v4814_v54  ;;  %v5876_v54 = vld [vmem:[#allocation12 + $0xc4] sm:$0xf0] }
 0x101   :  { %7869 = vst [vmem:[#allocation28_spill] sm:$0xff] %v6556_v49  ;;  %v6599_v10 = vor.u32 %v5894_v57, %v4910_v56  ;;  %v6601_v21 = vor.u32 %v5853_v7, %v4750_v8  ;;  %v5897_v56 = vld [vmem:[#allocation12 + $0x174] sm:$0xf]  ;;  %v4928_v57 = vld [vmem:[#allocation12 + $0x178] sm:$0xf0]  ;;  %v6615_v7 = vor.u32 %v5889_v20, %v4896_v26 }
 0x102   :  { %1623 = vmatpush.bf16.msra.mxu2 %v6527_v37  ;;  %1844 = vmatpush.bf16.msrb.mxu0 %v6534_v42  ;;  %7870 = vst [vmem:[#allocation29_spill] sm:$0xff] %v6558_v19  ;;  %v5922_v8 = vld [vmem:[#allocation12 + $0x234] sm:$0xf0]  ;;  %v5895_v20 = vld [vmem:[#allocation12 + $0x164] sm:$0xf] }
 0x103   :  { %7878 = vst [vmem:[#allocation37_spill] sm:$0xff] %v6593_v3  ;;  %v4920_v26 = vld [vmem:[#allocation12 + $0x168] sm:$0xf0]  ;;  %v5985_v42 = vld [vmem:[#allocation12 + $0x434] sm:$0xf] }
 0x104   :  { %1391 = vmatpush.bf16.msra.mxu3 %v4626_v36  ;;  %1647 = vmatpush.bf16.msrb.mxu1 %v6532_v41  ;;  %v6571_v36 = vadd.f32 %v388_v61, %v6500_v59  ;;  %7879 = vst [vmem:[#allocation38_spill] sm:$0xff] %v6597_v9  ;;  %v390_v12 = vpop.f32.mrf.mxu1  ;;  %v5892_v61 = vld [vmem:[#allocation12 + $0x144] sm:$0xf0]  ;;  %v5288_v41 = vld [vmem:[#allocation12 + $0x438] sm:$0xf0] }
 0x105   :  { %7880 = vst [vmem:[#allocation39_spill] sm:$0xff] %v6599_v10  ;;  %v391_v33 = vadd.f32 %v390_v12, %v6500_v59  ;;  %v6613_v53 = vor.u32 %v5892_v61, %v4902_v55  ;;  %v5024_v59 = vld [vmem:[#allocation12 + $0x230] sm:$0xf]  ;;  %v4984_v12 = vld [vmem:[#allocation12 + $0x1e0] sm:$0xf]  ;;  %v6627_v55 = vor.u32 %v5897_v56, %v4928_v57  ;;  %v7893_v56 = vmax.f32 %v6568_v32, 0.0 }
 0x106   :  { %1624 = vmatpush.bf16.msra.mxu2 %v6539_v60  ;;  %1845 = vmatpush.bf16.msrb.mxu0 %v6545_v2  ;;  %7881 = vst [vmem:[#allocation40_spill] sm:$0xff] %v6601_v21  ;;  %v6629_v61 = vor.u32 %v5922_v8, %v5024_v59  ;;  %v7894_v59 = vmax.f32 %v6571_v36, 0.0  ;;  %v4912_v32 = vld [vmem:[#allocation12 + $0x158] sm:$0xf0] }
 0x107   :  { %7884 = vst [vmem:[#allocation43_spill] sm:$0xff] %v6613_v53  ;;  %v6639_v57 = vpack.c.bf16 %v395_v63, %v7893_v56  ;;  %v5008_v63 = vld [vmem:[#allocation12 + $0x210] sm:$0xf]  ;;  %v5883_v56 = vld [vmem:[#allocation12 + $0x104] sm:$0xf] }
 0x108   :  { %1392 = vmatpush.bf16.msra.mxu3 %v4614_v58  ;;  %1648 = vmatpush.bf16.msrb.mxu1 %v6543_v1  ;;  %7885 = vst [vmem:[#allocation44_spill] sm:$0xff] %v6615_v7  ;;  %v396_v58 = vmax.f32 %v391_v33, 0.0  ;;  %v5920_v33 = vld [vmem:[#allocation12 + $0x224] sm:$0xf0] }
 0x109   :  { %7889 = vst [vmem:[#allocation48_spill] sm:$0xff] %v6627_v55 }
 0x10a   :  { %1625 = vmatpush.bf16.msra.mxu2 %v6552_v16  ;;  %1846 = vmatpush.bf16.msrb.mxu0 %v6558_v19  ;;  %7890 = vst [vmem:[#allocation49_spill] sm:$0xff] %v6629_v61  ;;  %v6643_v8 = vpack.c.bf16 %v396_v58, %v7894_v59  ;;  %v5953_v19 = vld [vmem:[#allocation12 + $0x334] sm:$0xf] }
 0x10b   :  { %v167_v16 = vld [vmem:[#allocation4] sm:$0xff]  }
 0x10c   :  { %1393 = vmatpush.bf16.msra.mxu3 %v4602_v15  ;;  %1649 = vmatpush.bf16.msrb.mxu1 %v6556_v49  ;;  %v4806_v15 = vld [vmem:[#allocation12 + $0x88] sm:$0xf0]  ;;  %v5254_v49 = vld [vmem:[#allocation12 + $0x3f0] sm:$0xf] }
 0x10d   :  { %1626 = vmatmul.bf16.vlgmr.msra.gmra.mxu2 %v6564_v29  ;;  %v6611_v52 = vor.u32 %v5867_v14, %v4806_v15  ;;  %v6621_v14 = vor.u32 %v5851_v40, %v4742_v44  ;;  %v6623_v15 = vor.u32 %v5876_v54, %v4838_v50  ;;  %v5885_v40 = vld [vmem:[#allocation12 + $0x114] sm:$0xf]  ;;  %v4880_v44 = vld [vmem:[#allocation12 + $0x118] sm:$0xf0]  ;;  %v4976_v50 = vld [vmem:[#allocation12 + $0x1d0] sm:$0xf] }
 0x10e   :  { %1861 = vmatpush.bf16.msrb.mxu2 %v6562_v25  ;;  %1847 = vmatpush.bf16.msrb.mxu0 %v6577_v39  ;;  %v5910_v54 = vld [vmem:[#allocation12 + $0x1d4] sm:$0xf0]  ;;  %v6655_v36 = vor.u32 %v5885_v40, %v4880_v44  ;;  %v5891_v44 = vld [vmem:[#allocation12 + $0x144] sm:$0xf]  ;;  %v5384_v25 = vld [vmem:[#allocation12 + $0x4f0] sm:$0xf] }
 0x10f   :  { %1394 = vmatmul.bf16.vlgmr.msra.gmra.mxu3 %v6458_v48  ;;  %v4846_v48 = vld [vmem:[#allocation12 + $0xd0] sm:$0xf]  ;;  %7883 = vst [vmem:[#allocation42_spill] sm:$0xff] %v6611_v52  ;;  %v6657_v58 = vor.u32 %v5910_v54, %v4976_v50  ;;  %v4904_v50 = vld [vmem:[#allocation12 + $0x148] sm:$0xf0] }
 0x110   :  { %1664 = vmatpush.bf16.msrb.mxu3 %v6560_v22  ;;  %1650 = vmatpush.bf16.msrb.mxu1 %v6575_v38  ;;  %v6607_v35 = vor.u32 %v5878_v13, %v4846_v48  ;;  %v5887_v48 = vld [vmem:[#allocation12 + $0x124] sm:$0xf]  ;;  %v5912_v13 = vld [vmem:[#allocation12 + $0x1e4] sm:$0xf0]  ;;  %7887 = vst [vmem:[#allocation46_spill] sm:$0xff] %v6621_v14 }
 0x111   :  { %7888 = vst [vmem:[#allocation47_spill] sm:$0xff] %v6623_v15  ;;  %v6633_v27 = vor.u32 %v5887_v48, %v4888_v11  ;;  %v6635_v28 = vor.u32 %v5912_v13, %v4984_v12  ;;  %v6649_v48 = vor.u32 %v5895_v20, %v4920_v26  ;;  %v6651_v11 = vor.u32 %v5920_v33, %v5016_v30  ;;  %v5893_v12 = vld [vmem:[#allocation12 + $0x154] sm:$0xf]  ;;  %v5918_v13 = vld [vmem:[#allocation12 + $0x214] sm:$0xf0] }
 0x112   :  { %1862 = vmatpush.bf16.msrb.mxu2 %v6583_v46  ;;  %1848 = vmatpush.bf16.msrb.mxu0 %v6593_v3  ;;  %7882 = vst [vmem:[#allocation41_spill] sm:$0xff] %v6607_v35  ;;  %v4872_v20 = vld [vmem:[#allocation12 + $0x108] sm:$0xf0]  ;;  %v4968_v26 = vld [vmem:[#allocation12 + $0x1c0] sm:$0xf]  ;;  %v6667_v33 = vor.u32 %v5893_v12, %v4912_v32  ;;  %v6669_v40 = vor.u32 %v5918_v13, %v5008_v63 }
 0x113   :  { %7891 = vst [vmem:[#allocation50_spill] sm:$0xff] %v6633_v27  ;;  %v5908_v30 = vld [vmem:[#allocation12 + $0x1c4] sm:$0xf0]  ;;  %v5000_v54 = vld [vmem:[#allocation12 + $0x200] sm:$0xf]  ;;  %v6673_v59 = vor.u32 %v5883_v56, %v4872_v20 }
 0x114   :  { %1665 = vmatpush.bf16.msrb.mxu3 %v6581_v45  ;;  %1651 = vmatpush.bf16.msrb.mxu1 %v6591_v0  ;;  %7892 = vst [vmem:[#allocation51_spill] sm:$0xff] %v6635_v28  ;;  %v5913_v12 = vld [vmem:[#allocation12 + $0x1f4] sm:$0xf]  ;;  %v4994_v32 = vld [vmem:[#allocation12 + $0x1f8] sm:$0xf0] }
 0x115   :  { %7895 = vst [vmem:[#allocation52_spill] sm:$0xff] %v6649_v48  ;;  %v5090_v63 = vld [vmem:[#allocation12 + $0x2b0] sm:$0xf]  ;;  %v5938_v13 = vld [vmem:[#allocation12 + $0x2b4] sm:$0xf0] }
 0x116   :  { %1863 = vmatpush.bf16.msrb.mxu2 %v6599_v10  ;;  %1849 = vmatpush.bf16.msrb.mxu0 %v6607_v35  ;;  %7896 = vst [vmem:[#allocation53_spill] sm:$0xff] %v6651_v11  ;;  %v6689_v35 = vor.u32 %v5913_v12, %v4994_v32  ;;  %v5935_v3 = vld [vmem:[#allocation12 + $0x2a4] sm:$0xf]  ;;  %v5084_v0 = vld [vmem:[#allocation12 + $0x2a8] sm:$0xf0] }
 0x117   :  { %7897 = vst [vmem:[#allocation54_spill] sm:$0xff] %v6655_v36  ;;  %v5927_v39 = vld [vmem:[#allocation12 + $0x264] sm:$0xf]  ;;  %v5052_v38 = vld [vmem:[#allocation12 + $0x268] sm:$0xf0] }
 0x118   :  { %1666 = vmatpush.bf16.msrb.mxu3 %v6597_v9  ;;  %1652 = vmatpush.bf16.msrb.mxu1 %v6601_v21  ;;  %7898 = vst [vmem:[#allocation55_spill] sm:$0xff] %v6657_v58  ;;  %v6691_v21 = vor.u32 %v5938_v13, %v5090_v63  ;;  %v4944_v63 = vld [vmem:[#allocation12 + $0x190] sm:$0xf]  ;;  %v5902_v13 = vld [vmem:[#allocation12 + $0x194] sm:$0xf0] }
 0x119   :  { %7899 = vst [vmem:[#allocation56_spill] sm:$0xff] %v6667_v33  ;;  %v5214_v10 = vld [vmem:[#allocation12 + $0x3a8] sm:$0xf0]  ;;  %v5992_v9 = vld [vmem:[#allocation12 + $0x464] sm:$0xf0] }
 0x11a   :  { %1864 = vmatpush.bf16.msrb.mxu2 %v6613_v53  ;;  %1850 = vmatpush.bf16.msrb.mxu0 %v6623_v15  ;;  %7900 = vst [vmem:[#allocation57_spill] sm:$0xff] %v6669_v40  ;;  %v5881_v15 = vld [vmem:[#allocation12 + $0xf4] sm:$0xf] }
 0x11b   :  { %7901 = vst [vmem:[#allocation58_spill] sm:$0xff] %v6673_v59  ;;  %v5949_v46 = vld [vmem:[#allocation12 + $0x314] sm:$0xf] }
 0x11c   :  { %1667 = vmatpush.bf16.msrb.mxu3 %v6611_v52  ;;  %1653 = vmatpush.bf16.msrb.mxu1 %v6621_v14  ;;  %v4960_v14 = vld [vmem:[#allocation12 + $0x1b0] sm:$0xf]  ;;  %7907 = vst [vmem:[#allocation64_spill] sm:$0xff] %v6689_v35  ;;  %v5952_v52 = vld [vmem:[#allocation12 + $0x324] sm:$0xf0] }
 0x11d   :  { %1851 = vmatmul.bf16.vlgmr.msrb.gmra.mxu0 %v6639_v57  ;;  %4932 = vmatmul.msk.bf16.vlgmr.msrb.gmra.mxu2 %vm722_vm1, %v6643_v8  ;;  %7908 = vst [vmem:[#allocation65_spill] sm:$0xff] %v6691_v21 }
 0x11e   :  { %2069 = vmatpush.bf16.msra.mxu2 %v6617_v18  ;;  %2087 = vmatpush.bf16.msra.mxu0 %v6629_v61  ;;  %v6675_v61 = vor.u32 %v5908_v30, %v4968_v26  ;;  %v5879_v26 = vld [vmem:[#allocation12 + $0xe4] sm:$0xf]  ;;  %v4856_v30 = vld [vmem:[#allocation12 + $0xe8] sm:$0xf0]  ;;  %v5960_v18 = vld [vmem:[#allocation12 + $0x364] sm:$0xf0] }
 0x11f   :  { %1654 = vmatmul.bf16.vlgmr.msrb.gmra.mxu1 %v6564_v29  ;;  %4835 = vmatmul.msk.bf16.vlgmr.msrb.gmra.mxu3 %vm722_vm1, %v6536_v47 }
 0x120   :  { %1871 = vmatpush.bf16.msra.mxu3 %v6615_v7  ;;  %1889 = vmatpush.bf16.msra.mxu1 %v6627_v55  ;;  %7902 = vst [vmem:[#allocation59_spill] sm:$0xff] %v6675_v61  ;;  %v5916_v55 = vld [vmem:[#allocation12 + $0x204] sm:$0xf0]  ;;  %v5986_v7 = vld [vmem:[#allocation12 + $0x434] sm:$0xf0] }
 0x122   :  { %2070 = vmatpush.bf16.msra.mxu2 %v6635_v28  ;;  %2088 = vmatpush.bf16.msra.mxu0 %v6651_v11  ;;  %v5906_v11 = vld [vmem:[#allocation12 + $0x1b4] sm:$0xf0]  ;;  %v5220_v28 = vld [vmem:[#allocation12 + $0x3b0] sm:$0xf] }
 0x123   :  { %v6687_v20 = vor.u32 %v5906_v11, %v4960_v14  ;;  %v6697_v14 = vor.u32 %v5879_v26, %v4856_v30  ;;  %v4848_v11 = vld [vmem:[#allocation12 + $0xd8] sm:$0xf0]  ;;  %v5875_v26 = vld [vmem:[#allocation12 + $0xc4] sm:$0xf]  ;;  %v4840_v30 = vld [vmem:[#allocation12 + $0xc8] sm:$0xf0] }
 0x124   :  { %1872 = vmatpush.bf16.msra.mxu3 %v6633_v27  ;;  %1890 = vmatpush.bf16.msra.mxu1 %v6649_v48  ;;  %v4864_v48 = vld [vmem:[#allocation12 + $0xf8] sm:$0xf0]  ;;  %v5970_v27 = vld [vmem:[#allocation12 + $0x3b4] sm:$0xf0] }
 0x125   :  { %v6685_v56 = vor.u32 %v5881_v15, %v4864_v48  ;;  %7906 = vst [vmem:[#allocation63_spill] sm:$0xff] %v6687_v20  ;;  %v5877_v48 = vld [vmem:[#allocation12 + $0xd4] sm:$0xf] }
 0x126   :  { %2071 = vmatpush.bf16.msra.mxu2 %v6657_v58  ;;  %2089 = vmatpush.bf16.msra.mxu0 %v6669_v40  ;;  %v6681_v58 = vor.u32 %v5916_v55, %v5000_v54  ;;  %v5904_v40 = vld [vmem:[#allocation12 + $0x1a4] sm:$0xf0]  ;;  %v5082_v55 = vld [vmem:[#allocation12 + $0x2a0] sm:$0xf]  ;;  %7909 = vst [vmem:[#allocation66_spill] sm:$0xff] %v6697_v14 }
 0x127   :  { %7905 = vst [vmem:[#allocation62_spill] sm:$0xff] %v6685_v56  ;;  %v5936_v54 = vld [vmem:[#allocation12 + $0x2a4] sm:$0xf0] }
 0x128   :  { %1873 = vmatpush.bf16.msra.mxu3 %v6655_v36  ;;  %1891 = vmatpush.bf16.msra.mxu1 %v6667_v33  ;;  %v6679_v36 = vor.u32 %v5891_v44, %v4904_v50  ;;  %7904 = vst [vmem:[#allocation61_spill] sm:$0xff] %v6681_v58  ;;  %v4952_v33 = vld [vmem:[#allocation12 + $0x1a0] sm:$0xf]  ;;  %v5911_v44 = vld [vmem:[#allocation12 + $0x1e4] sm:$0xf]  ;;  %v6705_v32 = vor.u32 %v5936_v54, %v5082_v55 }
 0x129   :  { %v4986_v50 = vld [vmem:[#allocation12 + $0x1e8] sm:$0xf0]  ;;  %v6699_v15 = vor.u32 %v5904_v40, %v4952_v33  ;;  %v6709_v33 = vor.u32 %v5877_v48, %v4848_v11  ;;  %v6711_v40 = vor.u32 %v5902_v13, %v4944_v63  ;;  %v5900_v54 = vld [vmem:[#allocation12 + $0x184] sm:$0xf0]  ;;  %v5066_v48 = vld [vmem:[#allocation12 + $0x280] sm:$0xf] }
 0x12a   :  { %7903 = vst [vmem:[#allocation60_spill] sm:$0xff] %v6679_v36  ;;  %2072 = vmatpush.bf16.msra.mxu2 %v6675_v61  ;;  %2090 = vmatpush.bf16.msra.mxu0 %v6681_v58  ;;  %v6703_v12 = vor.u32 %v5911_v44, %v4986_v50  ;;  %v5909_v58 = vld [vmem:[#allocation12 + $0x1d4] sm:$0xf]  ;;  %v4936_v44 = vld [vmem:[#allocation12 + $0x180] sm:$0xf] }
 0x12b   :  { %7910 = vst [vmem:[#allocation67_spill] sm:$0xff] %v6699_v15  ;;  %v5932_v11 = vld [vmem:[#allocation12 + $0x284] sm:$0xf0]  ;;  %v5921_v63 = vld [vmem:[#allocation12 + $0x234] sm:$0xf] }
 0x12c   :  { %1874 = vmatpush.bf16.msra.mxu3 %v6673_v59  ;;  %1892 = vmatpush.bf16.msra.mxu1 %v6679_v36  ;;  %7911 = vst [vmem:[#allocation68_spill] sm:$0xff] %v6703_v12  ;;  %v4978_v36 = vld [vmem:[#allocation12 + $0x1d8] sm:$0xf0] }
 0x12d   :  { %7912 = vst [vmem:[#allocation69_spill] sm:$0xff] %v6705_v32  ;;  %v6715_v50 = vor.u32 %v5909_v58, %v4978_v36  ;;  %5030 = vmatmul.msk.bf16.vlgmr.msra.gmra.mxu0 %vm722_vm1, %v6536_v47  ;;  %v5026_v13 = vld [vmem:[#allocation12 + $0x238] sm:$0xf0]  ;;  %v6725_v36 = vor.u32 %v5875_v26, %v4840_v30  ;;  %v6727_v58 = vor.u32 %v5900_v54, %v4936_v44  ;;  %v5919_v26 = vld [vmem:[#allocation12 + $0x224] sm:$0xf] }
 0x12e   :  { %2073 = vmatpush.bf16.msra.mxu2 %v6687_v20  ;;  %2294 = vmatpush.bf16.msrb.mxu0 %v6691_v21  ;;  %v5934_v20 = vld [vmem:[#allocation12 + $0x294] sm:$0xf0]  ;;  %7913 = vst [vmem:[#allocation70_spill] sm:$0xff] %v6709_v33  ;;  %v5907_v21 = vld [vmem:[#allocation12 + $0x1c4] sm:$0xf]  ;;  %v6735_v61 = vor.u32 %v5921_v63, %v5026_v13 }
 0x12f   :  { %7914 = vst [vmem:[#allocation71_spill] sm:$0xff] %v6711_v40  ;;  %4933 = vmatmul.msk.bf16.vlgmr.msra.gmra.mxu1 %vm722_vm1, %v6643_v8  ;;  %v5018_v30 = vld [vmem:[#allocation12 + $0x228] sm:$0xf0]  ;;  %v5114_v44 = vld [vmem:[#allocation12 + $0x2e0] sm:$0xf] }
 0x130   :  { %1875 = vmatpush.bf16.msra.mxu3 %v6685_v56  ;;  %2097 = vmatpush.bf16.msrb.mxu1 %v6689_v35  ;;  %v5074_v56 = vld [vmem:[#allocation12 + $0x290] sm:$0xf]  ;;  %7915 = vst [vmem:[#allocation72_spill] sm:$0xff] %v6715_v50  ;;  %v4970_v35 = vld [vmem:[#allocation12 + $0x1c8] sm:$0xf0] }
 0x131   :  { %v6717_v55 = vor.u32 %v5934_v20, %v5074_v56  ;;  %7917 = vst [vmem:[#allocation74_spill] sm:$0xff] %v6725_v36  ;;  %v6731_v56 = vor.u32 %v5907_v21, %v4970_v35  ;;  %v6733_v20 = vor.u32 %v5932_v11, %v5066_v48  ;;  %v5944_v54 = vld [vmem:[#allocation12 + $0x2e4] sm:$0xf0]  ;;  %v6749_v48 = vor.u32 %v5919_v26, %v5018_v30  ;;  %v5050_v63 = vld [vmem:[#allocation12 + $0x260] sm:$0xf] }
 0x132   :  { %2074 = vmatpush.bf16.msra.mxu2 %v6699_v15  ;;  %2295 = vmatpush.bf16.msrb.mxu0 %v6705_v32  ;;  %v5946_v15 = vld [vmem:[#allocation12 + $0x2f4] sm:$0xf0]  ;;  %7918 = vst [vmem:[#allocation75_spill] sm:$0xff] %v6727_v58  ;;  %v5905_v32 = vld [vmem:[#allocation12 + $0x1b4] sm:$0xf]  ;;  %v6751_v11 = vor.u32 %v5944_v54, %v5114_v44 }
 0x133   :  { %7916 = vst [vmem:[#allocation73_spill] sm:$0xff] %v6717_v55  ;;  %v5928_v13 = vld [vmem:[#allocation12 + $0x264] sm:$0xf0]  ;;  %v5901_v30 = vld [vmem:[#allocation12 + $0x194] sm:$0xf] }
 0x134   :  { %1876 = vmatpush.bf16.msra.mxu3 %v6697_v14  ;;  %2098 = vmatpush.bf16.msrb.mxu1 %v6703_v12  ;;  %v5122_v12 = vld [vmem:[#allocation12 + $0x2f0] sm:$0xf]  ;;  %7919 = vst [vmem:[#allocation76_spill] sm:$0xff] %v6731_v56  ;;  %v4962_v14 = vld [vmem:[#allocation12 + $0x1b8] sm:$0xf0]  ;;  %v6759_v26 = vor.u32 %v5928_v13, %v5050_v63 }
 0x135   :  { %7920 = vst [vmem:[#allocation77_spill] sm:$0xff] %v6733_v20  ;;  %v6737_v59 = vor.u32 %v5946_v15, %v5122_v12  ;;  %v6743_v21 = vor.u32 %v5905_v32, %v4962_v14  ;;  %v5903_v15 = vld [vmem:[#allocation12 + $0x1a4] sm:$0xf]  ;;  %v4954_v12 = vld [vmem:[#allocation12 + $0x1a8] sm:$0xf0] }
 0x136   :  { %2075 = vmatpush.bf16.msra.mxu2 %v6711_v40  ;;  %2296 = vmatpush.bf16.msrb.mxu0 %v6717_v55  ;;  %7921 = vst [vmem:[#allocation78_spill] sm:$0xff] %v6735_v61  ;;  %v5930_v40 = vld [vmem:[#allocation12 + $0x274] sm:$0xf0]  ;;  %v5917_v55 = vld [vmem:[#allocation12 + $0x214] sm:$0xf] }
 0x137   :  { %7922 = vst [vmem:[#allocation79_spill] sm:$0xff] %v6737_v59  ;;  %v5010_v14 = vld [vmem:[#allocation12 + $0x218] sm:$0xf0]  ;;  %v5106_v32 = vld [vmem:[#allocation12 + $0x2d0] sm:$0xf] }
 0x138   :  { %1877 = vmatpush.bf16.msra.mxu3 %v6709_v33  ;;  %2099 = vmatpush.bf16.msrb.mxu1 %v6715_v50  ;;  %v5058_v33 = vld [vmem:[#allocation12 + $0x270] sm:$0xf]  ;;  %7923 = vst [vmem:[#allocation80_spill] sm:$0xff] %v6743_v21  ;;  %v4946_v44 = vld [vmem:[#allocation12 + $0x198] sm:$0xf0] }
 0x139   :  { %v6745_v35 = vor.u32 %v5930_v40, %v5058_v33  ;;  %7925 = vst [vmem:[#allocation82_spill] sm:$0xff] %v6749_v48  ;;  %v5942_v33 = vld [vmem:[#allocation12 + $0x2d4] sm:$0xf0]  ;;  %v6757_v40 = vor.u32 %v5903_v15, %v4954_v12  ;;  %v5042_v54 = vld [vmem:[#allocation12 + $0x250] sm:$0xf] }
 0x13a   :  { %2076 = vmatpush.bf16.msra.mxu2 %v6727_v58  ;;  %2297 = vmatpush.bf16.msrb.mxu0 %v6733_v20  ;;  %7926 = vst [vmem:[#allocation83_spill] sm:$0xff] %v6751_v11  ;;  %v6763_v20 = vor.u32 %v5917_v55, %v5010_v14  ;;  %v5926_v50 = vld [vmem:[#allocation12 + $0x254] sm:$0xf0]  ;;  %v5937_v15 = vld [vmem:[#allocation12 + $0x2b4] sm:$0xf]  ;;  %v6773_v55 = vpop.f32.mrf.mxu0 }
 0x13b   :  { %7924 = vst [vmem:[#allocation81_spill] sm:$0xff] %v6745_v35  ;;  %v5092_v12 = vld [vmem:[#allocation12 + $0x2b8] sm:$0xf0]  ;;  %v5188_v63 = vld [vmem:[#allocation12 + $0x370] sm:$0xf] }
 0x13c   :  { %1878 = vmatpush.bf16.msra.mxu3 %v6725_v36  ;;  %2100 = vmatpush.bf16.msrb.mxu1 %v6731_v56  ;;  %7927 = vst [vmem:[#allocation84_spill] sm:$0xff] %v6757_v40  ;;  %v6765_v56 = vor.u32 %v5942_v33, %v5106_v32  ;;  %v5962_v13 = vld [vmem:[#allocation12 + $0x374] sm:$0xf0]  ;;  %v5899_v14 = vld [vmem:[#allocation12 + $0x184] sm:$0xf]  ;;  %v6777_v58 = vpop.f32.mrf.mxu1 }
 0x13d   :  { %2077 = vmatmul.bf16.vlgmr.msra.gmra.mxu2 %v6564_v29  ;;  %7928 = vst [vmem:[#allocation85_spill] sm:$0xff] %v6759_v26  ;;  %v4938_v32 = vld [vmem:[#allocation12 + $0x188] sm:$0xf0]  ;;  %v5034_v33 = vld [vmem:[#allocation12 + $0x240] sm:$0xf] }
 0x13e   :  { %2312 = vmatpush.bf16.msrb.mxu2 %v6737_v59  ;;  %2298 = vmatpush.bf16.msrb.mxu0 %v6745_v35  ;;  %7929 = vst [vmem:[#allocation86_spill] sm:$0xff] %v6763_v20  ;;  %v5915_v59 = vld [vmem:[#allocation12 + $0x204] sm:$0xf]  ;;  %v5940_v35 = vld [vmem:[#allocation12 + $0x2c4] sm:$0xf0] }
 0x13f   :  { %1879 = vmatmul.bf16.vlgmr.msra.gmra.mxu3 %v6639_v57  ;;  %7930 = vst [vmem:[#allocation87_spill] sm:$0xff] %v6765_v56 }
 0x140   :  { %2115 = vmatpush.bf16.msrb.mxu3 %v6735_v61  ;;  %2101 = vmatpush.bf16.msrb.mxu1 %v6743_v21  ;;  %v5002_v21 = vld [vmem:[#allocation12 + $0x208] sm:$0xf0]  ;;  %v5098_v61 = vld [vmem:[#allocation12 + $0x2c0] sm:$0xf] }
 0x141   :  { %v6779_v36 = vor.u32 %v5915_v59, %v5002_v21  ;;  %v6789_v59 = vor.u32 %v5899_v14, %v4938_v32  ;;  %v5212_v14 = vld [vmem:[#allocation12 + $0x3a0] sm:$0xf]  ;;  %v5968_v32 = vld [vmem:[#allocation12 + $0x3a4] sm:$0xf0] }
 0x142   :  { %2313 = vmatpush.bf16.msrb.mxu2 %v6751_v11  ;;  %2299 = vmatpush.bf16.msrb.mxu0 %v6759_v26  ;;  %v6771_v11 = vor.u32 %v5926_v50, %v5042_v54  ;;  %v5924_v26 = vld [vmem:[#allocation12 + $0x244] sm:$0xf0]  ;;  %v6783_v50 = vor.u32 %v5937_v15, %v5092_v12  ;;  %v6785_v54 = vor.u32 %v5962_v13, %v5188_v63  ;;  %v5943_v15 = vld [vmem:[#allocation12 + $0x2e4] sm:$0xf]  ;;  %v5116_v12 = vld [vmem:[#allocation12 + $0x2e8] sm:$0xf0] }
 0x143   :  { %7933 = vst [vmem:[#allocation90_spill] sm:$0xff] %v6779_v36  ;;  %v6801_v63 = vor.u32 %v5935_v3, %v5084_v0  ;;  %v6817_v3 = vor.u32 %v5943_v15, %v5116_v12  ;;  %v5068_v15 = vld [vmem:[#allocation12 + $0x288] sm:$0xf0]  ;;  %v5164_v12 = vld [vmem:[#allocation12 + $0x340] sm:$0xf] }
 0x144   :  { %2116 = vmatpush.bf16.msrb.mxu3 %v6749_v48  ;;  %2102 = vmatpush.bf16.msrb.mxu1 %v6757_v40  ;;  %v6769_v48 = vor.u32 %v5901_v30, %v4946_v44  ;;  %7932 = vst [vmem:[#allocation89_spill] sm:$0xff] %v6771_v11  ;;  %v6781_v40 = vor.u32 %v5940_v35, %v5098_v61  ;;  %v5945_v30 = vld [vmem:[#allocation12 + $0x2f4] sm:$0xf]  ;;  %v5124_v44 = vld [vmem:[#allocation12 + $0x2f8] sm:$0xf0]  ;;  %v6815_v0 = vpop.f32.mrf.mxu1 }
 0x145   :  { %7935 = vst [vmem:[#allocation92_spill] sm:$0xff] %v6783_v50  ;;  %v6791_v61 = vor.u32 %v5924_v26, %v5034_v33  ;;  %v6795_v21 = vor.u32 %v5945_v30, %v5124_v44  ;;  %v6797_v35 = vor.u32 %v5970_v27, %v5220_v28  ;;  %v6805_v26 = vpop.f32.mrf.mxu2  ;;  %v5933_v33 = vld [vmem:[#allocation12 + $0x294] sm:$0xf]  ;;  %v5076_v30 = vld [vmem:[#allocation12 + $0x298] sm:$0xf0]  ;;  %v6811_v44 = vpop.f32.mrf.mxu0 }
 0x146   :  { %7931 = vst [vmem:[#allocation88_spill] sm:$0xff] %v6769_v48  ;;  %2314 = vmatpush.bf16.msrb.mxu2 %v6765_v56  ;;  %2300 = vmatpush.bf16.msrb.mxu0 %v6771_v11  ;;  %v6807_v11 = vpop.f32.mrf.mxu3  ;;  %v5172_v27 = vld [vmem:[#allocation12 + $0x350] sm:$0xf]  ;;  %v5958_v28 = vld [vmem:[#allocation12 + $0x354] sm:$0xf0] }
 0x147   :  { %7934 = vst [vmem:[#allocation91_spill] sm:$0xff] %v6781_v40  ;;  %v5190_v56 = vld [vmem:[#allocation12 + $0x378] sm:$0xf0] }
 0x148   :  { %2117 = vmatpush.bf16.msrb.mxu3 %v6763_v20  ;;  %7936 = vst [vmem:[#allocation93_spill] sm:$0xff] %v6785_v54  ;;  %v5180_v20 = vld [vmem:[#allocation12 + $0x360] sm:$0xf]  ;;  %2103 = vmatpush.bf16.msrb.mxu1 %v6769_v48  ;;  %v5108_v48 = vld [vmem:[#allocation12 + $0x2d8] sm:$0xf0] }
 0x149   :  { %7937 = vst [vmem:[#allocation94_spill] sm:$0xff] %v6789_v59  ;;  %v6803_v13 = vor.u32 %v5960_v18, %v5180_v20  ;;  %v6819_v18 = vor.u32 %v5968_v32, %v5212_v14  ;;  %v5941_v20 = vld [vmem:[#allocation12 + $0x2d4] sm:$0xf]  ;;  %v5956_v14 = vld [vmem:[#allocation12 + $0x344] sm:$0xf0] }
 0x14a   :  { %7938 = vst [vmem:[#allocation95_spill] sm:$0xff] %v6791_v61  ;;  %2315 = vmatpush.bf16.msrb.mxu2 %v6781_v40  ;;  %2301 = vmatpush.bf16.msrb.mxu0 %v6791_v61  ;;  %v6825_v61 = vor.u32 %v5958_v28, %v5172_v27  ;;  %v6835_v32 = vor.u32 %v5941_v20, %v5108_v48  ;;  %v5100_v27 = vld [vmem:[#allocation12 + $0x2c8] sm:$0xf0]  ;;  %v5196_v28 = vld [vmem:[#allocation12 + $0x380] sm:$0xf] }
 0x14b   :  { %7939 = vst [vmem:[#allocation96_spill] sm:$0xff] %v6795_v21  ;;  %v5929_v40 = vld [vmem:[#allocation12 + $0x274] sm:$0xf] }
 0x14c   :  { %2118 = vmatpush.bf16.msrb.mxu3 %v6779_v36  ;;  %7940 = vst [vmem:[#allocation97_spill] sm:$0xff] %v6797_v35  ;;  %2104 = vmatpush.bf16.msrb.mxu1 %v6789_v59  ;;  %v6823_v59 = vor.u32 %v5933_v33, %v5076_v30  ;;  %v5939_v30 = vld [vmem:[#allocation12 + $0x2c4] sm:$0xf]  ;;  %v5961_v20 = vld [vmem:[#allocation12 + $0x374] sm:$0xf] }
 0x14d   :  { %7941 = vst [vmem:[#allocation98_spill] sm:$0xff] %v6801_v63  ;;  %2302 = vmatmul.bf16.vlgmr.msrb.gmra.mxu0 %v6639_v57  ;;  %5128 = vmatmul.msk.bf16.vlgmr.msrb.gmra.mxu2 %vm722_vm1, %v6643_v8  ;;  %v6849_v36 = vpop.f32.mrf.mxu0  ;;  %v6863_v53 = vor.u32 %v5961_v20, %v5190_v56 }
 0x14e   :  { %2499 = vmatpush.bf16.msra.mxu2 %v6785_v54  ;;  %7942 = vst [vmem:[#allocation99_spill] sm:$0xff] %v6803_v13  ;;  %2517 = vmatpush.bf16.msra.mxu0 %v6797_v35  ;;  %v5204_v54 = vld [vmem:[#allocation12 + $0x390] sm:$0xf]  ;;  %v6847_v48 = vpop.f32.mrf.mxu3 }
 0x14f   :  { %7943 = vst [vmem:[#allocation100_spill] sm:$0xff] %v6817_v3  ;;  %2105 = vmatmul.bf16.vlgmr.msrb.gmra.mxu1 %v6564_v29  ;;  %5031 = vmatmul.msk.bf16.vlgmr.msrb.gmra.mxu3 %vm722_vm1, %v6536_v47 }
 0x150   :  { %2322 = vmatpush.bf16.msra.mxu3 %v6783_v50  ;;  %2340 = vmatpush.bf16.msra.mxu1 %v6795_v21  ;;  %7944 = vst [vmem:[#allocation101_spill] sm:$0xff] %v6819_v18  ;;  %v5966_v21 = vld [vmem:[#allocation12 + $0x394] sm:$0xf0]  ;;  %v5931_v50 = vld [vmem:[#allocation12 + $0x284] sm:$0xf] }
 0x151   :  { %7945 = vst [vmem:[#allocation102_spill] sm:$0xff] %v6823_v59  ;;  %v6837_v33 = vor.u32 %v5966_v21, %v5204_v54  ;;  %v6841_v35 = vor.u32 %v5931_v50, %v5068_v15  ;;  %v5156_v54 = vld [vmem:[#allocation12 + $0x330] sm:$0xf]  ;;  %v5954_v21 = vld [vmem:[#allocation12 + $0x334] sm:$0xf0]  ;;  %v791_v50 = vpop.f32.mrf.mxu1  ;;  %v6853_v15 = vor.u32 %v5939_v30, %v5100_v27 }
 0x152   :  { %2500 = vmatpush.bf16.msra.mxu2 %v6803_v13  ;;  %7946 = vst [vmem:[#allocation103_spill] sm:$0xff] %v6825_v61  ;;  %2518 = vmatpush.bf16.msra.mxu0 %v6819_v18  ;;  %v6843_v13 = vor.u32 %v5956_v14, %v5164_v12  ;;  %v5060_v18 = vld [vmem:[#allocation12 + $0x278] sm:$0xf0]  ;;  %v5959_v30 = vld [vmem:[#allocation12 + $0x364] sm:$0xf] }
 0x153   :  { %7947 = vst [vmem:[#allocation104_spill] sm:$0xff] %v6835_v32  ;;  %v6859_v14 = vor.u32 %v5929_v40, %v5060_v18  ;;  %v5182_v27 = vld [vmem:[#allocation12 + $0x368] sm:$0xf0]  ;;  %v6871_v40 = vor.u32 %v5927_v39, %v5052_v38  ;;  %v5044_v18 = vld [vmem:[#allocation12 + $0x258] sm:$0xf0] }
 0x154   :  { %2323 = vmatpush.bf16.msra.mxu3 %v6801_v63  ;;  %2341 = vmatpush.bf16.msra.mxu1 %v6817_v3  ;;  %7948 = vst [vmem:[#allocation105_spill] sm:$0xff] %v6837_v33  ;;  %v6845_v63 = vpop.f32.mrf.mxu2  ;;  %v5964_v3 = vld [vmem:[#allocation12 + $0x384] sm:$0xf0]  ;;  %v5174_v39 = vld [vmem:[#allocation12 + $0x358] sm:$0xf0] }
 0x155   :  { %7949 = vst [vmem:[#allocation106_spill] sm:$0xff] %v6841_v35  ;;  %v6855_v12 = vor.u32 %v5964_v3, %v5196_v28  ;;  %v5278_v3 = vld [vmem:[#allocation12 + $0x420] sm:$0xf]  ;;  %v5984_v28 = vld [vmem:[#allocation12 + $0x424] sm:$0xf0] }
 0x156   :  { %2501 = vmatpush.bf16.msra.mxu2 %v6825_v61  ;;  %7950 = vst [vmem:[#allocation107_spill] sm:$0xff] %v6843_v13  ;;  %2519 = vmatpush.bf16.msra.mxu0 %v6837_v33  ;;  %v6861_v61 = vor.u32 %v5954_v21, %v5156_v54  ;;  %v5148_v33 = vld [vmem:[#allocation12 + $0x320] sm:$0xf]  ;;  %v6879_v54 = vor.u32 %v5959_v30, %v5182_v27  ;;  %v805_v20 = vpop.f32.mrf.mxu3 }
 0x157   :  { %7951 = vst [vmem:[#allocation108_spill] sm:$0xff] %v6853_v15  ;;  %v6873_v56 = vor.u32 %v5952_v52, %v5148_v33  ;;  %v6881_v21 = vor.u32 %v5984_v28, %v5278_v3  ;;  %v6883_v38 = vadd.f32 %v805_v20, %v791_v50  ;;  %v5270_v52 = vld [vmem:[#allocation12 + $0x410] sm:$0xf]  ;;  %v5982_v33 = vld [vmem:[#allocation12 + $0x414] sm:$0xf0] }
 0x158   :  { %2324 = vmatpush.bf16.msra.mxu3 %v6823_v59  ;;  %v5286_v59 = vld [vmem:[#allocation12 + $0x430] sm:$0xf]  ;;  %2342 = vmatpush.bf16.msra.mxu1 %v6835_v32  ;;  %7952 = vst [vmem:[#allocation109_spill] sm:$0xff] %v6855_v12  ;;  %v5923_v3 = vld [vmem:[#allocation12 + $0x244] sm:$0xf]  ;;  %v6899_v20 = vor.u32 %v5982_v33, %v5270_v52 }
 0x159   :  { %7953 = vst [vmem:[#allocation110_spill] sm:$0xff] %v6859_v14  ;;  %v6865_v32 = vor.u32 %v5986_v7, %v5286_v59  ;;  %v5925_v59 = vld [vmem:[#allocation12 + $0x254] sm:$0xf]  ;;  %v5036_v28 = vld [vmem:[#allocation12 + $0x248] sm:$0xf0] }
 0x15a   :  { %2502 = vmatpush.bf16.msra.mxu2 %v6843_v13  ;;  %7954 = vst [vmem:[#allocation111_spill] sm:$0xff] %v6861_v61  ;;  %2520 = vmatpush.bf16.msra.mxu0 %v6855_v12  ;;  %v5140_v12 = vld [vmem:[#allocation12 + $0x310] sm:$0xf]  ;;  %v6887_v13 = vpop.f32.mrf.mxu0  ;;  %v6891_v30 = vor.u32 %v5925_v59, %v5044_v18  ;;  %v5969_v59 = vld [vmem:[#allocation12 + $0x3b4] sm:$0xf] }
 0x15b   :  { %7955 = vst [vmem:[#allocation112_spill] sm:$0xff] %v6863_v53  ;;  %v5222_v18 = vld [vmem:[#allocation12 + $0x3b8] sm:$0xf0] }
 0x15c   :  { %2325 = vmatpush.bf16.msra.mxu3 %v6841_v35  ;;  %7956 = vst [vmem:[#allocation113_spill] sm:$0xff] %v6865_v32  ;;  %2343 = vmatpush.bf16.msra.mxu1 %v6853_v15  ;;  %v6875_v7 = vpop.f32.mrf.mxu2  ;;  %v5950_v15 = vld [vmem:[#allocation12 + $0x314] sm:$0xf0] }
 0x15d   :  { %7957 = vst [vmem:[#allocation114_spill] sm:$0xff] %v6871_v40  ;;  %v6893_v27 = vor.u32 %v5950_v15, %v5140_v12  ;;  %5226 = vmatmul.msk.bf16.vlgmr.msra.gmra.mxu0 %vm722_vm1, %v6536_v47  ;;  %v5262_v15 = vld [vmem:[#allocation12 + $0x400] sm:$0xf]  ;;  %v5980_v12 = vld [vmem:[#allocation12 + $0x404] sm:$0xf0] }
 0x15e   :  { %2503 = vmatpush.bf16.msra.mxu2 %v6861_v61  ;;  %7958 = vst [vmem:[#allocation115_spill] sm:$0xff] %v6873_v56  ;;  %2704 = vmatpush.bf16.msrb.mxu0 %v6865_v32  ;;  %v5957_v61 = vld [vmem:[#allocation12 + $0x354] sm:$0xf]  ;;  %v5132_v32 = vld [vmem:[#allocation12 + $0x300] sm:$0xf]  ;;  %v6919_v35 = vpop.f32.mrf.mxu3 }
 0x15f   :  { %7959 = vst [vmem:[#allocation116_spill] sm:$0xff] %v6879_v54  ;;  %v6897_v50 = vor.u32 %v5957_v61, %v5174_v39  ;;  %5129 = vmatmul.msk.bf16.vlgmr.msra.gmra.mxu1 %vm722_vm1, %v6643_v8  ;;  %v6907_v61 = vor.u32 %v5923_v3, %v5036_v28  ;;  %v6921_v3 = vor.u32 %v5969_v59, %v5222_v18  ;;  %v5967_v28 = vld [vmem:[#allocation12 + $0x3a4] sm:$0xf]  ;;  %v5206_v18 = vld [vmem:[#allocation12 + $0x398] sm:$0xf0] }
 0x160   :  { %2326 = vmatpush.bf16.msra.mxu3 %v6859_v14  ;;  %2527 = vmatpush.bf16.msrb.mxu1 %v6863_v53  ;;  %7960 = vst [vmem:[#allocation117_spill] sm:$0xff] %v6881_v21  ;;  %v6885_v14 = vpop.f32.mrf.mxu1  ;;  %v5955_v53 = vld [vmem:[#allocation12 + $0x344] sm:$0xf] }
 0x161   :  { %7961 = vst [vmem:[#allocation118_spill] sm:$0xff] %v6885_v14  ;;  %v5948_v14 = vld [vmem:[#allocation12 + $0x304] sm:$0xf0] }
 0x162   :  { %2504 = vmatpush.bf16.msra.mxu2 %v6873_v56  ;;  %7962 = vst [vmem:[#allocation119_spill] sm:$0xff] %v6891_v30  ;;  %2705 = vmatpush.bf16.msrb.mxu0 %v6881_v21  ;;  %v5994_v56 = vld [vmem:[#allocation12 + $0x474] sm:$0xf0]  ;;  %v6909_v39 = vor.u32 %v5948_v14, %v5132_v32  ;;  %v6917_v21 = vor.u32 %v5980_v12, %v5262_v15  ;;  %v5150_v15 = vld [vmem:[#allocation12 + $0x328] sm:$0xf0] }
 0x163   :  { %7963 = vst [vmem:[#allocation120_spill] sm:$0xff] %v6893_v27  ;;  %v5978_v14 = vld [vmem:[#allocation12 + $0x3f4] sm:$0xf0]  ;;  %v5246_v12 = vld [vmem:[#allocation12 + $0x3e0] sm:$0xf] }
 0x164   :  { %2327 = vmatpush.bf16.msra.mxu3 %v6871_v40  ;;  %2528 = vmatpush.bf16.msrb.mxu1 %v6879_v54  ;;  %7964 = vst [vmem:[#allocation121_spill] sm:$0xff] %v6897_v50  ;;  %v5166_v40 = vld [vmem:[#allocation12 + $0x348] sm:$0xf0]  ;;  %v5318_v54 = vld [vmem:[#allocation12 + $0x470] sm:$0xf]  ;;  %v6911_v52 = vpop.f32.mrf.mxu2  ;;  %v6933_v59 = vor.u32 %v5978_v14, %v5254_v49 }
 0x165   :  { %7965 = vst [vmem:[#allocation122_spill] sm:$0xff] %v6899_v20  ;;  %v6915_v33 = vor.u32 %v5955_v53, %v5166_v40  ;;  %v6923_v32 = vor.u32 %v5994_v56, %v5318_v54  ;;  %v5951_v40 = vld [vmem:[#allocation12 + $0x324] sm:$0xf]  ;;  %v1084_v56 = vpop.f32.mrf.mxu0  ;;  %v5238_v49 = vld [vmem:[#allocation12 + $0x3d0] sm:$0xf] }
 0x166   :  { %2505 = vmatpush.bf16.msra.mxu2 %v6893_v27  ;;  %7966 = vst [vmem:[#allocation123_spill] sm:$0xff] %v6907_v61  ;;  %2706 = vmatpush.bf16.msrb.mxu0 %v6899_v20  ;;  %v169_v27 = vlaneseq }
 0x167   :  { %7967 = vst [vmem:[#allocation124_spill] sm:$0xff] %v6909_v39 }
 0x168   :  { %2328 = vmatpush.bf16.msra.mxu3 %v6891_v30  ;;  %2529 = vmatpush.bf16.msrb.mxu1 %v6897_v50  ;;  %7968 = vst [vmem:[#allocation125_spill] sm:$0xff] %v6915_v33  ;;  %v5158_v30 = vld [vmem:[#allocation12 + $0x338] sm:$0xf0]  ;;  %v5310_v50 = vld [vmem:[#allocation12 + $0x460] sm:$0xf]  ;;  %v170_v20 = vshrl.u32 %v169_v27, 7  ;;  %v6927_v53 = vpop.f32.mrf.mxu1 }
 0x169   :  { %7969 = vst [vmem:[#allocation126_spill] sm:$0xff] %v6917_v21  ;;  %v6931_v54 = vor.u32 %v5953_v19, %v5158_v30  ;;  %v5965_v27 = vld [vmem:[#allocation12 + $0x394] sm:$0xf]  ;;  %v6939_v1 = vor.u32 %v5992_v9, %v5310_v50  ;;  %v5974_v19 = vld [vmem:[#allocation12 + $0x3d4] sm:$0xf0]  ;;  %v6949_v9 = vor.u32 %v5951_v40, %v5150_v15 }
 0x16a   :  { %7970 = vst [vmem:[#allocation127_spill] sm:$0xff] %v6919_v35  ;;  %2506 = vmatpush.bf16.msra.mxu2 %v6909_v39  ;;  %v5976_v35 = vld [vmem:[#allocation12 + $0x3e4] sm:$0xf0]  ;;  %2707 = vmatpush.bf16.msrb.mxu0 %v6917_v21  ;;  %v171_v2 = vadd.s32 8, %v170_v20  ;;  %v6937_v39 = vor.u32 %v5967_v28, %v5214_v10  ;;  %v5142_v21 = vld [vmem:[#allocation12 + $0x318] sm:$0xf0]  ;;  %v6953_v28 = vpop.f32.mrf.mxu3  ;;  %v6966_v23 = vor.u32 %v5974_v19, %v5238_v49 }
 0x16b   :  { %7971 = vst [vmem:[#allocation128_spill] sm:$0xff] %v6921_v3  ;;  %v5963_v30 = vld [vmem:[#allocation12 + $0x384] sm:$0xf]  ;;  %v6943_v14 = vand.u32 7, %v170_v20  ;;  %v5988_v10 = vld [vmem:[#allocation12 + $0x444] sm:$0xf0]  ;;  %v6951_v50 = vor.u32 %v5976_v35, %v5246_v12  ;;  %v6957_v20 = vor.u32 %v5965_v27, %v5206_v18  ;;  %v6962_v15 = vor.u32 %v5949_v46, %v5142_v21 }
 0x16c   :  { %7972 = vst [vmem:[#allocation129_spill] sm:$0xff] %v6923_v32  ;;  %2329 = vmatpush.bf16.msra.mxu3 %v6907_v61  ;;  %2530 = vmatpush.bf16.msrb.mxu1 %v6915_v33  ;;  %v5302_v61 = vld [vmem:[#allocation12 + $0x450] sm:$0xf]  ;;  %v5990_v33 = vld [vmem:[#allocation12 + $0x454] sm:$0xf0]  ;;  %v6945_v45 = vand.u32 7, %v171_v2  ;;  %v1070_v2 = vpop.f32.mrf.mxu2 }
 0x16d   :  { %7973 = vst [vmem:[#allocation130_spill] sm:$0xff] %v6931_v54  ;;  %2507 = vmatmul.bf16.vlgmr.msra.gmra.mxu2 %v6564_v29  ;;  %v6959_v22 = vor.u32 %v5990_v33, %v5302_v61  ;;  %v5134_v40 = vld [vmem:[#allocation12 + $0x308] sm:$0xf0]  ;;  %v1071_v35 = vadd.f32 %v1070_v2, %v6883_v38  ;;  %v220_v24 = vadd.s32 1, %v6943_v14  ;;  %v6972_v61 = vor.u32 %v5985_v42, %v5288_v41  ;;  %v5230_v33 = vld [vmem:[#allocation12 + $0x3c0] sm:$0xf] }
 0x16e   :  { %7974 = vst [vmem:[#allocation131_spill] sm:$0xff] %v6933_v59  ;;  %2722 = vmatpush.bf16.msrb.mxu2 %v6923_v32  ;;  %v5294_v32 = vld [vmem:[#allocation12 + $0x440] sm:$0xf]  ;;  %2708 = vmatpush.bf16.msrb.mxu0 %v6933_v59  ;;  %v5947_v59 = vld [vmem:[#allocation12 + $0x304] sm:$0xf]  ;;  %v165_v12 = vld [vmem:[#allocation2] sm:$0xff]   ;;  %v4200_v2 = vunpack.c.l.bf16 %v167_v16 }
 0x16f   :  { %7975 = vst [vmem:[#allocation132_spill] sm:$0xff] %v6937_v39  ;;  %2330 = vmatmul.bf16.vlgmr.msra.gmra.mxu3 %v6639_v57  ;;  %v6970_v27 = vor.u32 %v5988_v10, %v5294_v32  ;;  %v5972_v18 = vld [vmem:[#allocation12 + $0x3c4] sm:$0xf0]  ;;  %v6976_v46 = vadd.f32 %v1084_v56, %v1071_v35  ;;  %v6980_v38 = vor.u32 %v5947_v59, %v5134_v40  ;;  %v5320_v49 = vld [vmem:[#allocation12 + $0x478] sm:$0xf0]  ;;  %v4199_v10 = vunpack.c.h.bf16 %v165_v12  ;;  %v6986_v35 = vpop.f32.mrf.mxu0 }
 0x170   :  { %2545 = vmatpush.bf16.msrb.mxu3 %v6921_v3  ;;  %7976 = vst [vmem:[#allocation133_spill] sm:$0xff] %v6939_v1  ;;  %v5198_v3 = vld [vmem:[#allocation12 + $0x388] sm:$0xf0]  ;;  %2531 = vmatpush.bf16.msrb.mxu1 %v6931_v54  ;;  %v6010_v54 = vld [vmem:[#allocation12 + $0x4f4] sm:$0xf0]  ;;  %v6984_v41 = vpop.f32.mrf.mxu1  ;;  %v4201_v56 = vunpack.c.h.bf16 %v167_v16  ;;  %vm224_vm2 = vcmp.lt.s32.totalorder %v220_v24, 8 }
 0x171   :  { %7977 = vst [vmem:[#allocation134_spill] sm:$0xff] %v6949_v9  ;;  %v6978_v21 = vor.u32 %v6010_v54, %v5384_v25  ;;  %v6018_v19 = vld [vmem:[#allocation12 + $0x534] sm:$0xf0]  ;;  %v5983_v42 = vld [vmem:[#allocation12 + $0x424] sm:$0xf]  ;;  %v6988_v25 = vor.u32 %v5972_v18, %v5230_v33  ;;  %v6990_v54 = vor.u32 %v5993_v17, %v5320_v49 }
 0x172   :  { %7978 = vst [vmem:[#allocation135_spill] sm:$0xff] %v6951_v50  ;;  %2723 = vmatpush.bf16.msrb.mxu2 %v6939_v1  ;;  %v6968_v1 = vor.u32 %v5963_v30, %v5198_v3  ;;  %2709 = vmatpush.bf16.msrb.mxu0 %v6951_v50  ;;  %v5416_v3 = vld [vmem:[#allocation12 + $0x530] sm:$0xf]  ;;  %v5280_v32 = vld [vmem:[#allocation12 + $0x428] sm:$0xf0]  ;;  %v4198_v30 = vunpack.c.l.bf16 %v165_v12  ;;  %v6996_v12 = vpop.f32.mrf.mxu3  ;;  %v4203_v17 = vmax.f32 %v4199_v10, %v4201_v56 }
 0x173   :  { %7979 = vst [vmem:[#allocation136_spill] sm:$0xff] %v6959_v22  ;;  %v6992_v59 = vor.u32 %v6018_v19, %v5416_v3  ;;  %v5376_v40 = vld [vmem:[#allocation12 + $0x4e0] sm:$0xf]  ;;  %v6008_v50 = vld [vmem:[#allocation12 + $0x4e4] sm:$0xf0]  ;;  %v6998_v16 = vor.u32 %v5983_v42, %v5280_v32  ;;  %v7842_v19 = vmov 0.0  }
 0x174   :  { %2546 = vmatpush.bf16.msrb.mxu3 %v6937_v39  ;;  %7980 = vst [vmem:[#allocation137_spill] sm:$0xff] %v6962_v15  ;;  %v221_v39 = vadd.s32 1, %v6945_v45  ;;  %2532 = vmatpush.bf16.msrb.mxu1 %v6949_v9  ;;  %v4206_v9 = vrot.slane %v4198_v30, 1  ;;  %v5991_v33 = vld [vmem:[#allocation12 + $0x464] sm:$0xf]  ;;  %v7002_v49 = vpop.f32.mrf.mxu2 }
 0x175   :  { %7981 = vst [vmem:[#allocation138_spill] sm:$0xff] %v6966_v23  ;;  %v5312_v18 = vld [vmem:[#allocation12 + $0x468] sm:$0xf0]  ;;  %v5408_v3 = vld [vmem:[#allocation12 + $0x520] sm:$0xf] }
 0x176   :  { %7982 = vst [vmem:[#allocation139_spill] sm:$0xff] %v6972_v61  ;;  %2724 = vmatpush.bf16.msrb.mxu2 %v6959_v22  ;;  %vm225_vm3 = vcmp.lt.s32.totalorder %v221_v39, 8  ;;  %v4207_v22 = vrot.slane %v4199_v10, 1  ;;  %2710 = vmatpush.bf16.msrb.mxu0 %v6966_v23  ;;  %v7006_v23 = vsel %vm224_vm2, 1.0, %v7842_v19  ;;  %v7016_v10 = vor.u32 %v6008_v50, %v5376_v40  ;;  %v5981_v56 = vld [vmem:[#allocation12 + $0x414] sm:$0xf] }
 0x177   :  { %7983 = vst [vmem:[#allocation140_spill] sm:$0xff] %v6978_v21  ;;  %v7010_v42 = vsel %vm225_vm3, 1.0, %v7842_v19  ;;  %v5368_v39 = vld [vmem:[#allocation12 + $0x4d0] sm:$0xf]  ;;  %v6006_v19 = vld [vmem:[#allocation12 + $0x4d4] sm:$0xf0]  ;;  %v7024_v50 = vor.u32 %v5991_v33, %v5312_v18 }
 0x178   :  { %7984 = vst [vmem:[#allocation141_spill] sm:$0xff] %v6980_v38  ;;  %2547 = vmatpush.bf16.msrb.mxu3 %v6957_v20  ;;  %2533 = vmatpush.bf16.msrb.mxu1 %v6962_v15  ;;  %v4208_v32 = vsel %vm1420_vm4, %v4206_v9, %v4207_v22  ;;  %v1339_v33 = vpop.f32.mrf.mxu1  ;;  %v5360_v18 = vld [vmem:[#allocation12 + $0x4c0] sm:$0xf] }
 0x179   :  { %7985 = vst [vmem:[#allocation142_spill] sm:$0xff] %v6986_v35  ;;  %v4202_v35 = vmax.f32 %v4198_v30, %v4200_v2  ;;  %v4211_v30 = vsel %vm1420_vm4, %v4207_v22, 0.0  ;;  %v6016_v2 = vld [vmem:[#allocation12 + $0x524] sm:$0xf0]  ;;  %v4212_v24 = vmul.f32 %v7006_v23, %v4208_v32  ;;  %v5989_v22 = vld [vmem:[#allocation12 + $0x454] sm:$0xf] }
 0x17a   :  { %7986 = vst [vmem:[#allocation143_spill] sm:$0xff] %v6988_v25  ;;  %2725 = vmatpush.bf16.msrb.mxu2 %v6970_v27  ;;  %v4213_v15 = vmul.f32 %v7010_v42, %v4211_v30  ;;  %2711 = vmatpush.bf16.msrb.mxu0 %v6988_v25  ;;  %v7026_v40 = vor.u32 %v6016_v2, %v5408_v3  ;;  %v5304_v32 = vld [vmem:[#allocation12 + $0x458] sm:$0xf0]  ;;  %v5400_v30 = vld [vmem:[#allocation12 + $0x510] sm:$0xf]  ;;  %v1353_v3 = vpop.f32.mrf.mxu3 }
 0x17b   :  { %7987 = vst [vmem:[#allocation144_spill] sm:$0xff] %v6990_v54  ;;  %v4214_v9 = vmax.f32 %v4202_v35, %v4212_v24  ;;  %v7032_v25 = vor.u32 %v6006_v19, %v5368_v39  ;;  %v5264_v35 = vld [vmem:[#allocation12 + $0x408] sm:$0xf0]  ;;  %v7050_v19 = vor.u32 %v5989_v22, %v5304_v32  ;;  %v6002_v22 = vld [vmem:[#allocation12 + $0x4b4] sm:$0xf0] }
 0x17c   :  { %7988 = vst [vmem:[#allocation145_spill] sm:$0xff] %v6992_v59  ;;  %2548 = vmatpush.bf16.msrb.mxu3 %v6968_v1  ;;  %2534 = vmatpush.bf16.msrb.mxu1 %v6980_v38  ;;  %v5296_v24 = vld [vmem:[#allocation12 + $0x448] sm:$0xf0]  ;;  %v6009_v32 = vld [vmem:[#allocation12 + $0x4f4] sm:$0xf] }
 0x17d   :  { %7989 = vst [vmem:[#allocation146_spill] sm:$0xff] %v7002_v49  ;;  %v5272_v49 = vld [vmem:[#allocation12 + $0x418] sm:$0xf0]  ;;  %2712 = vmatmul.bf16.vlgmr.msrb.gmra.mxu0 %v6639_v57  ;;  %5324 = vmatmul.msk.bf16.vlgmr.msrb.gmra.mxu2 %vm722_vm1, %v6643_v8 }
 0x17e   :  { %2929 = vmatpush.bf16.msra.mxu2 %v6978_v21  ;;  %7990 = vst [vmem:[#allocation147_spill] sm:$0xff] %v7016_v10  ;;  %2947 = vmatpush.bf16.msra.mxu0 %v6992_v59  ;;  %v6014_v21 = vld [vmem:[#allocation12 + $0x514] sm:$0xf0]  ;;  %v7030_v38 = vor.u32 %v5981_v56, %v5272_v49  ;;  %v1367_v49 = vpop.f32.mrf.mxu0  ;;  %v5987_v56 = vld [vmem:[#allocation12 + $0x444] sm:$0xf] }
 0x17f   :  { %7991 = vst [vmem:[#allocation148_spill] sm:$0xff] %v7024_v50  ;;  %2535 = vmatmul.bf16.vlgmr.msrb.gmra.mxu1 %v6564_v29  ;;  %5227 = vmatmul.msk.bf16.vlgmr.msrb.gmra.mxu3 %vm722_vm1, %v6536_v47  ;;  %v7052_v2 = vor.u32 %v6014_v21, %v5400_v30  ;;  %v5392_v59 = vld [vmem:[#allocation12 + $0x500] sm:$0xf]  ;;  %v750_v21 = vadd.f32 %v6777_v58, %v6773_v55  ;;  %v5386_v30 = vld [vmem:[#allocation12 + $0x4f8] sm:$0xf0] }
 0x180   :  { %2732 = vmatpush.bf16.msra.mxu3 %v6972_v61  ;;  %v4215_v61 = vmax.f32 %v4203_v17, %v4213_v15  ;;  %2750 = vmatpush.bf16.msra.mxu1 %v6990_v54  ;;  %7992 = vst [vmem:[#allocation149_spill] sm:$0xff] %v7026_v40  ;;  %v5979_v15 = vld [vmem:[#allocation12 + $0x404] sm:$0xf]  ;;  %v6004_v17 = vld [vmem:[#allocation12 + $0x4c4] sm:$0xf0]  ;;  %v778_v55 = vadd.f32 %v6807_v11, %v6805_v26 }
 0x181   :  { %7993 = vst [vmem:[#allocation150_spill] sm:$0xff] %v7032_v25  ;;  %v7056_v39 = vor.u32 %v5979_v15, %v5264_v35  ;;  %v5977_v54 = vld [vmem:[#allocation12 + $0x3f4] sm:$0xf]  ;;  %v1015_v35 = vadd.f32 %v6849_v36, %v750_v21  ;;  %v5975_v58 = vld [vmem:[#allocation12 + $0x3e4] sm:$0xf]  ;;  %v780_v21 = vadd.f32 %v6847_v48, %v6845_v63 }
 0x182   :  { %2930 = vmatpush.bf16.msra.mxu2 %v7016_v10  ;;  %4241 = vst.msk [vmem:[%s7724_s12 + $0x20] sm:$0x7f] %vm4240_vm5, %v4214_v9  ;;  %2948 = vmatpush.bf16.msra.mxu0 %v7026_v40  ;;  %v7058_v9 = vor.u32 %v6004_v17, %v5360_v18  ;;  %v5256_v40 = vld [vmem:[#allocation12 + $0x3f8] sm:$0xf0]  ;;  %v5352_v10 = vld [vmem:[#allocation12 + $0x4b0] sm:$0xf]  ;;  %v1043_v11 = vadd.f32 %v6953_v28, %v778_v55 }
 0x183   :  { %5736 = vst.msk [vmem:[%s7724_s12 + $0x48] sm:$0x7f] %vm4240_vm5, %v4215_v61  ;;  %v1381_v61 = vpop.f32.mrf.mxu2  ;;  %v7071_v18 = vor.u32 %v5977_v54, %v5256_v40  ;;  %v7073_v17 = vor.u32 %v6002_v22, %v5352_v10  ;;  %v6000_v36 = vld [vmem:[#allocation12 + $0x4a4] sm:$0xf0]  ;;  %v1029_v54 = vadd.f32 %v6875_v7, %v1015_v35  ;;  %v1354_v40 = vadd.f32 %v1353_v3, %v1339_v33  ;;  %v6007_v10 = vld [vmem:[#allocation12 + $0x4e4] sm:$0xf] }
 0x184   :  { %2733 = vmatpush.bf16.msra.mxu3 %v6998_v16  ;;  %2751 = vmatpush.bf16.msra.mxu1 %v7024_v50  ;;  %7994 = vst [vmem:[#allocation151_spill] sm:$0xff] %v7050_v19  ;;  %v6012_v50 = vld [vmem:[#allocation12 + $0x504] sm:$0xf0]  ;;  %v5378_v22 = vld [vmem:[#allocation12 + $0x4e8] sm:$0xf0]  ;;  %v1382_v26 = vadd.f32 %v1381_v61, %v1367_v49 }
 0x185   :  { %7995 = vst [vmem:[#allocation152_spill] sm:$0xff] %v7052_v2  ;;  %v7066_v15 = vor.u32 %v6012_v50, %v5392_v59  ;;  %v5248_v59 = vld [vmem:[#allocation12 + $0x3e8] sm:$0xf0]  ;;  %v5344_v50 = vld [vmem:[#allocation12 + $0x4a0] sm:$0xf]  ;;  %v7102_v61 = vor.u32 %v6007_v10, %v5378_v22 }
 0x186   :  { %2931 = vmatpush.bf16.msra.mxu2 %v7032_v25  ;;  %2949 = vmatpush.bf16.msra.mxu0 %v7052_v2  ;;  %v7064_v25 = vor.u32 %v5987_v56, %v5296_v24  ;;  %v752_v56 = vadd.f32 %v6815_v0, %v6811_v44  ;;  %v7079_v24 = vor.u32 %v6009_v32, %v5386_v30  ;;  %v1355_v44 = vpop.f32.mrf.mxu3  ;;  %v5973_v0 = vld [vmem:[#allocation12 + $0x3d4] sm:$0xf]  ;;  %v5240_v32 = vld [vmem:[#allocation12 + $0x3d8] sm:$0xf0]  ;;  %v1369_v30 = vpop.f32.mrf.mxu0  ;;  %v5336_v33 = vld [vmem:[#allocation12 + $0x490] sm:$0xf] }
 0x187   :  { %v7095_v7 = vor.u32 %v5975_v58, %v5248_v59  ;;  %v7097_v28 = vor.u32 %v6000_v36, %v5344_v50  ;;  %v6005_v35 = vld [vmem:[#allocation12 + $0x4d4] sm:$0xf]  ;;  %v5370_v55 = vld [vmem:[#allocation12 + $0x4d8] sm:$0xf0]  ;;  %v7105_v59 = vor.u32 %v5973_v0, %v5240_v32  ;;  %v1057_v50 = vadd.f32 %v6927_v53, %v1043_v11  ;;  %v5328_v32 = vld [vmem:[#allocation12 + $0x480] sm:$0xf] }
 0x188   :  { %2734 = vmatpush.bf16.msra.mxu3 %v7030_v38  ;;  %2752 = vmatpush.bf16.msra.mxu1 %v7050_v19  ;;  %v1017_v2 = vadd.f32 %v6887_v13, %v752_v56  ;;  %v1341_v19 = vpop.f32.mrf.mxu1  ;;  %v7093_v13 = vld [vmem:[%s7717_s5] sm:$0x7]  ;;  %v1045_v56 = vadd.f32 %v6996_v12, %v780_v21  ;;  %v1424_v36 = vrot.slane %v1382_v26, 1  ;;  %v7115_v12 = vor.u32 %v6005_v35, %v5370_v55  ;;  %v5971_v21 = vld [vmem:[#allocation12 + $0x3c4] sm:$0xf] }
 0x189   :  { %v1356_v63 = vadd.f32 %v1355_v44, %v1341_v19  ;;  %7996 = vst [vmem:[#allocation153_spill] sm:$0xff] %v7093_v13  ;;  %v5998_v19 = vld [vmem:[#allocation12 + $0x494] sm:$0xf0]  ;;  %v1421_v44 = vrot.slane %v1354_v40, 1  ;;  %v5232_v40 = vld [vmem:[#allocation12 + $0x3c8] sm:$0xf0] }
 0x18a   :  { %2932 = vmatpush.bf16.msra.mxu2 %v7058_v9  ;;  %2950 = vmatpush.bf16.msra.mxu0 %v7066_v15  ;;  %v1031_v49 = vadd.f32 %v6911_v52, %v1017_v2  ;;  %v1453_v52 = vperm.slane %v7093_v13, 0  ;;  %v7113_v22 = vor.u32 %v5998_v19, %v5336_v33  ;;  %v6003_v19 = vld [vmem:[#allocation12 + $0x4c4] sm:$0xf]  ;;  %v5362_v35 = vld [vmem:[#allocation12 + $0x4c8] sm:$0xf0] }
 0x18b   :  { %v1383_v48 = vpop.f32.mrf.mxu2  ;;  %v1422_v58 = vrot.slane %v1356_v63, 1  ;;  %v1059_v63 = vadd.f32 %v6984_v41, %v1045_v56  ;;  %v5418_v41 = vld [vmem:[#allocation12 + $0x538] sm:$0xf0] }
 0x18c   :  { %2735 = vmatpush.bf16.msra.mxu3 %v7056_v39  ;;  %2753 = vmatpush.bf16.msra.mxu1 %v7064_v25  ;;  %v1384_v3 = vadd.f32 %v1383_v48, %v1369_v30  ;;  %v5996_v30 = vld [vmem:[#allocation12 + $0x484] sm:$0xf0] }
 0x18d   :  { %v1436_v10 = vsel %vm1420_vm4, %v1422_v58, 0.0  ;;  %5422 = vmatmul.msk.bf16.vlgmr.msra.gmra.mxu0 %vm722_vm1, %v6536_v47 }
 0x18e   :  { %2933 = vmatpush.bf16.msra.mxu2 %v7073_v17  ;;  %3009 = vmatpush.bf16.msrb.mxu0 %v6474_v6  ;;  %v1425_v2 = vrot.slane %v1384_v3, 1  ;;  %v1423_v6 = vsel %vm1420_vm4, %v1421_v44, %v1422_v58  ;;  %v1442_v11 = vmul.f32 %v7010_v42, %v1436_v10  ;;  %v1454_v3 = vperm.slane %v7093_v13, 1  ;;  %v6017_v58 = vld [vmem:[#allocation12 + $0x534] sm:$0xf] }
 0x18f   :  { %v1439_v53 = vmul.f32 %v7006_v23, %v1423_v6  ;;  %5325 = vmatmul.msk.bf16.vlgmr.msra.gmra.mxu1 %vm722_vm1, %v6643_v8  ;;  %v7131_v44 = vor.u32 %v5971_v21, %v5232_v40  ;;  %v7141_v40 = vor.u32 %v6017_v58, %v5418_v41 }
 0x190   :  { %2736 = vmatpush.bf16.msra.mxu3 %v7071_v18  ;;  %2957 = vmatpush.bf16.msrb.mxu1 %v7079_v24  ;;  %v1426_v26 = vsel %vm1420_vm4, %v1424_v36, %v1425_v2  ;;  %v1437_v0 = vsel %vm1420_vm4, %v1425_v2, 0.0  ;;  %v7135_v2 = vor.u32 %v5996_v30, %v5328_v32 }
 0x191   :  { %v1440_v48 = vmul.f32 %v7006_v23, %v1426_v26  ;;  %v1443_v33 = vmul.f32 %v7010_v42, %v1437_v0  ;;  %v1445_v55 = vadd.f32 %v1439_v53, %v1029_v54  ;;  %v7139_v54 = vor.u32 %v6003_v19, %v5362_v35  ;;  %v5354_v53 = vld [vmem:[#allocation12 + $0x4b8] sm:$0xf0]  ;;  %v6015_v0 = vld [vmem:[#allocation12 + $0x524] sm:$0xf]  ;;  %v5346_v19 = vld [vmem:[#allocation12 + $0x4a8] sm:$0xf0] }
 0x192   :  { %2934 = vmatpush.bf16.msra.mxu2 %v7097_v28  ;;  %3010 = vmatpush.bf16.msrb.mxu0 %v6481_v34  ;;  %v1448_v34 = vadd.f32 %v1442_v11, %v1031_v49  ;;  %v5402_v35 = vld [vmem:[#allocation12 + $0x518] sm:$0xf0] }
 0x193   :  { %v1446_v56 = vadd.f32 %v1440_v48, %v1057_v50  ;;  %v1449_v36 = vadd.f32 %v1443_v33, %v1059_v63  ;;  %v1459_v6 = vadd.f32 %v1453_v52, %v1445_v55  ;;  %v6001_v50 = vld [vmem:[#allocation12 + $0x4b4] sm:$0xf]  ;;  %v5410_v63 = vld [vmem:[#allocation12 + $0x528] sm:$0xf0]  ;;  %v1409_v48 = vpop.f32.mrf.mxu1  ;;  %v1627_v55 = vpop.f32.mrf.mxu2 }
 0x194   :  { %2737 = vmatpush.bf16.msra.mxu3 %v7095_v7  ;;  %2958 = vmatpush.bf16.msrb.mxu1 %v7102_v61  ;;  %v1462_v10 = vadd.f32 %v1453_v52, %v1448_v34  ;;  %v7150_v52 = vor.u32 %v6001_v50, %v5354_v53  ;;  %v7157_v33 = vor.u32 %v6015_v0, %v5410_v63  ;;  %v5330_v50 = vld [vmem:[#allocation12 + $0x488] sm:$0xf0] }
 0x195   :  { %v1460_v49 = vadd.f32 %v1454_v3, %v1446_v56  ;;  %v1463_v21 = vadd.f32 %v1454_v3, %v1449_v36  ;;  %v1465_v11 = vmax.f32 %v1459_v6, 0.0  ;;  %v5999_v3 = vld [vmem:[#allocation12 + $0x4a4] sm:$0xf]  ;;  %v5997_v36 = vld [vmem:[#allocation12 + $0x494] sm:$0xf] }
 0x196   :  { %2935 = vmatpush.bf16.msra.mxu2 %v7113_v22  ;;  %3011 = vmatpush.bf16.msrb.mxu0 %v6492_v51  ;;  %v1468_v26 = vmax.f32 %v1462_v10, 0.0  ;;  %v1641_v51 = vpop.f32.mrf.mxu0  ;;  %v7169_v34 = vor.u32 %v5999_v3, %v5346_v19  ;;  %v5338_v6 = vld [vmem:[#allocation12 + $0x498] sm:$0xf0]  ;;  %v6011_v10 = vld [vmem:[#allocation12 + $0x504] sm:$0xf]  ;;  %v8002_v19 = vld [vmem:[#allocation30_spill] sm:$0xff] }
 0x197   :  { %v1466_v32 = vmax.f32 %v1460_v49, 0.0  ;;  %v1469_v30 = vmax.f32 %v1463_v21, 0.0  ;;  %4236 = vst [vmem:[%s7724_s12] sm:$0x7f] %v1465_v11  ;;  %v7173_v41 = vadd.f32 %v1641_v51, %v1627_v55  ;;  %v5394_v49 = vld [vmem:[#allocation12 + $0x508] sm:$0xf0]  ;;  %v8004_v55 = vld [vmem:[#allocation23_spill] sm:$0xff] }
 0x198   :  { %2738 = vmatpush.bf16.msra.mxu3 %v7105_v59  ;;  %2959 = vmatpush.bf16.msrb.mxu1 %v7115_v12  ;;  %5732 = vst [vmem:[%s7724_s12 + $0x28] sm:$0x7f] %v1468_v26  ;;  %v5995_v21 = vld [vmem:[#allocation12 + $0x484] sm:$0xf] }
 0x199   :  { %4237 = vst [vmem:[%s7724_s12 + $0x8] sm:$0x7f] %v1466_v32  ;;  %v7187_v63 = vor.u32 %v5995_v21, %v5330_v50 }
 0x19a   :  { %2936 = vmatpush.bf16.msra.mxu2 %v7135_v2  ;;  %3012 = vmatpush.bf16.msrb.mxu0 %v6506_v4  ;;  %v6013_v4 = vld [vmem:[#allocation12 + $0x514] sm:$0xf]  ;;  %5733 = vst [vmem:[%s7724_s12 + $0x30] sm:$0x7f] %v1469_v30 }
 0x19b   :  { %v7175_v56 = vor.u32 %v6013_v4, %v5402_v35  ;;  %v1411_v11 = vpop.f32.mrf.mxu1  ;;  %v1629_v0 = vpop.f32.mrf.mxu2  ;;  %v8000_v30 = vld [vmem:[#allocation22_spill] sm:$0xff]  ;;  %v8003_v4 = vld [vmem:[#allocation31_spill] sm:$0xff]  ;;  %v196_v35 = vadd.s32 4294967294, %v6943_v14 }
 0x19c   :  { %2739 = vmatpush.bf16.msra.mxu3 %v7131_v44  ;;  %2960 = vmatpush.bf16.msrb.mxu1 %v7139_v54 }
 0x19d   :  { %2937 = vmatmul.bf16.vlgmr.msra.gmra.mxu2 %v6564_v29  ;;  %vm198_vm7 = vcmp.ge.s32.totalorder %v196_v35, 0  ;;  %v8011_v35 = vmov 0.0  }
 0x19e   :  { %3027 = vmatpush.bf16.msrb.mxu2 %v6478_v31  ;;  %3013 = vmatpush.bf16.msrb.mxu0 %v6517_v5  ;;  %v1395_v31 = vpop.f32.mrf.mxu3  ;;  %v7179_v5 = vor.u32 %v5997_v36, %v5338_v6  ;;  %v1643_v53 = vpop.f32.mrf.mxu0  ;;  %v208_v36 = vadd.s32 4294967295, %v6943_v14  ;;  %v7856_v6 = vperm.slane %v7093_v13, 2  ;;  %v8040_v13 = vld [vmem:[#allocation66_spill] sm:$0xff] }
 0x19f   :  { %2740 = vmatmul.bf16.vlgmr.msra.gmra.mxu3 %v6639_v57  ;;  %v1410_v58 = vadd.f32 %v1409_v48, %v1395_v31 }
 0x1a0   :  { %2975 = vmatpush.bf16.msrb.mxu3 %v7141_v40  ;;  %2961 = vmatpush.bf16.msrb.mxu1 %v7150_v52  ;;  %vm210_vm8 = vcmp.ge.s32.totalorder %v208_v36, 0  ;;  %v8012_v36 = vld [vmem:[#allocation38_spill] sm:$0xff] }
 0x1a1   :  { %v1427_v51 = vrot.slane %v1410_v58, 1  ;;  %v8005_v58 = vld [vmem:[#allocation24_spill] sm:$0xff] }
 0x1a2   :  { %3028 = vmatpush.bf16.msrb.mxu2 %v6484_v43  ;;  %3014 = vmatpush.bf16.msrb.mxu0 %v6527_v37  ;;  %v7183_v43 = vor.u32 %v6011_v10, %v5394_v49  ;;  %v7997_v37 = vld [vmem:[#allocation20_spill] sm:$0xff]  ;;  %v1679_v10 = vrot.slane %v7173_v41, 6 }
 0x1a3   :  { %v1655_v50 = vpop.f32.mrf.mxu1 }
 0x1a4   :  { %2976 = vmatpush.bf16.msrb.mxu3 %v7157_v33  ;;  %2962 = vmatpush.bf16.msrb.mxu1 %v7169_v34 }
 0x1a6   :  { %3029 = vmatpush.bf16.msrb.mxu2 %v6503_v62  ;;  %3015 = vmatpush.bf16.msrb.mxu0 %v6539_v60  ;;  %v1397_v26 = vpop.f32.mrf.mxu3  ;;  %v7999_v62 = vld [vmem:[#allocation21_spill] sm:$0xff]  ;;  %v8001_v60 = vld [vmem:[#allocation27_spill] sm:$0xff]  ;;  %v1852_v49 = vpop.f32.mrf.mxu0 }
 0x1a7   :  { %v7191_v32 = vadd.f32 %v1411_v11, %v1397_v26  ;;  %v8006_v11 = vld [vmem:[#allocation34_spill] sm:$0xff]  ;;  %v8007_v26 = vld [vmem:[#allocation35_spill] sm:$0xff] }
 0x1a8   :  { %2977 = vmatpush.bf16.msrb.mxu3 %v7175_v56  ;;  %2963 = vmatpush.bf16.msrb.mxu1 %v7179_v5 }
 0x1a9   :  { %7998 = vst [vmem:[#allocation20_spill] sm:$0xff] %v7191_v32  ;;  %v7857_v48 = vrot.slane %v7191_v32, 1 }
 0x1aa   :  { %3030 = vmatpush.bf16.msrb.mxu2 %v7997_v37  ;;  %3016 = vmatpush.bf16.msrb.mxu0 %v8001_v60  ;;  %v8008_v37 = vld [vmem:[#allocation25_spill] sm:$0xff] }
 0x1ab   :  { %v1429_v3 = vsel %vm1420_vm4, %v1427_v51, %v7857_v48  ;;  %v1866_v51 = vpop.f32.mrf.mxu2 }
 0x1ac   :  { %2978 = vmatpush.bf16.msrb.mxu3 %v7183_v43  ;;  %2964 = vmatpush.bf16.msrb.mxu1 %v7187_v63  ;;  %v1441_v31 = vmul.f32 %v7006_v23, %v1429_v3  ;;  %v1644_v3 = vadd.f32 %v1643_v53, %v1629_v0  ;;  %v8015_v53 = vld [vmem:[#allocation29_spill] sm:$0xff]  ;;  %v209_v0 = vadd.s32 4294967295, %v6945_v45 }
 0x1ad   :  { %3017 = vmatmul.bf16.vlgmr.msrb.gmra.mxu0 %v6639_v57  ;;  %5424 = vmatmul.msk.bf16.vlgmr.msrb.gmra.mxu2 %vm722_vm1, %v6643_v8 }
 0x1ae   :  { %3085 = vmatpush.bf16.msra.mxu2 %v8000_v30  ;;  %3103 = vmatpush.bf16.msra.mxu0 %v8003_v4  ;;  %v1447_v21 = vadd.f32 %v1441_v31, %v6976_v46  ;;  %v1669_v41 = vpop.f32.mrf.mxu3  ;;  %v1689_v46 = vsel %vm1678_vm6, 0.0, %v1679_v10  ;;  %v197_v4 = vadd.s32 4294967294, %v6945_v45  ;;  %v7230_v31 = vsel %vm198_vm7, 1.0, %v8011_v35 }
 0x1af   :  { %2965 = vmatmul.bf16.vlgmr.msrb.gmra.mxu1 %v6564_v29  ;;  %5423 = vmatmul.msk.bf16.vlgmr.msrb.gmra.mxu3 %vm722_vm1, %v6536_v47  ;;  %v7221_v30 = vadd.f32 %v1669_v41, %v1655_v50  ;;  %v8013_v50 = vld [vmem:[#allocation39_spill] sm:$0xff]  ;;  %vm211_vm11 = vcmp.ge.s32.totalorder %v209_v0, 0  ;;  %v8023_v0 = vld [vmem:[#allocation37_spill] sm:$0xff] }
 0x1b0   :  { %3037 = vmatpush.bf16.msra.mxu3 %v7999_v62  ;;  %3055 = vmatpush.bf16.msra.mxu1 %v8002_v19  ;;  %v8009_v62 = vld [vmem:[#allocation26_spill] sm:$0xff]  ;;  %v7225_v60 = vadd.f32 %v7856_v6, %v1447_v21  ;;  %v1867_v19 = vadd.f32 %v1866_v51, %v1852_v49  ;;  %v1691_v21 = vmul.f32 %v7230_v31, %v1689_v46  ;;  %v1681_v49 = vrot.slane %v1644_v3, 6  ;;  %v8018_v46 = vld [vmem:[#allocation32_spill] sm:$0xff] }
 0x1b1   :  { %vm199_vm10 = vcmp.ge.s32.totalorder %v197_v4, 0  ;;  %v8024_v6 = vld [vmem:[#allocation50_spill] sm:$0xff] }
 0x1b2   :  { %3086 = vmatpush.bf16.msra.mxu2 %v8005_v58  ;;  %3104 = vmatpush.bf16.msra.mxu0 %v8007_v26  ;;  %8010 = vst [vmem:[#allocation21_spill] sm:$0xff] %v7225_v60  ;;  %v1904_v58 = vrot.slane %v1867_v19, 7  ;;  %v1854_v19 = vpop.f32.mrf.mxu0  ;;  %v7250_v3 = vsel %vm199_vm10, 1.0, %v8011_v35  ;;  %v1682_v4 = vsel %vm1678_vm6, %v1679_v10, %v1681_v49  ;;  %v8025_v10 = vld [vmem:[#allocation51_spill] sm:$0xff] }
 0x1b4   :  { %3038 = vmatpush.bf16.msra.mxu3 %v8004_v55  ;;  %3056 = vmatpush.bf16.msra.mxu1 %v8006_v11  ;;  %v7233_v55 = vsel %vm210_vm8, 1.0, %v8011_v35  ;;  %v8014_v11 = vld [vmem:[#allocation28_spill] sm:$0xff]  ;;  %v1914_v26 = vsel %vm1903_vm9, 0.0, %v1904_v58 }
 0x1b5   :  { %v1916_v41 = vmul.f32 %v7233_v55, %v1914_v26 }
 0x1b6   :  { %3087 = vmatpush.bf16.msra.mxu2 %v8009_v62  ;;  %3105 = vmatpush.bf16.msra.mxu0 %v8013_v50  ;;  %v8017_v62 = vld [vmem:[#allocation43_spill] sm:$0xff]  ;;  %v1868_v50 = vpop.f32.mrf.mxu2 }
 0x1b7   :  { %v7245_v51 = vadd.f32 %v1916_v41, %v1691_v21  ;;  %v1869_v26 = vadd.f32 %v1868_v50, %v1854_v19  ;;  %v7256_v21 = vsel %vm211_vm11, 1.0, %v8011_v35  ;;  %v8026_v19 = vld [vmem:[#allocation40_spill] sm:$0xff]  ;;  %v8027_v50 = vld [vmem:[#allocation41_spill] sm:$0xff] }
 0x1b8   :  { %3039 = vmatpush.bf16.msra.mxu3 %v8008_v37  ;;  %3057 = vmatpush.bf16.msra.mxu1 %v8012_v36  ;;  %v8016_v37 = vld [vmem:[#allocation42_spill] sm:$0xff]  ;;  %v8019_v36 = vld [vmem:[#allocation33_spill] sm:$0xff]  ;;  %v8042_v35 = vld [vmem:[#allocation56_spill] sm:$0xff] }
 0x1b9   :  { %v1906_v41 = vrot.slane %v1869_v26, 7  ;;  %v8031_v26 = vld [vmem:[#allocation47_spill] sm:$0xff] }
 0x1ba   :  { %3088 = vmatpush.bf16.msra.mxu2 %v8015_v53  ;;  %3106 = vmatpush.bf16.msra.mxu0 %v8017_v62  ;;  %v8021_v53 = vld [vmem:[#allocation45_spill] sm:$0xff]  ;;  %v1657_v62 = vpop.f32.mrf.mxu1 }
 0x1bc   :  { %3040 = vmatpush.bf16.msra.mxu3 %v8014_v11  ;;  %3058 = vmatpush.bf16.msra.mxu1 %v8016_v37  ;;  %v8020_v11 = vld [vmem:[#allocation44_spill] sm:$0xff]  ;;  %v1693_v37 = vmul.f32 %v7250_v3, %v1682_v4 }
 0x1bd   :  { %5426 = vmatmul.msk.bf16.vlgmr.msra.gmra.mxu0 %vm722_vm1, %v6536_v47 }
 0x1be   :  { %3089 = vmatpush.bf16.msra.mxu2 %v8019_v36  ;;  %3165 = vmatpush.bf16.msrb.mxu0 %v8021_v53  ;;  %v1907_v36 = vsel %vm1903_vm9, %v1904_v58, %v1906_v41  ;;  %v8028_v58 = vld [vmem:[#allocation54_spill] sm:$0xff] }
 0x1bf   :  { %v1918_v49 = vmul.f32 %v7256_v21, %v1907_v36  ;;  %5425 = vmatmul.msk.bf16.vlgmr.msra.gmra.mxu1 %vm722_vm1, %v6643_v8  ;;  %v8030_v53 = vld [vmem:[#allocation46_spill] sm:$0xff]  ;;  %v2092_v36 = vpop.f32.mrf.mxu0 }
 0x1c0   :  { %3041 = vmatpush.bf16.msra.mxu3 %v8018_v46  ;;  %3113 = vmatpush.bf16.msrb.mxu1 %v8020_v11  ;;  %v8022_v46 = vld [vmem:[#allocation36_spill] sm:$0xff]  ;;  %v1671_v11 = vpop.f32.mrf.mxu3 }
 0x1c1   :  { %v7271_v4 = vadd.f32 %v1918_v49, %v1693_v37  ;;  %v1680_v37 = vrot.slane %v7221_v30, 6  ;;  %v8036_v49 = vld [vmem:[#allocation62_spill] sm:$0xff]  ;;  %v8041_v30 = vld [vmem:[#allocation67_spill] sm:$0xff] }
 0x1c2   :  { %3090 = vmatpush.bf16.msra.mxu2 %v8023_v0  ;;  %3166 = vmatpush.bf16.msrb.mxu0 %v8025_v10  ;;  %v1894_v41 = vpop.f32.mrf.mxu1  ;;  %v8033_v0 = vld [vmem:[#allocation59_spill] sm:$0xff]  ;;  %v8034_v10 = vld [vmem:[#allocation48_spill] sm:$0xff] }
 0x1c4   :  { %3042 = vmatpush.bf16.msra.mxu3 %v8022_v46  ;;  %3114 = vmatpush.bf16.msrb.mxu1 %v8024_v6  ;;  %v8029_v6 = vld [vmem:[#allocation55_spill] sm:$0xff]  ;;  %v8032_v46 = vld [vmem:[#allocation58_spill] sm:$0xff] }
 0x1c6   :  { %3091 = vmatpush.bf16.msra.mxu2 %v8027_v50  ;;  %3167 = vmatpush.bf16.msrb.mxu0 %v8029_v6  ;;  %v8037_v50 = vld [vmem:[#allocation63_spill] sm:$0xff]  ;;  %v2078_v6 = vpop.f32.mrf.mxu2 }
 0x1c8   :  { %3043 = vmatpush.bf16.msra.mxu3 %v8026_v19  ;;  %3115 = vmatpush.bf16.msrb.mxu1 %v8028_v58  ;;  %v8035_v19 = vld [vmem:[#allocation49_spill] sm:$0xff]  ;;  %v1880_v58 = vpop.f32.mrf.mxu3 }
 0x1ca   :  { %3092 = vmatpush.bf16.msra.mxu2 %v8031_v26  ;;  %3168 = vmatpush.bf16.msrb.mxu0 %v8033_v0  ;;  %v8039_v26 = vld [vmem:[#allocation53_spill] sm:$0xff]  ;;  %v2093_v0 = vadd.f32 %v2092_v36, %v2078_v6  ;;  %v1896_v32 = vpop.f32.mrf.mxu1  ;;  %v8044_v6 = vld [vmem:[#allocation70_spill] sm:$0xff] }
 0x1cc   :  { %3044 = vmatpush.bf16.msra.mxu3 %v8030_v53  ;;  %3116 = vmatpush.bf16.msrb.mxu1 %v8032_v46  ;;  %v8038_v53 = vld [vmem:[#allocation52_spill] sm:$0xff]  ;;  %v1895_v46 = vadd.f32 %v1894_v41, %v1880_v58  ;;  %v2129_v60 = vrot.slane %v2093_v0, 7  ;;  %v2094_v58 = vpop.f32.mrf.mxu0 }
 0x1cd   :  { %3093 = vmatmul.bf16.vlgmr.msra.gmra.mxu2 %v6564_v29 }
 0x1ce   :  { %3183 = vmatpush.bf16.msrb.mxu2 %v8035_v19  ;;  %3169 = vmatpush.bf16.msrb.mxu0 %v8037_v50  ;;  %v1672_v19 = vadd.f32 %v1671_v11, %v1657_v62  ;;  %v1905_v48 = vrot.slane %v1895_v46, 7  ;;  %v2139_v50 = vsel %vm1903_vm9, 0.0, %v2129_v60  ;;  %v2080_v0 = vpop.f32.mrf.mxu2 }
 0x1cf   :  { %3045 = vmatmul.bf16.vlgmr.msra.gmra.mxu3 %v6639_v57  ;;  %v2141_v62 = vmul.f32 %v7233_v55, %v2139_v50  ;;  %v8049_v50 = vld [vmem:[#allocation65_spill] sm:$0xff] }
 0x1d0   :  { %3131 = vmatpush.bf16.msrb.mxu3 %v8034_v10  ;;  %3117 = vmatpush.bf16.msrb.mxu1 %v8036_v49  ;;  %v1690_v10 = vsel %vm1678_vm6, 0.0, %v1680_v37  ;;  %v1915_v49 = vsel %vm1903_vm9, 0.0, %v1905_v48  ;;  %v1683_v11 = vrot.slane %v1672_v19, 6  ;;  %v1882_v46 = vpop.f32.mrf.mxu3 }
 0x1d1   :  { %v1692_v41 = vmul.f32 %v7230_v31, %v1690_v10  ;;  %v1917_v36 = vmul.f32 %v7233_v55, %v1915_v49  ;;  %v1897_v31 = vadd.f32 %v1896_v32, %v1882_v46  ;;  %v2095_v10 = vadd.f32 %v2094_v58, %v2080_v0  ;;  %v8048_v49 = vld [vmem:[#allocation64_spill] sm:$0xff]  ;;  %v8053_v32 = vld [vmem:[#allocation79_spill] sm:$0xff] }
 0x1d2   :  { %3184 = vmatpush.bf16.msrb.mxu2 %v8039_v26  ;;  %3170 = vmatpush.bf16.msrb.mxu0 %v8041_v30  ;;  %v8045_v26 = vld [vmem:[#allocation71_spill] sm:$0xff]  ;;  %v2145_v30 = vadd.f32 %v2141_v62, %v7245_v51  ;;  %v1684_v19 = vsel %vm1678_vm6, %v1680_v37, %v1683_v11  ;;  %v8054_v0 = vld [vmem:[#allocation68_spill] sm:$0xff]  ;;  %v8055_v37 = vld [vmem:[#allocation69_spill] sm:$0xff] }
 0x1d3   :  { %v1694_v58 = vmul.f32 %v7250_v3, %v1684_v19  ;;  %v8056_v3 = vld [vmem:[#allocation82_spill] sm:$0xff]  ;;  %v8059_v19 = vld [vmem:[#allocation73_spill] sm:$0xff] }
 0x1d4   :  { %3132 = vmatpush.bf16.msrb.mxu3 %v8038_v53  ;;  %3118 = vmatpush.bf16.msrb.mxu1 %v8040_v13  ;;  %v8043_v53 = vld [vmem:[#allocation57_spill] sm:$0xff]  ;;  %v1921_v13 = vadd.f32 %v1917_v36, %v1692_v41  ;;  %v1908_v41 = vrot.slane %v1897_v31, 7  ;;  %v2131_v36 = vrot.slane %v2095_v10, 7  ;;  %v8057_v31 = vld [vmem:[#allocation83_spill] sm:$0xff] }
 0x1d6   :  { %3185 = vmatpush.bf16.msrb.mxu2 %v8043_v53  ;;  %3171 = vmatpush.bf16.msrb.mxu0 %v8045_v26  ;;  %v8047_v53 = vld [vmem:[#allocation61_spill] sm:$0xff]  ;;  %v8051_v26 = vld [vmem:[#allocation75_spill] sm:$0xff]  ;;  %v1909_v51 = vsel %vm1903_vm9, %v1905_v48, %v1908_v41  ;;  %v2132_v62 = vsel %vm1903_vm9, %v2129_v60, %v2131_v36  ;;  %v2317_v36 = vpop.f32.mrf.mxu2 }
 0x1d7   :  { %v1919_v46 = vmul.f32 %v7256_v21, %v1909_v51  ;;  %v2143_v11 = vmul.f32 %v7256_v21, %v2132_v62  ;;  %v8060_v62 = vld [vmem:[#allocation86_spill] sm:$0xff] }
 0x1d8   :  { %3133 = vmatpush.bf16.msrb.mxu3 %v8042_v35  ;;  %3119 = vmatpush.bf16.msrb.mxu1 %v8044_v6  ;;  %v8046_v35 = vld [vmem:[#allocation60_spill] sm:$0xff]  ;;  %v8050_v6 = vld [vmem:[#allocation74_spill] sm:$0xff]  ;;  %v2120_v10 = vpop.f32.mrf.mxu3 }
 0x1d9   :  { %v7324_v48 = vadd.f32 %v2143_v11, %v7271_v4  ;;  %v1923_v60 = vadd.f32 %v1919_v46, %v1694_v58  ;;  %v8061_v4 = vld [vmem:[#allocation87_spill] sm:$0xff]  ;;  %v8063_v58 = vld [vmem:[#allocation77_spill] sm:$0xff] }
 0x1da   :  { %3186 = vmatpush.bf16.msrb.mxu2 %v8047_v53  ;;  %3172 = vmatpush.bf16.msrb.mxu0 %v8051_v26  ;;  %v2106_v53 = vpop.f32.mrf.mxu1  ;;  %v8065_v11 = vld [vmem:[#allocation91_spill] sm:$0xff] }
 0x1db   :  { %v2121_v41 = vadd.f32 %v2120_v10, %v2106_v53 }
 0x1dc   :  { %3134 = vmatpush.bf16.msrb.mxu3 %v8046_v35  ;;  %3120 = vmatpush.bf16.msrb.mxu1 %v8050_v6  ;;  %v8052_v35 = vld [vmem:[#allocation78_spill] sm:$0xff] }
 0x1dd   :  { %3173 = vmatmul.bf16.vlgmr.msrb.gmra.mxu0 %v6639_v57  ;;  %5428 = vmatmul.msk.bf16.vlgmr.msrb.gmra.mxu2 %vm722_vm1, %v6643_v8  ;;  %v2130_v26 = vrot.slane %v2121_v41, 7 }
 0x1de   :  { %3225 = vmatpush.bf16.msra.mxu2 %v8049_v50  ;;  %3243 = vmatpush.bf16.msra.mxu0 %v8053_v32  ;;  %v8058_v50 = vld [vmem:[#allocation72_spill] sm:$0xff] }
 0x1df   :  { %3121 = vmatmul.bf16.vlgmr.msrb.gmra.mxu1 %v6564_v29  ;;  %5427 = vmatmul.msk.bf16.vlgmr.msrb.gmra.mxu3 %vm722_vm1, %v6536_v47  ;;  %v8062_v32 = vld [vmem:[#allocation76_spill] sm:$0xff] }
 0x1e0   :  { %3193 = vmatpush.bf16.msra.mxu3 %v8048_v49  ;;  %3211 = vmatpush.bf16.msra.mxu1 %v8052_v35  ;;  %v2303_v49 = vpop.f32.mrf.mxu0  ;;  %v2140_v35 = vsel %vm1903_vm9, 0.0, %v2130_v26  ;;  %v2122_v53 = vpop.f32.mrf.mxu3 }
 0x1e1   :  { %v2318_v6 = vadd.f32 %v2317_v36, %v2303_v49  ;;  %v2142_v46 = vmul.f32 %v7233_v55, %v2140_v35  ;;  %v8068_v49 = vld [vmem:[#allocation92_spill] sm:$0xff] }
 0x1e2   :  { %3226 = vmatpush.bf16.msra.mxu2 %v8055_v37  ;;  %3244 = vmatpush.bf16.msra.mxu0 %v8057_v31  ;;  %v8064_v37 = vld [vmem:[#allocation90_spill] sm:$0xff]  ;;  %v8067_v31 = vld [vmem:[#allocation81_spill] sm:$0xff] }
 0x1e3   :  { %v2350_v51 = vadd.f32 %v2318_v6, %v2145_v30  ;;  %v8066_v30 = vld [vmem:[#allocation80_spill] sm:$0xff] }
 0x1e4   :  { %3194 = vmatpush.bf16.msra.mxu3 %v8054_v0  ;;  %3212 = vmatpush.bf16.msra.mxu1 %v8056_v3  ;;  %v2108_v0 = vpop.f32.mrf.mxu1  ;;  %v2146_v3 = vadd.f32 %v2142_v46, %v1921_v13  ;;  %v8070_v6 = vld [vmem:[#allocation84_spill] sm:$0xff]  ;;  %v8073_v13 = vld [vmem:[#allocation99_spill] sm:$0xff]  ;;  %v7358_v46 = vpop.f32.mrf.mxu2 }
 0x1e5   :  { %v2123_v10 = vadd.f32 %v2122_v53, %v2108_v0  ;;  %v8076_v0 = vld [vmem:[#allocation102_spill] sm:$0xff]  ;;  %v8079_v53 = vld [vmem:[#allocation95_spill] sm:$0xff] }
 0x1e6   :  { %3227 = vmatpush.bf16.msra.mxu2 %v8059_v19  ;;  %3245 = vmatpush.bf16.msra.mxu0 %v8061_v4  ;;  %v8072_v4 = vld [vmem:[#allocation98_spill] sm:$0xff] }
 0x1e7   :  { %v2133_v19 = vrot.slane %v2123_v10, 7  ;;  %v8082_v10 = vld [vmem:[#allocation96_spill] sm:$0xff] }
 0x1e8   :  { %3195 = vmatpush.bf16.msra.mxu3 %v8058_v50  ;;  %3213 = vmatpush.bf16.msra.mxu1 %v8060_v62  ;;  %v8069_v50 = vld [vmem:[#allocation93_spill] sm:$0xff]  ;;  %v7342_v41 = vpop.f32.mrf.mxu0 }
 0x1e9   :  { %v2134_v36 = vsel %vm1903_vm9, %v2130_v26, %v2133_v19  ;;  %v8071_v62 = vld [vmem:[#allocation85_spill] sm:$0xff]  ;;  %v8084_v19 = vld [vmem:[#allocation110_spill] sm:$0xff] }
 0x1ea   :  { %3228 = vmatpush.bf16.msra.mxu2 %v8063_v58  ;;  %3246 = vmatpush.bf16.msra.mxu0 %v8065_v11  ;;  %v2144_v35 = vmul.f32 %v7256_v21, %v2134_v36  ;;  %v8074_v58 = vld [vmem:[#allocation88_spill] sm:$0xff]  ;;  %v8075_v26 = vld [vmem:[#allocation89_spill] sm:$0xff]  ;;  %v8078_v11 = vld [vmem:[#allocation94_spill] sm:$0xff] }
 0x1eb   :  { %v8085_v36 = vld [vmem:[#allocation111_spill] sm:$0xff] }
 0x1ec   :  { %3196 = vmatpush.bf16.msra.mxu3 %v8062_v32  ;;  %3214 = vmatpush.bf16.msra.mxu1 %v8064_v37  ;;  %v7354_v32 = vadd.f32 %v2144_v35, %v1923_v60  ;;  %v8077_v37 = vld [vmem:[#allocation103_spill] sm:$0xff] }
 0x1ed   :  { %5430 = vmatmul.msk.bf16.vlgmr.msra.gmra.mxu0 %vm722_vm1, %v6536_v47 }
 0x1ee   :  { %3229 = vmatpush.bf16.msra.mxu2 %v8067_v31  ;;  %3285 = vmatpush.bf16.msrb.mxu0 %v8069_v50  ;;  %v8081_v31 = vld [vmem:[#allocation107_spill] sm:$0xff]  ;;  %v2345_v50 = vpop.f32.mrf.mxu1 }
 0x1ef   :  { %5429 = vmatmul.msk.bf16.vlgmr.msra.gmra.mxu1 %vm722_vm1, %v6643_v8 }
 0x1f0   :  { %3197 = vmatpush.bf16.msra.mxu3 %v8066_v30  ;;  %3253 = vmatpush.bf16.msrb.mxu1 %v8068_v49  ;;  %v8080_v30 = vld [vmem:[#allocation106_spill] sm:$0xff]  ;;  %v2522_v60 = vpop.f32.mrf.mxu0  ;;  %v8083_v49 = vld [vmem:[#allocation97_spill] sm:$0xff] }
 0x1f2   :  { %3230 = vmatpush.bf16.msra.mxu2 %v8071_v62  ;;  %3286 = vmatpush.bf16.msrb.mxu0 %v8073_v13  ;;  %v2508_v62 = vpop.f32.mrf.mxu2  ;;  %v8087_v13 = vld [vmem:[#allocation101_spill] sm:$0xff] }
 0x1f4   :  { %3198 = vmatpush.bf16.msra.mxu3 %v8070_v6  ;;  %3254 = vmatpush.bf16.msrb.mxu1 %v8072_v4  ;;  %v2331_v6 = vpop.f32.mrf.mxu3  ;;  %v8086_v4 = vld [vmem:[#allocation100_spill] sm:$0xff] }
 0x1f5   :  { %v2346_v35 = vadd.f32 %v2345_v50, %v2331_v6  ;;  %v8097_v6 = vld [vmem:[#allocation113_spill] sm:$0xff] }
 0x1f6   :  { %3231 = vmatpush.bf16.msra.mxu2 %v8075_v26  ;;  %3287 = vmatpush.bf16.msrb.mxu0 %v8077_v37  ;;  %v8088_v37 = vld [vmem:[#allocation114_spill] sm:$0xff] }
 0x1f7   :  { %v2351_v26 = vadd.f32 %v2346_v35, %v2146_v3  ;;  %v8095_v3 = vld [vmem:[#allocation109_spill] sm:$0xff] }
 0x1f8   :  { %3199 = vmatpush.bf16.msra.mxu3 %v8074_v58  ;;  %3255 = vmatpush.bf16.msrb.mxu1 %v8076_v0  ;;  %v2523_v58 = vadd.f32 %v2522_v60, %v2508_v62  ;;  %v7384_v60 = vpop.f32.mrf.mxu1  ;;  %v8098_v62 = vld [vmem:[#allocation123_spill] sm:$0xff]  ;;  %v8101_v35 = vld [vmem:[#allocation129_spill] sm:$0xff] }
 0x1fa   :  { %3232 = vmatpush.bf16.msra.mxu2 %v8079_v53  ;;  %3288 = vmatpush.bf16.msrb.mxu0 %v8081_v31  ;;  %v7374_v0 = vadd.f32 %v2523_v58, %v2350_v51  ;;  %v8090_v53 = vld [vmem:[#allocation104_spill] sm:$0xff]  ;;  %v2524_v31 = vpop.f32.mrf.mxu0  ;;  %v2510_v50 = vpop.f32.mrf.mxu2 }
 0x1fb   :  { %v8094_v51 = vld [vmem:[#allocation108_spill] sm:$0xff] }
 0x1fc   :  { %3200 = vmatpush.bf16.msra.mxu3 %v8078_v11  ;;  %3256 = vmatpush.bf16.msrb.mxu1 %v8080_v30  ;;  %v8089_v11 = vld [vmem:[#allocation115_spill] sm:$0xff]  ;;  %v8091_v30 = vld [vmem:[#allocation105_spill] sm:$0xff]  ;;  %v8102_v58 = vld [vmem:[#allocation116_spill] sm:$0xff] }
 0x1fd   :  { %3233 = vmatmul.bf16.vlgmr.msra.gmra.mxu2 %v6564_v29 }
 0x1fe   :  { %3303 = vmatpush.bf16.msrb.mxu2 %v8083_v49  ;;  %3289 = vmatpush.bf16.msrb.mxu0 %v8085_v36  ;;  %v8093_v49 = vld [vmem:[#allocation120_spill] sm:$0xff] }
 0x1ff   :  { %3201 = vmatmul.bf16.vlgmr.msra.gmra.mxu3 %v6639_v57  ;;  %v8096_v36 = vld [vmem:[#allocation112_spill] sm:$0xff] }
 0x200   :  { %3271 = vmatpush.bf16.msrb.mxu3 %v8082_v10  ;;  %3257 = vmatpush.bf16.msrb.mxu1 %v8084_v19  ;;  %v8092_v10 = vld [vmem:[#allocation119_spill] sm:$0xff]  ;;  %v7382_v19 = vpop.f32.mrf.mxu3 }
 0x202   :  { %3304 = vmatpush.bf16.msrb.mxu2 %v8087_v13  ;;  %3290 = vmatpush.bf16.msrb.mxu0 %v8089_v11  ;;  %v8100_v13 = vld [vmem:[#allocation128_spill] sm:$0xff]  ;;  %v2713_v11 = vpop.f32.mrf.mxu0 }
 0x204   :  { %3272 = vmatpush.bf16.msrb.mxu3 %v8086_v4  ;;  %3258 = vmatpush.bf16.msrb.mxu1 %v8088_v37  ;;  %v8099_v4 = vld [vmem:[#allocation124_spill] sm:$0xff]  ;;  %v8103_v37 = vld [vmem:[#allocation117_spill] sm:$0xff] }
 0x206   :  { %3305 = vmatpush.bf16.msrb.mxu2 %v8091_v30  ;;  %3291 = vmatpush.bf16.msrb.mxu0 %v8093_v49  ;;  %v8104_v30 = vld [vmem:[#allocation132_spill] sm:$0xff] }
 0x208   :  { %3273 = vmatpush.bf16.msrb.mxu3 %v8090_v53  ;;  %3259 = vmatpush.bf16.msrb.mxu1 %v8092_v10  ;;  %v2536_v53 = vpop.f32.mrf.mxu1  ;;  %v8105_v10 = vld [vmem:[#allocation133_spill] sm:$0xff]  ;;  %v2550_v49 = vpop.f32.mrf.mxu3 }
 0x20a   :  { %3306 = vmatpush.bf16.msrb.mxu2 %v8095_v3  ;;  %3292 = vmatpush.bf16.msrb.mxu0 %v8099_v4  ;;  %v8107_v3 = vld [vmem:[#allocation122_spill] sm:$0xff] }
 0x20c   :  { %3274 = vmatpush.bf16.msrb.mxu3 %v8094_v51  ;;  %3260 = vmatpush.bf16.msrb.mxu1 %v8098_v62  ;;  %v8106_v51 = vld [vmem:[#allocation121_spill] sm:$0xff] }
 0x20d   :  { %3293 = vmatmul.bf16.vlgmr.msrb.gmra.mxu0 %v6639_v57  ;;  %5432 = vmatmul.msk.bf16.vlgmr.msrb.gmra.mxu2 %vm722_vm1, %v6643_v8 }
 0x20e   :  { %3365 = vmatpush.bf16.msra.mxu2 %v8097_v6  ;;  %3383 = vmatpush.bf16.msra.mxu0 %v8101_v35  ;;  %v2727_v6 = vpop.f32.mrf.mxu2  ;;  %v8109_v35 = vld [vmem:[#allocation125_spill] sm:$0xff] }
 0x20f   :  { %3261 = vmatmul.bf16.vlgmr.msrb.gmra.mxu1 %v6564_v29  ;;  %5431 = vmatmul.msk.bf16.vlgmr.msrb.gmra.mxu3 %vm722_vm1, %v6536_v47  ;;  %v2728_v62 = vadd.f32 %v2727_v6, %v2713_v11  ;;  %v8115_v6 = vld [vmem:[#allocation134_spill] sm:$0xff] }
 0x210   :  { %3313 = vmatpush.bf16.msra.mxu3 %v8096_v36  ;;  %3331 = vmatpush.bf16.msra.mxu1 %v8100_v13  ;;  %v2551_v36 = vadd.f32 %v2550_v49, %v2536_v53  ;;  %v8108_v13 = vld [vmem:[#allocation136_spill] sm:$0xff]  ;;  %v2715_v53 = vpop.f32.mrf.mxu0 }
 0x212   :  { %3366 = vmatpush.bf16.msra.mxu2 %v8103_v37  ;;  %3384 = vmatpush.bf16.msra.mxu0 %v8105_v10  ;;  %v7406_v4 = vadd.f32 %v2551_v36, %v2351_v26  ;;  %v2320_v37 = vadd.f32 %v7358_v46, %v7342_v41  ;;  %v8112_v26 = vld [vmem:[#allocation131_spill] sm:$0xff]  ;;  %v8114_v10 = vld [vmem:[#allocation140_spill] sm:$0xff] }
 0x213   :  { %v8116_v41 = vld [vmem:[#allocation135_spill] sm:$0xff] }
 0x214   :  { %3314 = vmatpush.bf16.msra.mxu3 %v8102_v58  ;;  %3332 = vmatpush.bf16.msra.mxu1 %v8104_v30  ;;  %v8110_v58 = vld [vmem:[#allocation126_spill] sm:$0xff] }
 0x215   :  { %v8111_v30 = vld [vmem:[#allocation130_spill] sm:$0xff] }
 0x216   :  { %3367 = vmatpush.bf16.msra.mxu2 %v8107_v3  ;;  %3385 = vmatpush.bf16.msra.mxu0 %v8108_v13  ;;  %v2729_v11 = vpop.f32.mrf.mxu2  ;;  %v2764_v3 = vrot.slane %v2728_v62, 1 }
 0x217   :  { %v2730_v49 = vadd.f32 %v2729_v11, %v2715_v53  ;;  %v2552_v53 = vpop.f32.mrf.mxu3  ;;  %v8122_v11 = vld [vmem:[#allocation143_spill] sm:$0xff] }
 0x218   :  { %3315 = vmatpush.bf16.msra.mxu3 %v8106_v51  ;;  %3333 = vmatpush.bf16.msra.mxu1 %v6957_v20  ;;  %v8113_v20 = vld [vmem:[#allocation139_spill] sm:$0xff]  ;;  %v2525_v51 = vadd.f32 %v2524_v31, %v2510_v50 }
 0x219   :  { %v2765_v36 = vrot.slane %v2730_v49, 1  ;;  %v8124_v49 = vld [vmem:[#allocation145_spill] sm:$0xff] }
 0x21a   :  { %3368 = vmatpush.bf16.msra.mxu2 %v8110_v58  ;;  %3386 = vmatpush.bf16.msra.mxu0 %v6970_v27  ;;  %v2538_v27 = vpop.f32.mrf.mxu1 }
 0x21b   :  { %v2766_v46 = vsel %vm1420_vm4, %v2764_v3, %v2765_v36  ;;  %v2774_v13 = vsel %vm1420_vm4, %v2765_v36, 0.0  ;;  %v8125_v3 = vld [vmem:[#allocation148_spill] sm:$0xff]  ;;  %v8126_v36 = vld [vmem:[#allocation149_spill] sm:$0xff] }
 0x21c   :  { %3316 = vmatpush.bf16.msra.mxu3 %v8109_v35  ;;  %3334 = vmatpush.bf16.msra.mxu1 %v6968_v1  ;;  %v2352_v1 = vadd.f32 %v2320_v37, %v7324_v48  ;;  %v8117_v35 = vld [vmem:[#allocation147_spill] sm:$0xff]  ;;  %v2776_v31 = vmul.f32 %v7006_v23, %v2766_v46  ;;  %v2778_v50 = vmul.f32 %v7010_v42, %v2774_v13  ;;  %v8118_v37 = vld [vmem:[#allocation137_spill] sm:$0xff] }
 0x21d   :  { %5434 = vmatmul.msk.bf16.vlgmr.msra.gmra.mxu0 %vm722_vm1, %v6536_v47  ;;  %v2553_v46 = vadd.f32 %v2552_v53, %v2538_v27 }
 0x21e   :  { %3369 = vmatpush.bf16.msra.mxu2 %v8112_v26  ;;  %3445 = vmatpush.bf16.msrb.mxu0 %v8114_v10  ;;  %v2557_v58 = vadd.f32 %v2525_v51, %v2352_v1  ;;  %v7434_v48 = vadd.f32 %v2776_v31, %v7374_v0  ;;  %v8121_v26 = vld [vmem:[#allocation141_spill] sm:$0xff]  ;;  %v8123_v10 = vld [vmem:[#allocation144_spill] sm:$0xff]  ;;  %v8127_v1 = vld [vmem:[#allocation151_spill] sm:$0xff] }
 0x21f   :  { %5433 = vmatmul.msk.bf16.vlgmr.msra.gmra.mxu1 %vm722_vm1, %v6643_v8 }
 0x220   :  { %3317 = vmatpush.bf16.msra.mxu3 %v8111_v30  ;;  %3393 = vmatpush.bf16.msrb.mxu1 %v8113_v20  ;;  %v7436_v62 = vadd.f32 %v2778_v50, %v2557_v58  ;;  %v8120_v30 = vld [vmem:[#allocation150_spill] sm:$0xff]  ;;  %v2952_v20 = vpop.f32.mrf.mxu0  ;;  %v2938_v51 = vpop.f32.mrf.mxu2  ;;  %v3526_v58 = vld [vmem:[%s7721_s9] sm:$0x3] }
 0x221   :  { %v7469_v50 = vperm.slane %v3526_v58, 0 }
 0x222   :  { %3370 = vmatpush.bf16.msra.mxu2 %v8116_v41  ;;  %3446 = vmatpush.bf16.msrb.mxu0 %v8117_v35  ;;  %v2755_v0 = vpop.f32.mrf.mxu1 }
 0x224   :  { %3318 = vmatpush.bf16.msra.mxu3 %v8115_v6  ;;  %3394 = vmatpush.bf16.msrb.mxu1 %v6998_v16  ;;  %v8119_v16 = vld [vmem:[#allocation138_spill] sm:$0xff]  ;;  %v8128_v6 = vld [vmem:[#allocation152_spill] sm:$0xff] }
 0x226   :  { %3371 = vmatpush.bf16.msra.mxu2 %v8119_v16  ;;  %3447 = vmatpush.bf16.msrb.mxu0 %v8120_v30 }
 0x228   :  { %3319 = vmatpush.bf16.msra.mxu3 %v8118_v37  ;;  %3395 = vmatpush.bf16.msrb.mxu1 %v7030_v38  ;;  %v2741_v38 = vpop.f32.mrf.mxu3  ;;  %v2954_v41 = vpop.f32.mrf.mxu0 }
 0x229   :  { %v2940_v35 = vpop.f32.mrf.mxu2 }
 0x22a   :  { %3372 = vmatpush.bf16.msra.mxu2 %v8122_v11  ;;  %3448 = vmatpush.bf16.msrb.mxu0 %v7058_v9  ;;  %v2953_v9 = vadd.f32 %v2952_v20, %v2938_v51 }
 0x22c   :  { %3320 = vmatpush.bf16.msra.mxu3 %v8121_v26  ;;  %3396 = vmatpush.bf16.msrb.mxu1 %v7056_v39  ;;  %v2756_v39 = vadd.f32 %v2755_v0, %v2741_v38 }
 0x22d   :  { %3373 = vmatmul.bf16.vlgmr.msra.gmra.mxu2 %v6564_v29 }
 0x22e   :  { %3463 = vmatpush.bf16.msrb.mxu2 %v8124_v49  ;;  %3449 = vmatpush.bf16.msrb.mxu0 %v7073_v17  ;;  %v2757_v17 = vpop.f32.mrf.mxu1 }
 0x22f   :  { %3321 = vmatmul.bf16.vlgmr.msra.gmra.mxu3 %v6639_v57 }
 0x230   :  { %3411 = vmatpush.bf16.msrb.mxu3 %v8123_v10  ;;  %3397 = vmatpush.bf16.msrb.mxu1 %v7071_v18  ;;  %v2348_v18 = vadd.f32 %v7384_v60, %v7382_v19  ;;  %v2743_v13 = vpop.f32.mrf.mxu3  ;;  %v2767_v60 = vrot.slane %v2756_v39, 1  ;;  %v3018_v0 = vpop.f32.mrf.mxu0 }
 0x231   :  { %v3032_v20 = vpop.f32.mrf.mxu2 }
 0x232   :  { %3464 = vmatpush.bf16.msrb.mxu2 %v8126_v36  ;;  %3450 = vmatpush.bf16.msrb.mxu0 %v7097_v28  ;;  %v2955_v28 = vadd.f32 %v2954_v41, %v2940_v35  ;;  %v2353_v19 = vadd.f32 %v2348_v18, %v7354_v32 }
 0x234   :  { %3412 = vmatpush.bf16.msrb.mxu3 %v8125_v3  ;;  %3398 = vmatpush.bf16.msrb.mxu1 %v7095_v7  ;;  %v2758_v7 = vadd.f32 %v2757_v17, %v2743_v13  ;;  %v2558_v31 = vadd.f32 %v2553_v46, %v2353_v19  ;;  %v7507_v17 = vperm.slane %v3526_v58, 1 }
 0x236   :  { %3465 = vmatpush.bf16.msrb.mxu2 %v8128_v6  ;;  %3451 = vmatpush.bf16.msrb.mxu0 %v7113_v22  ;;  %v2768_v27 = vrot.slane %v2758_v7, 1  ;;  %v2990_v22 = vrot.slane %v2955_v28, 1 }
 0x238   :  { %3413 = vmatpush.bf16.msrb.mxu3 %v8127_v1  ;;  %3399 = vmatpush.bf16.msrb.mxu1 %v7105_v59  ;;  %v2989_v59 = vrot.slane %v2953_v9, 1  ;;  %v2775_v37 = vsel %vm1420_vm4, %v2768_v27, 0.0  ;;  %v2999_v32 = vsel %vm1420_vm4, %v2990_v22, 0.0 }
 0x239   :  { %v2779_v16 = vmul.f32 %v7010_v42, %v2775_v37 }
 0x23a   :  { %3466 = vmatpush.bf16.msrb.mxu2 %v7066_v15  ;;  %3452 = vmatpush.bf16.msrb.mxu0 %v7135_v2  ;;  %v2991_v15 = vsel %vm1420_vm4, %v2989_v59, %v2990_v22  ;;  %v2966_v2 = vpop.f32.mrf.mxu1 }
 0x23b   :  { %v3001_v53 = vmul.f32 %v7006_v23, %v2991_v15  ;;  %v2783_v26 = vadd.f32 %v2779_v16, %v2558_v31 }
 0x23c   :  { %3414 = vmatpush.bf16.msrb.mxu3 %v7064_v25  ;;  %3400 = vmatpush.bf16.msrb.mxu1 %v7131_v44  ;;  %v2769_v25 = vsel %vm1420_vm4, %v2767_v60, %v2768_v27  ;;  %v3003_v44 = vmul.f32 %v7010_v42, %v2999_v32 }
 0x23d   :  { %3453 = vmatmul.bf16.vlgmr.msrb.gmra.mxu0 %v6639_v57  ;;  %5436 = vmatmul.msk.bf16.vlgmr.msrb.gmra.mxu2 %vm722_vm1, %v6643_v8 }
 0x23e   :  { %v3007_v11 = vadd.f32 %v3003_v44, %v7436_v62 }
 0x23f   :  { %3401 = vmatmul.bf16.vlgmr.msrb.gmra.mxu1 %v6564_v29  ;;  %5435 = vmatmul.msk.bf16.vlgmr.msrb.gmra.mxu3 %vm722_vm1, %v6536_v47 }
 0x240   :  { %3473 = vmatpush.bf16.msra.mxu3 %v7079_v24  ;;  %3491 = vmatpush.bf16.msra.mxu1 %v7141_v40  ;;  %v2777_v24 = vmul.f32 %v7006_v23, %v2769_v25  ;;  %v3005_v40 = vadd.f32 %v3001_v53, %v7434_v48  ;;  %v3534_v47 = vadd.f32 %v7469_v50, %v3007_v11 }
 0x241   :  { %v3033_v48 = vadd.f32 %v3032_v20, %v3018_v0 }
 0x242   :  { %v2781_v30 = vadd.f32 %v2777_v24, %v7406_v4  ;;  %v3532_v29 = vadd.f32 %v7469_v50, %v3005_v40  ;;  %v3538_v62 = vmax.f32 %v3534_v47, 0.0  ;;  %v2968_v38 = vpop.f32.mrf.mxu1 }
 0x243   :  { %v3069_v1 = vrot.slane %v3033_v48, 7 }
 0x244   :  { %3474 = vmatpush.bf16.msra.mxu3 %v7102_v61  ;;  %v2980_v61 = vpop.f32.mrf.mxu3  ;;  %3492 = vmatpush.bf16.msra.mxu1 %v7157_v33  ;;  %v3536_v10 = vmax.f32 %v3532_v29, 0.0  ;;  %v3020_v33 = vpop.f32.mrf.mxu0 }
 0x245   :  { %v2981_v4 = vadd.f32 %v2980_v61, %v2966_v2 }
 0x246   :  { %v7497_v49 = vpack.c.bf16 %v3538_v62, %v3536_v10 }
 0x247   :  { %v2992_v9 = vrot.slane %v2981_v4, 1 }
 0x248   :  { %3475 = vmatpush.bf16.msra.mxu3 %v7115_v12  ;;  %3493 = vmatpush.bf16.msra.mxu1 %v7175_v56  ;;  %v3034_v12 = vpop.f32.mrf.mxu2 }
 0x249   :  { %v3035_v39 = vadd.f32 %v3034_v12, %v3020_v33 }
 0x24a   :  { %v3060_v58 = vpop.f32.mrf.mxu1 }
 0x24b   :  { %v3071_v6 = vrot.slane %v3035_v39, 7 }
 0x24c   :  { %3476 = vmatpush.bf16.msra.mxu3 %v7139_v54  ;;  %v2982_v51 = vpop.f32.mrf.mxu3  ;;  %3494 = vmatpush.bf16.msra.mxu1 %v7183_v43  ;;  %v3108_v19 = vpop.f32.mrf.mxu0 }
 0x24d   :  { %v2983_v3 = vadd.f32 %v2982_v51, %v2968_v38 }
 0x24f   :  { %v2993_v36 = vrot.slane %v2983_v3, 1  ;;  %5437 = vmatmul.msk.bf16.vlgmr.msra.gmra.mxu1 %vm722_vm1, %v6643_v8 }
 0x250   :  { %3477 = vmatpush.bf16.msra.mxu3 %v7150_v52  ;;  %v3072_v52 = vsel %vm1903_vm9, %v3069_v1, %v3071_v6  ;;  %v3094_v8 = vpop.f32.mrf.mxu2 }
 0x251   :  { %v2994_v56 = vsel %vm1420_vm4, %v2992_v9, %v2993_v36  ;;  %v3000_v18 = vsel %vm1420_vm4, %v2993_v36, 0.0  ;;  %v3109_v27 = vadd.f32 %v3108_v19, %v3094_v8  ;;  %v3083_v11 = vmul.f32 %v7256_v21, %v3072_v52  ;;  %v6057_v19 = vld [vmem:[#allocation13 + $0x134] sm:$0xf] }
 0x252   :  { %v3002_v54 = vmul.f32 %v7006_v23, %v2994_v56  ;;  %v3004_v43 = vmul.f32 %v7010_v42, %v3000_v18 }
 0x253   :  { %v3145_v22 = vrot.slane %v3109_v27, 7 }
 0x254   :  { %3478 = vmatpush.bf16.msra.mxu3 %v7169_v34  ;;  %v3006_v41 = vadd.f32 %v3002_v54, %v2781_v30  ;;  %v3008_v46 = vadd.f32 %v3004_v43, %v2783_v26  ;;  %v3046_v60 = vpop.f32.mrf.mxu3  ;;  %v3110_v15 = vpop.f32.mrf.mxu0 }
 0x255   :  { %v3061_v59 = vadd.f32 %v3060_v58, %v3046_v60  ;;  %v3155_v31 = vsel %vm1903_vm9, 0.0, %v3145_v22  ;;  %v6058_v58 = vld [vmem:[#allocation13 + $0x134] sm:$0xf0] }
 0x256   :  { %v3533_v13 = vadd.f32 %v7507_v17, %v3006_v41  ;;  %v3535_v35 = vadd.f32 %v7507_v17, %v3008_v46  ;;  %v3157_v37 = vmul.f32 %v7233_v55, %v3155_v31  ;;  %v6055_v31 = vld [vmem:[#allocation13 + $0x124] sm:$0xf] }
 0x257   :  { %v3070_v44 = vrot.slane %v3061_v59, 7 }
 0x258   :  { %3479 = vmatpush.bf16.msra.mxu3 %v7179_v5  ;;  %v3537_v34 = vmax.f32 %v3533_v13, 0.0  ;;  %v3539_v7 = vmax.f32 %v3535_v35, 0.0  ;;  %v3079_v5 = vsel %vm1903_vm9, 0.0, %v3069_v1  ;;  %v3096_v24 = vpop.f32.mrf.mxu2 }
 0x259   :  { %v3081_v25 = vmul.f32 %v7233_v55, %v3079_v5  ;;  %v3080_v62 = vsel %vm1903_vm9, 0.0, %v3070_v44  ;;  %v5488_v5 = vld [vmem:[#allocation13 + $0x120] sm:$0xf] }
 0x25a   :  { %v7516_v28 = vpack.c.bf16 %v3539_v7, %v3537_v34  ;;  %v3082_v3 = vmul.f32 %v7233_v55, %v3080_v62  ;;  %v5496_v7 = vld [vmem:[#allocation13 + $0x130] sm:$0xf]  ;;  %v6050_v62 = vld [vmem:[#allocation13 + $0xf4] sm:$0xf0] }
 0x25b   :  { %v3161_v16 = vadd.f32 %v3157_v37, %v3081_v25  ;;  %v5497_v8 = vor.u32 %v6058_v58, %v5496_v7  ;;  %v5450_v58 = vld [vmem:[#allocation13 + $0xd8] sm:$0xf0] }
 0x25c   :  { %3480 = vmatpush.bf16.msra.mxu3 %v7187_v63  ;;  %v3062_v63 = vpop.f32.mrf.mxu1  ;;  %v3048_v32 = vpop.f32.mrf.mxu3 }
 0x25d   :  { %v3063_v53 = vadd.f32 %v3062_v63, %v3048_v32  ;;  %v3174_v4 = vpop.f32.mrf.mxu0  ;;  %3724 = vmatpush.bf16.msra.mxu2 %v5497_v8  ;;  %v5490_v63 = vld [vmem:[#allocation13 + $0x128] sm:$0xf0]  ;;  %v6054_v32 = vld [vmem:[#allocation13 + $0x114] sm:$0xf0] }
 0x25f   :  { %3481 = vmatmul.bf16.vlgmr.msra.gmra.mxu3 %v6639_v57  ;;  %v3111_v57 = vadd.f32 %v3110_v15, %v3096_v24  ;;  %v3073_v2 = vrot.slane %v3063_v53, 7  ;;  %v5480_v15 = vld [vmem:[#allocation13 + $0x110] sm:$0xf]  ;;  %v5493_v24 = vor.u32 %v6055_v31, %v5490_v63  ;;  %v5482_v53 = vld [vmem:[#allocation13 + $0x118] sm:$0xf0] }
 0x260   :  { %v3188_v48 = vpop.f32.mrf.mxu2  ;;  %v5626_v63 = vld [vmem:[#allocation13 + $0xb0] sm:$0xf] }
 0x261   :  { %v3147_v30 = vrot.slane %v3111_v57, 7  ;;  %v3074_v26 = vsel %vm1903_vm9, %v3070_v44, %v3073_v2  ;;  %v3189_v10 = vadd.f32 %v3188_v48, %v3174_v4  ;;  %v5481_v57 = vor.u32 %v6054_v32, %v5480_v15  ;;  %v6042_v15 = vld [vmem:[#allocation13 + $0xb4] sm:$0xf0] }
 0x262   :  { %v3084_v18 = vmul.f32 %v7256_v21, %v3074_v26 }
 0x263   :  { %v3148_v40 = vsel %vm1903_vm9, %v3145_v22, %v3147_v30  ;;  %v7530_v51 = vadd.f32 %v3189_v10, %v3161_v16  ;;  %v6056_v22 = vld [vmem:[#allocation13 + $0x124] sm:$0xf0]  ;;  %v6053_v16 = vld [vmem:[#allocation13 + $0x114] sm:$0xf]  ;;  %v5464_v10 = vld [vmem:[#allocation13 + $0xf0] sm:$0xf] }
 0x264   :  { %v3159_v0 = vmul.f32 %v7256_v21, %v3148_v40  ;;  %v3122_v61 = vpop.f32.mrf.mxu1  ;;  %v3136_v47 = vpop.f32.mrf.mxu3  ;;  %v5489_v37 = vor.u32 %v6056_v22, %v5488_v5  ;;  %v5485_v2 = vor.u32 %v6053_v16, %v5482_v53  ;;  %v5472_v40 = vld [vmem:[#allocation13 + $0x100] sm:$0xf]  ;;  %v6044_v5 = vld [vmem:[#allocation13 + $0xc4] sm:$0xf0]  ;;  %v6043_v22 = vld [vmem:[#allocation13 + $0xc4] sm:$0xf]  ;;  %v5627_v16 = vor.u32 %v6042_v15, %v5626_v63 }
 0x265   :  { %v3137_v20 = vadd.f32 %v3136_v47, %v3122_v61  ;;  %v7540_v52 = vpop.f32.mrf.mxu0  ;;  %v5474_v47 = vld [vmem:[#allocation13 + $0x108] sm:$0xf0]  ;;  %v6041_v53 = vld [vmem:[#allocation13 + $0xb4] sm:$0xf]  ;;  %v5520_v15 = vld [vmem:[#allocation13 + $0x160] sm:$0xf] }
 0x266   :  { %v7527_v29 = vadd.f32 %v3159_v0, %v3083_v11  ;;  %3725 = vmatpush.bf16.msra.mxu2 %v5489_v37  ;;  %v6052_v11 = vld [vmem:[#allocation13 + $0x104] sm:$0xf0]  ;;  %v6051_v0 = vld [vmem:[#allocation13 + $0x104] sm:$0xf]  ;;  %v5442_v37 = vld [vmem:[#allocation13 + $0xc8] sm:$0xf0] }
 0x267   :  { %v3146_v38 = vrot.slane %v3137_v20, 7  ;;  %v5473_v61 = vor.u32 %v6052_v11, %v5472_v40  ;;  %v5477_v4 = vor.u32 %v6051_v0, %v5474_v47  ;;  %v5618_v0 = vld [vmem:[#allocation13 + $0xa0] sm:$0xf] }
 0x268   :  { %v7542_v41 = vpop.f32.mrf.mxu2 }
 0x269   :  { %v3156_v33 = vsel %vm1903_vm9, 0.0, %v3146_v38 }
 0x26a   :  { %v3158_v12 = vmul.f32 %v7233_v55, %v3156_v33  ;;  %3726 = vmatpush.bf16.msra.mxu2 %v5481_v57  ;;  %v5465_v33 = vor.u32 %v6050_v62, %v5464_v10  ;;  %v5628_v57 = vld [vmem:[#allocation13 + $0xb8] sm:$0xf0]  ;;  %v5620_v10 = vld [vmem:[#allocation13 + $0xa8] sm:$0xf0] }
 0x26c   :  { %v3124_v39 = vpop.f32.mrf.mxu1  ;;  %v3138_v9 = vpop.f32.mrf.mxu3  ;;  %v3162_v36 = vadd.f32 %v3158_v12, %v3082_v3  ;;  %v5466_v3 = vld [vmem:[#allocation13 + $0xf8] sm:$0xf0] }
 0x26d   :  { %v3139_v1 = vadd.f32 %v3138_v9, %v3124_v39  ;;  %v7546_v34 = vpop.f32.mrf.mxu0  ;;  %v5456_v9 = vld [vmem:[#allocation13 + $0xe0] sm:$0xf] }
 0x26e   :  { %3727 = vmatpush.bf16.msra.mxu2 %v5473_v61  ;;  %v6040_v61 = vld [vmem:[#allocation13 + $0xa4] sm:$0xf0] }
 0x26f   :  { %v3149_v6 = vrot.slane %v3139_v1, 7  ;;  %v6047_v1 = vld [vmem:[#allocation13 + $0xe4] sm:$0xf]  ;;  %v5619_v47 = vor.u32 %v6040_v61, %v5618_v0  ;;  %v5512_v0 = vld [vmem:[#allocation13 + $0x150] sm:$0xf] }
 0x271   :  { %v3150_v56 = vsel %vm1903_vm9, %v3146_v38, %v3149_v6  ;;  %v6049_v38 = vld [vmem:[#allocation13 + $0xf4] sm:$0xf] }
 0x272   :  { %v3160_v54 = vmul.f32 %v7256_v21, %v3150_v56  ;;  %v5498_v21 = vld [vmem:[#allocation13 + $0x138] sm:$0xf0]  ;;  %v5469_v12 = vor.u32 %v6049_v38, %v5466_v3  ;;  %3728 = vmatpush.bf16.msra.mxu2 %v5465_v33  ;;  %v5458_v56 = vld [vmem:[#allocation13 + $0xe8] sm:$0xf0]  ;;  %v5610_v33 = vld [vmem:[#allocation13 + $0x90] sm:$0xf] }
 0x273   :  { %v5501_v59 = vor.u32 %v6057_v19, %v5498_v21  ;;  %v6038_v3 = vld [vmem:[#allocation13 + $0x94] sm:$0xf0] }
 0x274   :  { %v7538_v43 = vadd.f32 %v3160_v54, %v3084_v18  ;;  %v3216_v46 = vpop.f32.mrf.mxu1  ;;  %v5461_v54 = vor.u32 %v6047_v1, %v5458_v56  ;;  %v5612_v1 = vld [vmem:[#allocation13 + $0x98] sm:$0xf0]  ;;  %v5528_v56 = vld [vmem:[#allocation13 + $0x170] sm:$0xf] }
 0x275   :  { %3752 = vmatpush.bf16.msrb.mxu1 %v5501_v59  ;;  %v7550_v27 = vpop.f32.mrf.mxu0  ;;  %v5440_v59 = vld [vmem:[#allocation13 + $0xc0] sm:$0xf] }
 0x276   :  { %v5441_v31 = vor.u32 %v6044_v5, %v5440_v59  ;;  %v6035_v59 = vld [vmem:[#allocation13 + $0x84] sm:$0xf] }
 0x279   :  { %3753 = vmatpush.bf16.msrb.mxu1 %v5493_v24  ;;  %v5445_v24 = vor.u32 %v6043_v22, %v5442_v37  ;;  %v5604_v37 = vld [vmem:[#allocation13 + $0x88] sm:$0xf0] }
 0x27a   :  { %v5607_v63 = vor.u32 %v6035_v59, %v5604_v37  ;;  %v5596_v37 = vld [vmem:[#allocation13 + $0x78] sm:$0xf0] }
 0x27c   :  { %v7554_v44 = vpop.f32.mrf.mxu1 }
 0x27d   :  { %3754 = vmatpush.bf16.msrb.mxu1 %v5485_v2  ;;  %v5631_v2 = vor.u32 %v6041_v53, %v5628_v57  ;;  %v6063_v53 = vld [vmem:[#allocation13 + $0x164] sm:$0xf]  ;;  %v5522_v57 = vld [vmem:[#allocation13 + $0x168] sm:$0xf0] }
 0x280   :  { %v7548_v60 = vpop.f32.mrf.mxu2 }
 0x281   :  { %3755 = vmatpush.bf16.msrb.mxu1 %v5477_v4  ;;  %v6039_v4 = vld [vmem:[#allocation13 + $0xa4] sm:$0xf] }
 0x282   :  { %v3202_v13 = vpop.f32.mrf.mxu3  ;;  %v5623_v62 = vor.u32 %v6039_v4, %v5620_v10  ;;  %v6062_v4 = vld [vmem:[#allocation13 + $0x154] sm:$0xf0]  ;;  %v6061_v10 = vld [vmem:[#allocation13 + $0x154] sm:$0xf] }
 0x283   :  { %v3217_v55 = vadd.f32 %v3216_v46, %v3202_v13  ;;  %v5448_v46 = vld [vmem:[#allocation13 + $0xd0] sm:$0xf]  ;;  %v6046_v13 = vld [vmem:[#allocation13 + $0xd4] sm:$0xf0] }
 0x284   :  { %v5449_v7 = vor.u32 %v6046_v13, %v5448_v46  ;;  %v6065_v46 = vld [vmem:[#allocation13 + $0x174] sm:$0xf] }
 0x285   :  { %v7544_v35 = vadd.f32 %v3217_v55, %v3162_v36  ;;  %3756 = vmatpush.bf16.msrb.mxu1 %v5469_v12  ;;  %v6048_v36 = vld [vmem:[#allocation13 + $0xe4] sm:$0xf0]  ;;  %v6045_v55 = vld [vmem:[#allocation13 + $0xd4] sm:$0xf] }
 0x286   :  { %v5457_v6 = vor.u32 %v6048_v36, %v5456_v9  ;;  %v5453_v8 = vor.u32 %v6045_v55, %v5450_v58  ;;  %v6037_v12 = vld [vmem:[#allocation13 + $0x94] sm:$0xf]  ;;  %v5611_v36 = vor.u32 %v6038_v3, %v5610_v33  ;;  %v5530_v55 = vld [vmem:[#allocation13 + $0x178] sm:$0xf0]  ;;  %v5602_v58 = vld [vmem:[#allocation13 + $0x80] sm:$0xf] }
 0x288   :  { %v7552_v25 = vpop.f32.mrf.mxu2  ;;  %3729 = vmatpush.bf16.msra.mxu2 %v5457_v6  ;;  %v5615_v6 = vor.u32 %v6037_v12, %v5612_v1  ;;  %v5513_v12 = vor.u32 %v6062_v4, %v5512_v0 }
 0x289   :  { %3757 = vmatpush.bf16.msrb.mxu1 %v5461_v54  ;;  %v6066_v54 = vld [vmem:[#allocation13 + $0x174] sm:$0xf0] }
 0x28a   :  { %v7556_v30 = vpop.f32.mrf.mxu3  ;;  %v7558_v26 = vpop.f32.mrf.mxu0  ;;  %v5529_v13 = vor.u32 %v6066_v54, %v5528_v56  ;;  %v5504_v56 = vld [vmem:[#allocation13 + $0x140] sm:$0xf]  ;;  %v6060_v54 = vld [vmem:[#allocation13 + $0x144] sm:$0xf0] }
 0x28c   :  { %v7562_v48 = vpop.f32.mrf.mxu1  ;;  %3730 = vmatpush.bf16.msra.mxu2 %v5449_v7  ;;  %v5533_v7 = vor.u32 %v6065_v46, %v5530_v55  ;;  %3742 = vmatpush.bf16.msra.mxu0 %v5529_v13  ;;  %v6059_v46 = vld [vmem:[#allocation13 + $0x144] sm:$0xf]  ;;  %v5505_v55 = vor.u32 %v6060_v54, %v5504_v56 }
 0x28d   :  { %3758 = vmatpush.bf16.msrb.mxu1 %v5453_v8  ;;  %v6036_v8 = vld [vmem:[#allocation13 + $0x84] sm:$0xf0] }
 0x28e   :  { %3770 = vmatpush.bf16.msrb.mxu3 %v5533_v7  ;;  %v5506_v7 = vld [vmem:[#allocation13 + $0x148] sm:$0xf0] }
 0x290   :  { %v7560_v20 = vpop.f32.mrf.mxu2  ;;  %3731 = vmatpush.bf16.msra.mxu2 %v5441_v31  ;;  %v5603_v31 = vor.u32 %v6036_v8, %v5602_v58  ;;  %v5594_v58 = vld [vmem:[#allocation13 + $0x70] sm:$0xf]  ;;  %v6034_v8 = vld [vmem:[#allocation13 + $0x74] sm:$0xf0] }
 0x291   :  { %3759 = vmatpush.bf16.msrb.mxu1 %v5445_v24  ;;  %v6064_v24 = vld [vmem:[#allocation13 + $0x164] sm:$0xf0]  ;;  %v3309_v1 = vadd.f32 %v7560_v20, %v7558_v26  ;;  %v3191_v26 = vadd.f32 %v7542_v41, %v7540_v52  ;;  %v6031_v41 = vld [vmem:[#allocation13 + $0x64] sm:$0xf] }
 0x292   :  { %v7564_v39 = vpop.f32.mrf.mxu3  ;;  %v7566_v18 = vpop.f32.mrf.mxu0  ;;  %v6032_v52 = vld [vmem:[#allocation13 + $0x64] sm:$0xf0] }
 0x293   :  { %v3223_v4 = vadd.f32 %v3191_v26, %v7527_v29  ;;  %v6030_v29 = vld [vmem:[#allocation13 + $0x54] sm:$0xf0] }
 0x294   :  { %v7570_v21 = vpop.f32.mrf.mxu1  ;;  %3921 = vmatpush.bf16.msrb.mxu2 %v5627_v16  ;;  %v5521_v16 = vor.u32 %v6064_v24, %v5520_v15  ;;  %v3345_v15 = vrot.slane %v3309_v1, 1  ;;  %v5578_v1 = vld [vmem:[#allocation13 + $0x50] sm:$0xf] }
 0x295   :  { %3949 = vmatpush.bf16.msra.mxu1 %v5631_v2 }
 0x296   :  { %3743 = vmatpush.bf16.msra.mxu0 %v5521_v16 }
 0x298   :  { %v7568_v19 = vpop.f32.mrf.mxu2  ;;  %3922 = vmatpush.bf16.msrb.mxu2 %v5619_v47  ;;  %v5525_v47 = vor.u32 %v6063_v53, %v5522_v57  ;;  %v5586_v53 = vld [vmem:[#allocation13 + $0x60] sm:$0xf] }
 0x299   :  { %3950 = vmatpush.bf16.msra.mxu1 %v5623_v62  ;;  %v5514_v62 = vld [vmem:[#allocation13 + $0x158] sm:$0xf0]  ;;  %v3311_v33 = vadd.f32 %v7568_v19, %v7566_v18  ;;  %v5595_v19 = vor.u32 %v6034_v8, %v5594_v58  ;;  %v5587_v0 = vor.u32 %v6032_v52, %v5586_v53  ;;  %v8129_v58 = vmov 0.0  }
 0x29a   :  { %v7572_v32 = vpop.f32.mrf.mxu3  ;;  %v7574_v40 = vpop.f32.mrf.mxu0  ;;  %3771 = vmatpush.bf16.msrb.mxu3 %v5525_v47  ;;  %3744 = vmatpush.bf16.msra.mxu0 %v5513_v12  ;;  %v5588_v47 = vld [vmem:[#allocation13 + $0x68] sm:$0xf0] }
 0x29b   :  { %v3346_v59 = vrot.slane %v3311_v33, 1 }
 0x29c   :  { %v7578_v38 = vpop.f32.mrf.mxu1  ;;  %3923 = vmatpush.bf16.msrb.mxu2 %v5611_v36  ;;  %v5517_v36 = vor.u32 %v6061_v10, %v5514_v62 }
 0x29d   :  { %3951 = vmatpush.bf16.msra.mxu1 %v5615_v6  ;;  %v3347_v57 = vsel %vm1420_vm4, %v3345_v15, %v3346_v59  ;;  %v6028_v15 = vld [vmem:[#allocation13 + $0x44] sm:$0xf0] }
 0x29e   :  { %3772 = vmatpush.bf16.msrb.mxu3 %v5517_v36  ;;  %3745 = vmatpush.bf16.msra.mxu0 %v5505_v55  ;;  %v3357_v62 = vmul.f32 %v7006_v23, %v3347_v57  ;;  %v5579_v55 = vor.u32 %v6030_v29, %v5578_v1  ;;  %v5694_v1 = vld [vmem:[#allocation13 + $0x1f8] sm:$0xf0] }
 0x2a0   :  { %3924 = vmatpush.bf16.msrb.mxu2 %v5603_v31  ;;  %v6033_v31 = vld [vmem:[#allocation13 + $0x74] sm:$0xf] }
 0x2a1   :  { %3952 = vmatpush.bf16.msra.mxu1 %v5607_v63  ;;  %v5509_v63 = vor.u32 %v6059_v46, %v5506_v7  ;;  %v5599_v16 = vor.u32 %v6033_v31, %v5596_v37  ;;  %v5580_v7 = vld [vmem:[#allocation13 + $0x58] sm:$0xf0] }
 0x2a2   :  { %v3390_v5 = vpop.f32.mrf.mxu0  ;;  %3903 = vmatpush.bf16.msrb.mxu0 %v5595_v19 }
 0x2a3   :  { %3773 = vmatpush.bf16.msrb.mxu3 %v5509_v63  ;;  %v5570_v63 = vld [vmem:[#allocation13 + $0x40] sm:$0xf] }
 0x2a4   :  { %v7582_v2 = vpop.f32.mrf.mxu1 }
 0x2a6   :  { %3904 = vmatpush.bf16.msrb.mxu0 %v5587_v0 }
 0x2a7   :  { %3931 = vmatpush.bf16.msra.mxu3 %v5599_v16 }
 0x2aa   :  { %3905 = vmatpush.bf16.msrb.mxu0 %v5579_v55  ;;  %v6024_v55 = vld [vmem:[#allocation13 + $0x24] sm:$0xf0] }
 0x2b0   :  { %v7576_v11 = vpop.f32.mrf.mxu2 }
 0x2b1   :  { %v3389_v18 = vadd.f32 %v7574_v40, %v7576_v11  ;;  %v3249_v40 = vadd.f32 %v7546_v34, %v7548_v60  ;;  %v3251_v11 = vadd.f32 %v7550_v27, %v7552_v25  ;;  %v5591_v25 = vor.u32 %v6031_v41, %v5588_v47  ;;  %v5562_v47 = vld [vmem:[#allocation13 + $0x30] sm:$0xf] }
 0x2b2   :  { %v7580_v9 = vpop.f32.mrf.mxu3 }
 0x2b3   :  { %v3281_v56 = vadd.f32 %v3249_v40, %v7530_v51  ;;  %v3283_v54 = vadd.f32 %v3251_v11, %v3223_v4  ;;  %3932 = vmatpush.bf16.msra.mxu3 %v5591_v25  ;;  %v5571_v40 = vor.u32 %v6028_v15, %v5570_v63  ;;  %v5572_v11 = vld [vmem:[#allocation13 + $0x48] sm:$0xf0]  ;;  %v6026_v4 = vld [vmem:[#allocation13 + $0x34] sm:$0xf0]  ;;  %v5564_v25 = vld [vmem:[#allocation13 + $0x38] sm:$0xf0] }
 0x2b5   :  { %v3361_v31 = vadd.f32 %v3357_v62, %v3281_v56  ;;  %3906 = vmatpush.bf16.msrb.mxu0 %v5571_v40 }
 0x2b8   :  { %v3376_v22 = vpop.f32.mrf.mxu2 }
 0x2b9   :  { %v3391_v6 = vadd.f32 %v3390_v5, %v3376_v22  ;;  %v232_v5 = vadd.s32 2, %v6943_v14  ;;  %v233_v22 = vadd.s32 2, %v6945_v45  ;;  %v3355_v14 = vsel %vm1420_vm4, %v3346_v59, 0.0 }
 0x2ba   :  { %v7584_v61 = vpop.f32.mrf.mxu3  ;;  %v3454_v3 = vpop.f32.mrf.mxu0  ;;  %v3425_v45 = vrot.slane %v3389_v18, 1  ;;  %v3359_v33 = vmul.f32 %v7010_v42, %v3355_v14 }
 0x2bb   :  { %v3426_v24 = vrot.slane %v3391_v6, 1  ;;  %vm236_vm12 = vcmp.lt.s32.totalorder %v232_v5, 8  ;;  %vm237_vm13 = vcmp.lt.s32.totalorder %v233_v22, 8  ;;  %v6029_v6 = vld [vmem:[#allocation13 + $0x54] sm:$0xf]  ;;  %v3339_v29 = vadd.f32 %v7582_v2, %v7584_v61 }
 0x2bc   :  { %v7594_v20 = vpop.f32.mrf.mxu1  ;;  %v7616_v8 = vsel %vm236_vm12, 1.0, %v8129_v58  ;;  %v7620_v18 = vsel %vm237_vm13, 1.0, %v8129_v58  ;;  %v5583_v19 = vor.u32 %v6029_v6, %v5580_v7  ;;  %v3363_v37 = vadd.f32 %v3359_v33, %v3283_v54  ;;  %v5684_v58 = vld [vmem:[#allocation13 + $0x1e0] sm:$0xf]  ;;  %v5686_v2 = vld [vmem:[#allocation13 + $0x1e8] sm:$0xf0] }
 0x2bd   :  { %v3427_v34 = vsel %vm1420_vm4, %v3425_v45, %v3426_v24  ;;  %v3435_v60 = vsel %vm1420_vm4, %v3426_v24, 0.0  ;;  %v6027_v24 = vld [vmem:[#allocation13 + $0x44] sm:$0xf]  ;;  %v3337_v7 = vadd.f32 %v7578_v38, %v7580_v9  ;;  %v3349_v63 = vrot.slane %v3339_v29, 1  ;;  %v5546_v38 = vld [vmem:[#allocation13 + $0x10] sm:$0xf] }
 0x2be   :  { %3933 = vmatpush.bf16.msra.mxu3 %v5583_v19  ;;  %v5575_v57 = vor.u32 %v6027_v24, %v5572_v11  ;;  %v6022_v9 = vld [vmem:[#allocation13 + $0x14] sm:$0xf0]  ;;  %v3279_v29 = vadd.f32 %v7572_v32, %v7570_v21 }
 0x2bf   :  { %v3348_v40 = vrot.slane %v3337_v7, 1 }
 0x2c0   :  { %v3468_v13 = vpop.f32.mrf.mxu2 }
 0x2c1   :  { %v3469_v27 = vadd.f32 %v3468_v13, %v3454_v3  ;;  %v3437_v3 = vmul.f32 %v7006_v23, %v3427_v34  ;;  %v3439_v13 = vmul.f32 %v7010_v42, %v3435_v60  ;;  %v6025_v34 = vld [vmem:[#allocation13 + $0x34] sm:$0xf]  ;;  %v5692_v60 = vld [vmem:[#allocation13 + $0x1f0] sm:$0xf] }
 0x2c2   :  { %v7605_v10 = vpop.f32.mrf.mxu3  ;;  %v3456_v12 = vpop.f32.mrf.mxu0  ;;  %3934 = vmatpush.bf16.msra.mxu3 %v5575_v57  ;;  %v5567_v6 = vor.u32 %v6025_v34, %v5564_v25  ;;  %v6078_v57 = vld [vmem:[#allocation13 + $0x1d4] sm:$0xf0]  ;;  %v6020_v34 = vld [vmem:[#allocation13 + $0x4] sm:$0xf0]  ;;  %v3356_v25 = vsel %vm1420_vm4, %v3349_v63, 0.0 }
 0x2c3   :  { %v3506_v59 = vrot.slane %v3469_v27, 2  ;;  %v3441_v53 = vadd.f32 %v3437_v3, %v3361_v31  ;;  %v3443_v22 = vadd.f32 %v3439_v13, %v3363_v37  ;;  %v5563_v27 = vor.u32 %v6026_v4, %v5562_v47  ;;  %v6080_v31 = vld [vmem:[#allocation13 + $0x1e4] sm:$0xf0]  ;;  %v6079_v37 = vld [vmem:[#allocation13 + $0x1e4] sm:$0xf] }
 0x2c4   :  { %v3404_v26 = vpop.f32.mrf.mxu1  ;;  %v3417_v11 = vadd.f32 %v7605_v10, %v7594_v20  ;;  %v5538_v4 = vld [vmem:[#allocation13] sm:$0xf]  ;;  %v3350_v20 = vsel %vm1420_vm4, %v3348_v40, %v3349_v63  ;;  %v6019_v10 = vld [vmem:[#allocation13 + $0x4] sm:$0xf] }
 0x2c5   :  { %3907 = vmatpush.bf16.msrb.mxu0 %v5563_v27  ;;  %v5540_v27 = vld [vmem:[#allocation13 + $0x8] sm:$0xf0]  ;;  %v5652_v40 = vld [vmem:[#allocation13 + $0x1a0] sm:$0xf] }
 0x2c6   :  { %3935 = vmatpush.bf16.msra.mxu3 %v5567_v6  ;;  %v6076_v6 = vld [vmem:[#allocation13 + $0x1c4] sm:$0xf0]  ;;  %v5543_v7 = vor.u32 %v6019_v10, %v5540_v27  ;;  %v5724_v10 = vld [vmem:[#allocation13 + $0x230] sm:$0xf]  ;;  %v6090_v27 = vld [vmem:[#allocation13 + $0x234] sm:$0xf0] }
 0x2c8   :  { %v3470_v36 = vpop.f32.mrf.mxu2 }
 0x2c9   :  { %v3471_v46 = vadd.f32 %v3470_v36, %v3456_v12  ;;  %v6082_v12 = vld [vmem:[#allocation13 + $0x1f4] sm:$0xf0]  ;;  %v6081_v36 = vld [vmem:[#allocation13 + $0x1f4] sm:$0xf] }
 0x2ca   :  { %v3418_v14 = vpop.f32.mrf.mxu3  ;;  %v5693_v3 = vor.u32 %v6082_v12, %v5692_v60  ;;  %v5697_v13 = vor.u32 %v6081_v36, %v5694_v1  ;;  %v3219_v60 = vadd.f32 %v7554_v44, %v7556_v30  ;;  %v5668_v36 = vld [vmem:[#allocation13 + $0x1c0] sm:$0xf]  ;;  %v3277_v1 = vadd.f32 %v7564_v39, %v7562_v48  ;;  %v6075_v44 = vld [vmem:[#allocation13 + $0x1c4] sm:$0xf]  ;;  %v5670_v30 = vld [vmem:[#allocation13 + $0x1c8] sm:$0xf0] }
 0x2cb   :  { %v3507_v51 = vrot.slane %v3471_v46, 2  ;;  %v5554_v46 = vld [vmem:[#allocation13 + $0x20] sm:$0xf]  ;;  %v3419_v15 = vadd.f32 %v3418_v14, %v3404_v26  ;;  %v6077_v26 = vld [vmem:[#allocation13 + $0x1d4] sm:$0xf]  ;;  %v3360_v48 = vmul.f32 %v7010_v42, %v3356_v25 }
 0x2cc   :  { %v3496_v19 = vpop.f32.mrf.mxu1  ;;  %v5555_v61 = vor.u32 %v6024_v55, %v5554_v46  ;;  %v5678_v14 = vld [vmem:[#allocation13 + $0x1d8] sm:$0xf0]  ;;  %v6089_v25 = vld [vmem:[#allocation13 + $0x234] sm:$0xf] }
 0x2cd   :  { %v3508_v16 = vsel %vm3505_vm14, %v3506_v59, %v3507_v51  ;;  %v3516_v5 = vsel %vm3505_vm14, %v3507_v51, 0.0  ;;  %v5556_v59 = vld [vmem:[#allocation13 + $0x28] sm:$0xf0]  ;;  %v5681_v12 = vor.u32 %v6077_v26, %v5678_v14 }
 0x2ce   :  { %v3518_v52 = vmul.f32 %v7616_v8, %v3508_v16  ;;  %v3520_v41 = vmul.f32 %v7620_v18, %v3516_v5  ;;  %v6021_v5 = vld [vmem:[#allocation13 + $0x14] sm:$0xf]  ;;  %3908 = vmatpush.bf16.msrb.mxu0 %v5555_v61  ;;  %v5662_v61 = vld [vmem:[#allocation13 + $0x1b8] sm:$0xf0]  ;;  %v5654_v26 = vld [vmem:[#allocation13 + $0x1a8] sm:$0xf0] }
 0x2d0   :  { %v3522_v45 = vadd.f32 %v3518_v52, %v3441_v53  ;;  %v3524_v0 = vadd.f32 %v3520_v41, %v3443_v22  ;;  %v5685_v53 = vor.u32 %v6080_v31, %v5684_v58  ;;  %v5689_v22 = vor.u32 %v6079_v37, %v5686_v2  ;;  %v5676_v52 = vld [vmem:[#allocation13 + $0x1d0] sm:$0xf]  ;;  %v5548_v41 = vld [vmem:[#allocation13 + $0x18] sm:$0xf0]  ;;  %v6073_v2 = vld [vmem:[#allocation13 + $0x1b4] sm:$0xf] }
 0x2d1   :  { %v5551_v47 = vor.u32 %v6021_v5, %v5548_v41  ;;  %v5669_v58 = vor.u32 %v6076_v6, %v5668_v36  ;;  %v5665_v5 = vor.u32 %v6073_v2, %v5662_v61  ;;  %v6072_v41 = vld [vmem:[#allocation13 + $0x1a4] sm:$0xf0]  ;;  %v5702_v2 = vld [vmem:[#allocation13 + $0x208] sm:$0xf0] }
 0x2d2   :  { %v3542_v62 = vadd.f32 %v7469_v50, %v3522_v45  ;;  %v3544_v33 = vadd.f32 %v7469_v50, %v3524_v0  ;;  %v6023_v50 = vld [vmem:[#allocation13 + $0x24] sm:$0xf]  ;;  %v5547_v45 = vor.u32 %v6022_v9, %v5546_v38  ;;  %v3429_v0 = vrot.slane %v3419_v15, 1  ;;  %v6068_v6 = vld [vmem:[#allocation13 + $0x184] sm:$0xf0] }
 0x2d3   :  { %v5559_v24 = vor.u32 %v6023_v50, %v5556_v59  ;;  %v5673_v50 = vor.u32 %v6075_v44, %v5670_v30  ;;  %v5660_v59 = vld [vmem:[#allocation13 + $0x1b0] sm:$0xf]  ;;  %v6067_v30 = vld [vmem:[#allocation13 + $0x184] sm:$0xf] }
 0x2d4   :  { %v3546_v56 = vmax.f32 %v3542_v62, 0.0  ;;  %v3548_v54 = vmax.f32 %v3544_v33, 0.0  ;;  %v3428_v62 = vrot.slane %v3417_v11, 1  ;;  %v5677_v33 = vor.u32 %v6078_v57, %v5676_v52  ;;  %3909 = vmatpush.bf16.msrb.mxu0 %v5547_v45  ;;  %v3498_v39 = vpop.f32.mrf.mxu1  ;;  %v6071_v57 = vld [vmem:[#allocation13 + $0x1a4] sm:$0xf] }
 0x2d5   :  { %3936 = vmatpush.bf16.msra.mxu3 %v5559_v24  ;;  %v3436_v46 = vsel %vm1420_vm4, %v3429_v0, 0.0 }
 0x2d6   :  { %v3550_v51 = vpack.c.bf16 %v3548_v54, %v3546_v56  ;;  %v5539_v56 = vor.u32 %v6020_v34, %v5538_v4  ;;  %v3430_v54 = vsel %vm1420_vm4, %v3428_v62, %v3429_v0  ;;  %v3440_v37 = vmul.f32 %v7010_v42, %v3436_v46  ;;  %v5644_v4 = vld [vmem:[#allocation13 + $0x190] sm:$0xf]  ;;  %v6070_v34 = vld [vmem:[#allocation13 + $0x194] sm:$0xf0]  ;;  %v5726_v62 = vld [vmem:[#allocation13 + $0x238] sm:$0xf0] }
 0x2d7   :  { %v5653_v0 = vor.u32 %v6072_v41, %v5652_v40  ;;  %v5645_v36 = vor.u32 %v6070_v34, %v5644_v4  ;;  %v5729_v46 = vor.u32 %v6089_v25, %v5726_v62 }
 0x2d8   :  { %3732 = vmatmul.bf16.vlgmr.msra.gmra.mxu2 %v3550_v51  ;;  %3760 = vmatmul.bf16.vlgmr.msrb.gmra.mxu1 %v3550_v51  ;;  %v3282_v51 = vadd.f32 %v3277_v1, %v7544_v35 }
 0x2d9   :  { %4104 = vmatpush.bf16.msra.mxu2 %v5693_v3  ;;  %4132 = vmatpush.bf16.msrb.mxu1 %v5697_v13  ;;  %v3224_v3 = vadd.f32 %v3219_v60, %v7538_v43  ;;  %v3358_v13 = vmul.f32 %v7006_v23, %v3350_v20  ;;  %v6074_v43 = vld [vmem:[#allocation13 + $0x1b4] sm:$0xf0]  ;;  %v6069_v60 = vld [vmem:[#allocation13 + $0x194] sm:$0xf]  ;;  %v5646_v20 = vld [vmem:[#allocation13 + $0x198] sm:$0xf0] }
 0x2da   :  { %3937 = vmatpush.bf16.msra.mxu3 %v5551_v47  ;;  %3910 = vmatpush.bf16.msrb.mxu0 %v5539_v56  ;;  %v5661_v35 = vor.u32 %v6074_v43, %v5660_v59  ;;  %v5657_v47 = vor.u32 %v6071_v57, %v5654_v26  ;;  %v5649_v1 = vor.u32 %v6069_v60, %v5646_v20  ;;  %v5638_v56 = vld [vmem:[#allocation13 + $0x188] sm:$0xf0]  ;;  %v5710_v59 = vld [vmem:[#allocation13 + $0x218] sm:$0xf0]  ;;  %v6083_v43 = vld [vmem:[#allocation13 + $0x204] sm:$0xf] }
 0x2db   :  { %v3284_v31 = vadd.f32 %v3279_v29, %v3224_v3  ;;  %v3362_v24 = vadd.f32 %v3358_v13, %v3282_v51  ;;  %v5636_v29 = vld [vmem:[#allocation13 + $0x180] sm:$0xf]  ;;  %v5718_v3 = vld [vmem:[#allocation13 + $0x228] sm:$0xf0] }
 0x2dc   :  { %v5637_v13 = vor.u32 %v6068_v6, %v5636_v29 }
 0x2dd   :  { %4105 = vmatpush.bf16.msra.mxu2 %v5685_v53  ;;  %4133 = vmatpush.bf16.msrb.mxu1 %v5689_v22 }
 0x2de   :  { %3938 = vmatpush.bf16.msra.mxu3 %v5543_v7  ;;  %v6087_v7 = vld [vmem:[#allocation13 + $0x224] sm:$0xf] }
 0x2e1   :  { %4106 = vmatpush.bf16.msra.mxu2 %v5677_v33  ;;  %4134 = vmatpush.bf16.msrb.mxu1 %v5681_v12 }
 0x2e2   :  { %v3482_v16 = vpop.f32.mrf.mxu3 }
 0x2e3   :  { %v3497_v55 = vadd.f32 %v3496_v19, %v3482_v16  ;;  %v3438_v19 = vmul.f32 %v7006_v23, %v3430_v54  ;;  %v3364_v16 = vadd.f32 %v3360_v48, %v3284_v31  ;;  %v5725_v54 = vor.u32 %v6090_v27, %v5724_v10  ;;  %v4184_v27 = vld [vmem:[%s7723_s11] sm:$0x3] }
 0x2e4   :  { %v5641_v48 = vor.u32 %v6067_v30, %v5638_v56  ;;  %v4186_v29 = vperm.slane %v4184_v27, 0 }
 0x2e5   :  { %v3509_v63 = vrot.slane %v3497_v55, 2  ;;  %4107 = vmatpush.bf16.msra.mxu2 %v5669_v58  ;;  %4135 = vmatpush.bf16.msrb.mxu1 %v5673_v50  ;;  %v3442_v11 = vadd.f32 %v3438_v19, %v3362_v24  ;;  %v3444_v53 = vadd.f32 %v3440_v37, %v3364_v16  ;;  %v6088_v55 = vld [vmem:[#allocation13 + $0x224] sm:$0xf0]  ;;  %v6086_v58 = vld [vmem:[#allocation13 + $0x214] sm:$0xf0] }
 0x2e6   :  { %v6085_v50 = vld [vmem:[#allocation13 + $0x214] sm:$0xf]  ;;  %v5700_v19 = vld [vmem:[#allocation13 + $0x200] sm:$0xf]  ;;  %v6084_v37 = vld [vmem:[#allocation13 + $0x204] sm:$0xf0] }
 0x2e7   :  { %v5713_v31 = vor.u32 %v6085_v50, %v5710_v59  ;;  %v5701_v61 = vor.u32 %v6084_v37, %v5700_v19  ;;  %v4187_v50 = vperm.slane %v4184_v27, 1 }
 0x2e8   :  { %5632 = vmatmul.msk.bf16.vlgmr.msrb.gmra.mxu2 %vm722_vm1, %v7516_v28  ;;  %5633 = vmatmul.msk.bf16.vlgmr.msra.gmra.mxu1 %vm722_vm1, %v7516_v28 }
 0x2e9   :  { %4108 = vmatpush.bf16.msra.mxu2 %v5661_v35  ;;  %4136 = vmatpush.bf16.msrb.mxu1 %v5665_v5 }
 0x2ea   :  { %v3484_v21 = vpop.f32.mrf.mxu3 }
 0x2eb   :  { %v3499_v32 = vadd.f32 %v3498_v39, %v3484_v21  ;;  %v5721_v21 = vor.u32 %v6087_v7, %v5718_v3 }
 0x2ed   :  { %v3510_v15 = vrot.slane %v3499_v32, 2  ;;  %4109 = vmatpush.bf16.msra.mxu2 %v5653_v0  ;;  %4137 = vmatpush.bf16.msrb.mxu1 %v5657_v47  ;;  %v5708_v32 = vld [vmem:[#allocation13 + $0x210] sm:$0xf] }
 0x2ee   :  { %v5709_v51 = vor.u32 %v6086_v58, %v5708_v32 }
 0x2ef   :  { %v3511_v38 = vsel %vm3505_vm14, %v3509_v63, %v3510_v15  ;;  %v3517_v9 = vsel %vm3505_vm14, %v3510_v15, 0.0  ;;  %v5705_v63 = vor.u32 %v6083_v43, %v5702_v2 }
 0x2f0   :  { %v3519_v22 = vmul.f32 %v7616_v8, %v3511_v38  ;;  %v3521_v52 = vmul.f32 %v7620_v18, %v3517_v9 }
 0x2f1   :  { %4110 = vmatpush.bf16.msra.mxu2 %v5645_v36  ;;  %4138 = vmatpush.bf16.msrb.mxu1 %v5649_v1 }
 0x2f2   :  { %v3523_v14 = vadd.f32 %v3519_v22, %v3442_v11  ;;  %v3525_v45 = vadd.f32 %v3521_v52, %v3444_v53 }
 0x2f4   :  { %v3543_v8 = vadd.f32 %v7507_v17, %v3523_v14  ;;  %v3545_v18 = vadd.f32 %v7507_v17, %v3525_v45  ;;  %v5716_v17 = vld [vmem:[#allocation13 + $0x220] sm:$0xf] }
 0x2f5   :  { %v5717_v39 = vor.u32 %v6088_v55, %v5716_v17  ;;  %4111 = vmatpush.bf16.msra.mxu2 %v5637_v13  ;;  %4139 = vmatpush.bf16.msrb.mxu1 %v5641_v48 }
 0x2f6   :  { %v3547_v33 = vmax.f32 %v3543_v8, 0.0  ;;  %v3549_v12 = vmax.f32 %v3545_v18, 0.0 }
 0x2f8   :  { %v3551_v44 = vpack.c.bf16 %v3549_v12, %v3547_v33  ;;  %4112 = vmatmul.bf16.vlgmr.msra.gmra.mxu2 %v7497_v49  ;;  %4140 = vmatmul.bf16.vlgmr.msrb.gmra.mxu1 %v7497_v49 }
 0x2fa   :  { %5534 = vmatmul.msk.bf16.vlgmr.msra.gmra.mxu0 %vm722_vm1, %v3551_v44  ;;  %5535 = vmatmul.msk.bf16.vlgmr.msrb.gmra.mxu3 %vm722_vm1, %v3551_v44 }
 0x2fb   :  { %4122 = vmatpush.bf16.msra.mxu0 %v5725_v54  ;;  %4150 = vmatpush.bf16.msrb.mxu3 %v5729_v46 }
 0x2ff   :  { %4123 = vmatpush.bf16.msra.mxu0 %v5717_v39  ;;  %4151 = vmatpush.bf16.msrb.mxu3 %v5721_v21 }
 0x303   :  { %4124 = vmatpush.bf16.msra.mxu0 %v5709_v51  ;;  %4152 = vmatpush.bf16.msrb.mxu3 %v5713_v31 }
 0x307   :  { %4125 = vmatpush.bf16.msra.mxu0 %v5701_v61  ;;  %4153 = vmatpush.bf16.msrb.mxu3 %v5705_v63 }
 0x30a   :  { %3911 = vmatmul.bf16.vlgmr.msrb.gmra.mxu0 %v7497_v49  ;;  %3939 = vmatmul.bf16.vlgmr.msra.gmra.mxu3 %v7497_v49 }
 0x31a   :  { %5730 = vmatmul.msk.bf16.vlgmr.msra.gmra.mxu0 %vm722_vm1, %v7516_v28  ;;  %5731 = vmatmul.msk.bf16.vlgmr.msrb.gmra.mxu3 %vm722_vm1, %v7516_v28 }
 0x355   :  { %v3761_v24 = vpop.f32.mrf.mxu1 }
 0x35b   :  { %v3733_v15 = vpop.f32.mrf.mxu2 }
 0x35d   :  { %v3763_v9 = vpop.f32.mrf.mxu1 }
 0x363   :  { %v3735_v16 = vpop.f32.mrf.mxu2 }
 0x365   :  { %v3954_v53 = vpop.f32.mrf.mxu1 }
 0x36b   :  { %v3926_v40 = vpop.f32.mrf.mxu2 }
 0x36d   :  { %v3956_v57 = vpop.f32.mrf.mxu1 }
 0x373   :  { %v3928_v52 = vpop.f32.mrf.mxu2 }
 0x375   :  { %v4141_v0 = vpop.f32.mrf.mxu1 }
 0x377   :  { %v3747_v38 = vpop.f32.mrf.mxu0 }
 0x378   :  { %v3748_v4 = vadd.f32 %v3747_v38, %v3733_v15 }
 0x37b   :  { %v4113_v26 = vpop.f32.mrf.mxu2 }
 0x37d   :  { %v3775_v35 = vpop.f32.mrf.mxu3  ;;  %v4143_v44 = vpop.f32.mrf.mxu1 }
 0x37e   :  { %v3776_v33 = vadd.f32 %v3775_v35, %v3761_v24  ;;  %v8130_v35 = vld [vmem:[#allocation118_spill] sm:$0xff] }
 0x37f   :  { %v3749_v5 = vpop.f32.mrf.mxu0 }
 0x380   :  { %v3750_v34 = vadd.f32 %v3749_v5, %v3735_v16  ;;  %v8131_v5 = vld [vmem:[#allocation127_spill] sm:$0xff] }
 0x383   :  { %v4115_v8 = vpop.f32.mrf.mxu2 }
 0x385   :  { %v3777_v11 = vpop.f32.mrf.mxu3 }
 0x386   :  { %v3778_v12 = vadd.f32 %v3777_v11, %v3763_v9  ;;  %v8132_v11 = vld [vmem:[#allocation20_spill] sm:$0xff] }
 0x387   :  { %v3912_v22 = vpop.f32.mrf.mxu0 }
 0x388   :  { %v3913_v20 = vadd.f32 %v3912_v22, %v3748_v4  ;;  %v8134_v22 = vld [vmem:[#allocation146_spill] sm:$0xff] }
 0x38a   :  { %v3927_v30 = vadd.f32 %v3926_v40, %v3913_v20  ;;  %v808_v40 = vadd.f32 %v8131_v5, %v8130_v35 }
 0x38d   :  { %v3940_v41 = vpop.f32.mrf.mxu3 }
 0x38e   :  { %v3941_v55 = vadd.f32 %v3940_v41, %v3776_v33 }
 0x38f   :  { %v3914_v49 = vpop.f32.mrf.mxu0 }
 0x390   :  { %v3915_v10 = vadd.f32 %v3914_v49, %v3750_v34  ;;  %v3955_v59 = vadd.f32 %v3954_v53, %v3941_v55  ;;  %v8133_v53 = vrot.slane %v8132_v11, 1  ;;  %v8135_v49 = vld [vmem:[#allocation142_spill] sm:$0xff] }
 0x392   :  { %v3929_v56 = vadd.f32 %v3928_v52, %v3915_v10  ;;  %v1073_v52 = vadd.f32 %v8134_v22, %v808_v40 }
 0x395   :  { %v3942_v14 = vpop.f32.mrf.mxu3 }
 0x396   :  { %v3943_v7 = vadd.f32 %v3942_v14, %v3778_v12  ;;  %v8136_v14 = vld [vmem:[#allocation153_spill] sm:$0xff] }
 0x397   :  { %v4127_v45 = vpop.f32.mrf.mxu0 }
 0x398   :  { %v4128_v47 = vadd.f32 %v4127_v45, %v4113_v26  ;;  %v3957_v51 = vadd.f32 %v3956_v57, %v3943_v7  ;;  %v1087_v57 = vadd.f32 %v8135_v49, %v1073_v52  ;;  %v8137_v45 = vperm.slane %v8136_v14, 2 }
 0x39a   :  { %v4164_v25 = vrot.slane %v4128_v47, 1  ;;  %v8138_v47 = vld [vmem:[#allocation21_spill] sm:$0xff] }
 0x39b   :  { %v1467_v4 = vmax.f32 %v8138_v47, 0.0 }
 0x39d   :  { %v4155_v28 = vpop.f32.mrf.mxu3 }
 0x39e   :  { %v4156_v36 = vadd.f32 %v4155_v28, %v4141_v0 }
 0x39f   :  { %v4129_v18 = vpop.f32.mrf.mxu0 }
 0x3a0   :  { %v4130_v60 = vadd.f32 %v4129_v18, %v4115_v8  ;;  %v4167_v39 = vrot.slane %v4156_v36, 1 }
 0x3a2   :  { %v4165_v62 = vrot.slane %v4130_v60, 1 }
 0x3a4   :  { %v4174_v1 = vsel %vm1420_vm4, %v4165_v62, 0.0  ;;  %v4166_v6 = vsel %vm1420_vm4, %v4164_v25, %v4165_v62 }
 0x3a5   :  { %v4178_v54 = vmul.f32 %v7010_v42, %v4174_v1  ;;  %v4157_v46 = vpop.f32.mrf.mxu3  ;;  %v4176_v17 = vmul.f32 %v7006_v23, %v4166_v6 }
 0x3a6   :  { %v4158_v3 = vadd.f32 %v4157_v46, %v4143_v44 }
 0x3a7   :  { %v4182_v13 = vadd.f32 %v4178_v54, %v3929_v56  ;;  %v4180_v48 = vadd.f32 %v4176_v17, %v3927_v30 }
 0x3a8   :  { %v4168_v21 = vrot.slane %v4158_v3, 1 }
 0x3a9   :  { %v4192_v32 = vadd.f32 %v4186_v29, %v4182_v13  ;;  %v4190_v58 = vadd.f32 %v4186_v29, %v4180_v48 }
 0x3aa   :  { %v4169_v31 = vsel %vm1420_vm4, %v4167_v39, %v4168_v21  ;;  %v4175_v19 = vsel %vm1420_vm4, %v4168_v21, 0.0 }
 0x3ab   :  { %v4179_v37 = vmul.f32 %v7010_v42, %v4175_v19  ;;  %v4196_v43 = vmax.f32 %v4192_v32, 0.0  ;;  %v4194_v2 = vmax.f32 %v4190_v58, 0.0  ;;  %v4177_v61 = vmul.f32 %v7006_v23, %v4169_v31 }
 0x3ac   :  { %v1438_v23 = vsel %vm1420_vm4, %v8133_v53, 0.0 }
 0x3ad   :  { %4224 = vrot.lane.b32.xlu1 %v4196_v43, %s6309_s29  ;;  %4220 = vrot.lane.b32.xlu0 %v4194_v2, %s6309_s29  ;;  %v4183_v63 = vadd.f32 %v4179_v37, %v3957_v51  ;;  %v4181_v15 = vadd.f32 %v4177_v61, %v3955_v59  ;;  %v1444_v41 = vmul.f32 %v7010_v42, %v1438_v23 }
 0x3af   :  { %v4193_v24 = vadd.f32 %v4187_v50, %v4183_v63  ;;  %v4191_v16 = vadd.f32 %v4187_v50, %v4181_v15  ;;  %v1450_v26 = vadd.f32 %v1444_v41, %v1087_v57 }
 0x3b1   :  { %v4197_v38 = vmax.f32 %v4193_v24, 0.0  ;;  %v4195_v9 = vmax.f32 %v4191_v16, 0.0  ;;  %v1464_v0 = vadd.f32 %v8137_v45, %v1450_v26 }
 0x3b3   :  { %v1470_v28 = vmax.f32 %v1464_v0, 0.0 }
 0x3b5   :  { %4226 = vrot.lane.b32.xlu1 %v4197_v38, %s6309_s29  ;;  %4222 = vrot.lane.b32.xlu0 %v4195_v9, %s6309_s29 }
 0x41f   :  { %v4225_v34 = vpop.permute.xlu1 %4224  ;;  %v4221_v8 = vpop.permute.xlu0 %4220 }
 0x420   :  { %v4235_v18 = vsel %vm722_vm1, %v1470_v28, %v4225_v34  ;;  %v4234_v60 = vsel %vm722_vm1, %v1467_v4, %v4221_v8 }
 0x421   :  { %5734 = vst [vmem:[%s7724_s12 + $0x38] sm:$0x7f] %v4235_v18 }
 0x422   :  { %4238 = vst [vmem:[%s7724_s12 + $0x10] sm:$0x7f] %v4234_v60 }
 0x427   :  { %v4227_v42 = vpop.permute.xlu1 %4226  ;;  %v4223_v20 = vpop.permute.xlu0 %4222 }
 0x428   :  { %v4229_v10 = vsel %vm722_vm1, %v4225_v34, %v4227_v42  ;;  %v4228_v27 = vsel %vm722_vm1, %v4221_v8, %v4223_v20 }
 0x429   :  { %5735 = vst [vmem:[%s7724_s12 + $0x40] sm:$0x7f] %v4229_v10 }
 0x42a   :  { %4239 = vst [vmem:[%s7724_s12 + $0x18] sm:$0x7f] %v4228_v27 }
 0x42b   :  { %4252 = vsyncpa [#allocation3], 1 }
 0x42c   :  { %4253 = vsyncpa [#allocation5], 1 }
 0x42d   :  { %4254 = vsyncpa [#allocation8], 1 }
 0x42e   :  { %4255 = vsyncpa [#allocation11], 1 }
 0x42f   :  { %4256 = vsyncpa [#allocation14], 1 }

</bundles_post_ra>
